<compile_context>
chip_gen: v5e
topology: v5e:2x2
jax: 0.10.0
libtpu: 0.0.40
codegen_flags: <defaults>
</compile_context>

<pallas_src>
import math
import functools

import jax
import jax.numpy as jnp
from jax import lax
from jax.experimental import pallas as pl
from jax.experimental.pallas import tpu as pltpu


# ---------------------------- tiling helpers ----------------------------

_ROW_TILES = (512, 256, 128, 64, 32, 16)     # multiples of 16 (bf16-safe sublanes)
_LANE_TILES = (512, 384, 256, 128)           # multiples of 128 lanes
_VMEM_BUDGET = 40 * 1024 * 1024              # tile-selection budget (fits v7x 64 MiB VMEM)
_VMEM_LIMIT = 64 * 1024 * 1024               # explicit scoped-VMEM limit for Mosaic
_SEQ_PAD = 128                               # lane-dense padded sequence granularity


def _pick_tile(dim, candidates, fits=None):
    """Largest candidate that evenly divides `dim` (and fits the budget), else full dim."""
    for c in candidates:
        if c <= dim and dim % c == 0 and (fits is None or fits(c)):
            return c
    return dim


def _round_up(n, m):
    return ((n + m - 1) // m) * m


# ---------------------------- Pallas kernels ----------------------------

def _ln_linear_kernel(x_ref, g_ref, b_ref, w_ref, bias_ref, o_ref, y_ref):
    # Fused LayerNorm (fp32, eps=1e-5) + Linear.  Grid = (row tiles, out tiles),
    # the column axis is the inner ("arbitrary") axis; LN is computed ONCE per
    # row tile (at j == 0), cached in bf16 VMEM scratch and reused for j > 0.
    j = pl.program_id(1)

    @pl.when(j == 0)
    def _():
        x = x_ref[...].astype(jnp.float32)
        mean = jnp.mean(x, axis=-1, keepdims=True)
        var = jnp.mean(jnp.square(x - mean), axis=-1, keepdims=True)
        y = (x - mean) * lax.rsqrt(var + 1e-5) * g_ref[...] + b_ref[...]
        y_ref[...] = y.astype(jnp.bfloat16)

    acc = jnp.dot(y_ref[...], w_ref[...], preferred_element_type=jnp.float32)
    o_ref[...] = (acc + bias_ref[...]).astype(o_ref.dtype)


def _attn_kernel(q_ref, k_ref, v_ref, xres_ref, wout_ref, outb_ref,
                 o_ref, cls_ref, osc_ref, cls_sc_ref, *, n_head, scale, valid_n):
    # Grid = (batch, head).  One head per step: softmax attention for this head,
    # context written into a per-head VMEM slab.  At the last head: one full-K
    # (Np, C) @ (C, C) output projection + bias + residual, and the head-averaged
    # CLS attention row.  Padded key columns (>= valid_n) are masked out.
    h = pl.program_id(1)

    @pl.when(h == 0)
    def _():
        cls_sc_ref[...] = jnp.zeros_like(cls_sc_ref)

    q = q_ref[...] * scale                               # (Np, Dh) bf16, scale folded into q
    k = k_ref[...]
    v = v_ref[...]

    s = lax.dot_general(q, k, (((1,), (1,)), ((), ())),
                        preferred_element_type=jnp.float32)   # (Np, Np) f32
    col = lax.broadcasted_iota(jnp.int32, s.shape, 1)
    s = jnp.where(col < valid_n, s, -1e30)               # mask padded keys
    s = s - jnp.max(s, axis=-1, keepdims=True)
    p = jnp.exp(s)
    p = p * pl.reciprocal(jnp.sum(p, axis=-1, keepdims=True), approx=True)

    cls_sc_ref[...] += p[0:1, :]                          # CLS query row (padded cols are 0)

    o_h = jnp.dot(p.astype(jnp.bfloat16), v,
                  preferred_element_type=jnp.float32)     # (Np, Dh)
    osc_ref[h] = o_h.astype(jnp.bfloat16)                 # per-head slab, leading-dim store

    @pl.when(h == n_head - 1)
    def _():
        # Assemble (Np, C) with static lane offsets, then ONE full-depth matmul.
        o_all = jnp.concatenate([osc_ref[i] for i in range(n_head)], axis=-1)
        acc = jnp.dot(o_all, wout_ref[...], preferred_element_type=jnp.float32)
        o_ref[...] = (xres_ref[...] + acc + outb_ref[...]).astype(o_ref.dtype)
        cls_ref[...] = (cls_sc_ref[...] * (1.0 / n_head)).astype(cls_ref.dtype)


def _ln_mlp_kernel(x_ref, g_ref, b_ref, fcw_ref, fcb_ref, pw_ref, pb_ref,
                   o_ref, acc_ref, y_ref):
    # Fused LayerNorm + c_fc + QuickGELU + c_proj + residual.
    # Grid = (row tiles, hidden(4C) tiles); the 4C activation lives only in VMEM.
    # LN2(x) is computed once per row tile (kh == 0), cached in bf16 scratch.
    kh = pl.program_id(1)

    @pl.when(kh == 0)
    def _():
        acc_ref[...] = jnp.zeros_like(acc_ref)
        x = x_ref[...].astype(jnp.float32)
        mean = jnp.mean(x, axis=-1, keepdims=True)
        var = jnp.mean(jnp.square(x - mean), axis=-1, keepdims=True)
        y = (x - mean) * lax.rsqrt(var + 1e-5) * g_ref[...] + b_ref[...]
        y_ref[...] = y.astype(jnp.bfloat16)

    hdd = jnp.dot(y_ref[...], fcw_ref[...],
                  preferred_element_type=jnp.float32) + fcb_ref[...]
    hdd = hdd * jax.nn.sigmoid(1.702 * hdd)               # QuickGELU
    acc_ref[...] += jnp.dot(hdd.astype(jnp.bfloat16), pw_ref[...],
                            preferred_element_type=jnp.float32)

    @pl.when(kh == pl.num_programs(1) - 1)
    def _():
        o_ref[...] = (x_ref[...].astype(jnp.float32) + acc_ref[...]
                      + pb_ref[...]).astype(o_ref.dtype)


# ---------------------------- kernel wrappers ----------------------------

def pallas_ln_linear(x2d, gamma, beta, w_bf16, bias, out_dtype=jnp.bfloat16):
    # x2d: (M, K) f32, w_bf16: (K, Nout) bf16, bias: (Nout,) f32
    M, K = x2d.shape
    Nout = w_bf16.shape[1]
    out_bytes = jnp.dtype(out_dtype).itemsize
    tn = _pick_tile(Nout, _LANE_TILES)

    def fits(tm):
        return (2 * (tm * K * 4 + K * tn * 2 + tm * tn * out_bytes)
                + tm * K * 2 + 4 * (K + tn) * 4) <= _VMEM_BUDGET

    tm = _pick_tile(M, _ROW_TILES, fits)
    grid = (M // tm, Nout // tn)
    return pl.pallas_call(
        _ln_linear_kernel,
        grid=grid,
        in_specs=[pl.BlockSpec((tm, K), lambda i, j: (i, 0)),
                  pl.BlockSpec((1, K), lambda i, j: (0, 0)),
                  pl.BlockSpec((1, K), lambda i, j: (0, 0)),
                  pl.BlockSpec((K, tn), lambda i, j: (0, j)),
                  pl.BlockSpec((1, tn), lambda i, j: (0, j))],
        out_specs=pl.BlockSpec((tm, tn), lambda i, j: (i, j)),
        out_shape=jax.ShapeDtypeStruct((M, Nout), out_dtype),
        scratch_shapes=[pltpu.VMEM((tm, K), jnp.bfloat16)],
        compiler_params=pltpu.CompilerParams(
            dimension_semantics=("parallel", "arbitrary"),
            vmem_limit_bytes=_VMEM_LIMIT),
    )(x2d, gamma.reshape(1, K), beta.reshape(1, K), w_bf16, bias.reshape(1, Nout))


def pallas_attention(qkv_h, x_res, wout_bf16, out_bias, n_head, valid_n):
    # qkv_h: (B, 3, H, Np, Dh) bf16 (per-head layout, padded seq length Np)
    # x_res: (B, Np, C) f32, wout: (C, C) bf16
    # -> (x_res + out_proj(attn)) (B, Np, C) f32, head-averaged CLS row (B, 1, Np) f32
    B, _, H, Np, Dh = qkv_h.shape
    C = H * Dh
    scale = 1.0 / math.sqrt(Dh)
    kern = functools.partial(_attn_kernel, n_head=n_head, scale=scale, valid_n=valid_n)
    return pl.pallas_call(
        kern,
        grid=(B, n_head),
        in_specs=[
            pl.BlockSpec((None, None, None, Np, Dh), lambda b, h: (b, 0, h, 0, 0)),  # q
            pl.BlockSpec((None, None, None, Np, Dh), lambda b, h: (b, 1, h, 0, 0)),  # k
            pl.BlockSpec((None, None, None, Np, Dh), lambda b, h: (b, 2, h, 0, 0)),  # v
            pl.BlockSpec((None, Np, C), lambda b, h: (b, 0, 0)),                     # residual
            pl.BlockSpec((C, C), lambda b, h: (0, 0)),                               # wout
            pl.BlockSpec((1, C), lambda b, h: (0, 0)),                               # out bias
        ],
        out_specs=(pl.BlockSpec((None, Np, C), lambda b, h: (b, 0, 0)),
                   pl.BlockSpec((None, 1, Np), lambda b, h: (b, 0, 0))),
        out_shape=(jax.ShapeDtypeStruct((B, Np, C), jnp.float32),
                   jax.ShapeDtypeStruct((B, 1, Np), jnp.float32)),
        scratch_shapes=[pltpu.VMEM((n_head, Np, Dh), jnp.bfloat16),   # per-head context
                        pltpu.VMEM((1, Np), jnp.float32)],            # CLS attn accumulator
        compiler_params=pltpu.CompilerParams(
            dimension_semantics=("parallel", "arbitrary"),
            vmem_limit_bytes=_VMEM_LIMIT),
    )(qkv_h, qkv_h, qkv_h, x_res, wout_bf16, out_bias.reshape(1, C))


def pallas_ln_mlp(x2d, gamma, beta, fcw_bf16, fc_bias, pw_bf16, p_bias):
    # x2d: (M, C) f32;  fcw: (C, 4C) bf16;  pw: (4C, C) bf16
    # returns x2d + c_proj(QuickGELU(c_fc(LN2(x2d))))
    M, C = x2d.shape
    H4 = fcw_bf16.shape[1]
    tkh = _pick_tile(H4, _LANE_TILES)

    def fits(tm):
        return (2 * (tm * C * 4 + C * tkh * 2 + tkh * C * 2 + tm * C * 4)
                + tm * C * 4 + tm * C * 2 + 4 * (C + tkh) * 4) <= _VMEM_BUDGET

    tm = _pick_tile(M, _ROW_TILES, fits)
    grid = (M // tm, H4 // tkh)
    return pl.pallas_call(
        _ln_mlp_kernel,
        grid=grid,
        in_specs=[pl.BlockSpec((tm, C), lambda i, k: (i, 0)),
                  pl.BlockSpec((1, C), lambda i, k: (0, 0)),
                  pl.BlockSpec((1, C), lambda i, k: (0, 0)),
                  pl.BlockSpec((C, tkh), lambda i, k: (0, k)),
                  pl.BlockSpec((1, tkh), lambda i, k: (0, k)),
                  pl.BlockSpec((tkh, C), lambda i, k: (k, 0)),
                  pl.BlockSpec((1, C), lambda i, k: (0, 0))],
        out_specs=pl.BlockSpec((tm, C), lambda i, k: (i, 0)),
        out_shape=jax.ShapeDtypeStruct((M, C), jnp.float32),
        scratch_shapes=[pltpu.VMEM((tm, C), jnp.float32),    # c_proj accumulator
                        pltpu.VMEM((tm, C), jnp.bfloat16)],  # cached LN2(x)
        compiler_params=pltpu.CompilerParams(
            dimension_semantics=("parallel", "arbitrary"),
            vmem_limit_bytes=_VMEM_LIMIT),
    )(x2d, gamma.reshape(1, C), beta.reshape(1, C),
      fcw_bf16, fc_bias.reshape(1, H4), pw_bf16, p_bias.reshape(1, C))


# ---------------------------- model (plain-JAX glue) ----------------------------

def evit_block(x, p, drop_rate, n_head):
    # ResidualAttentionBlock_EViT.forward, batch-first: x is (B, N, C) f32.
    B, N, C = x.shape
    dh = C // n_head

    # LN1 + QKV projection (fused); qkv kept in bf16 to halve HBM traffic.
    qkv = pallas_ln_linear(x.reshape(B * N, C), p["ln1_g"], p["ln1_b"],
                           p["in_w_t"], p["in_b"], out_dtype=jnp.bfloat16)

    # Per-head layout + lane-dense sequence padding (wrapper-side layout plumbing):
    # (B*N, 3C) -> (B, N, 3, H, Dh) -> pad N -> (B, 3, H, Np, Dh)
    Np = _round_up(N, _SEQ_PAD)
    qkv = qkv.reshape(B, N, 3, n_head, dh)
    qkv = jnp.pad(qkv, ((0, 0), (0, Np - N), (0, 0), (0, 0), (0, 0)))
    qkv = jnp.transpose(qkv, (0, 2, 3, 1, 4))
    x_pad = jnp.pad(x, ((0, 0), (0, Np - N), (0, 0)))

    # Attention + single out-proj + residual (fused); head-averaged CLS row.
    x_new, cls_row = pallas_attention(qkv, x_pad, p["out_w_t"], p["out_b"],
                                      n_head, valid_n=N)
    x = x_new[:, :N, :]
    cls_row = cls_row[:, 0, :N]                                   # (B, N)

    if drop_rate > 0:
        left_tokens = math.ceil((1.0 - drop_rate) * (N - 1))
        assert left_tokens >= 1
        cls_attn = cls_row[:, 1:]                                 # (B, N-1)
        _, idx = lax.top_k(cls_attn, left_tokens)                 # (B, left)
        non_cls = x[:, 1:, :]                                     # (B, N-1, C)
        x_others = jnp.take_along_axis(
            non_cls, jnp.broadcast_to(idx[:, :, None], (B, left_tokens, C)), axis=1)
        # complement_idx: indices in [0, N-1) not selected, ascending
        n_compl = (N - 1) - left_tokens
        sel = jnp.zeros((B, N - 1), jnp.int32).at[
            jnp.arange(B)[:, None], idx].set(1)
        compl = jnp.argsort(sel, axis=1, stable=True)[:, :n_compl]
        non_topk = jnp.take_along_axis(
            non_cls, jnp.broadcast_to(compl[:, :, None], (B, n_compl, C)), axis=1)
        non_topk_attn = jnp.take_along_axis(cls_attn, compl, axis=1)
        extra_token = jnp.sum(non_topk * non_topk_attn[:, :, None],
                              axis=1, keepdims=True)              # (B, 1, C)
        x = jnp.concatenate([x[:, :1, :], x_others, extra_token], axis=1)
    # drop_rate == 0: plain residual block (no pruning)

    N2 = x.shape[1]
    out = pallas_ln_mlp(x.reshape(B * N2, C), p["ln2_g"], p["ln2_b"],
                        p["fc_w_t"], p["fc_b"], p["proj_w_t"], p["proj_b"])
    return out.reshape(B, N2, C)


def transformer_drop_forward(x, params_list, dpr, n_head):
    # Transformer_drop.forward (token_pruning_name='EViT', vis_mask=False,
    # cls_token_cache=None) -> (x, None, cls_token_list).  x is (N, B, C).
    # TODO(synk): ToME / 'Ours' variants, vis_mask=True and cls_token_cache paths
    # are not implemented (not exercised by the default EViT forward).
    x = jnp.transpose(x, (1, 0, 2))                      # -> (B, N, C), once
    cls_tokens = []
    for i, p in enumerate(params_list):
        x = evit_block(x, p, dpr[i], n_head)
        cls_tokens.append(x[0, 0, :])                    # batch 0, CLS token
    cls_token_list = jnp.stack(cls_tokens, axis=0)       # (layers, width)
    return jnp.transpose(x, (1, 0, 2)), None, cls_token_list


# ---------------------------- parameter init ----------------------------

def init_params(key, C, layers, scale=0.02):
    # Weights stored pre-transposed ((in, out) layout) and in bf16 for the MXU.
    params_list = []
    f32, bf16 = jnp.float32, jnp.bfloat16
    for i in range(layers):
        ks = jax.random.split(jax.random.fold_in(key, i), 8)
        params_list.append(dict(
            in_w_t=(jax.random.normal(ks[0], (C, 3 * C), f32) * scale).astype(bf16),
            in_b=jax.random.normal(ks[1], (3 * C,), f32) * scale,
            out_w_t=(jax.random.normal(ks[2], (C, C), f32) * scale).astype(bf16),
            out_b=jax.random.normal(ks[3], (C,), f32) * scale,
            ln1_g=jnp.ones((C,), f32),
            ln1_b=jnp.zeros((C,), f32),
            fc_w_t=(jax.random.normal(ks[4], (C, 4 * C), f32) * scale).astype(bf16),
            fc_b=jax.random.normal(ks[5], (4 * C,), f32) * scale,
            proj_w_t=(jax.random.normal(ks[6], (4 * C, C), f32) * scale).astype(bf16),
            proj_b=jax.random.normal(ks[7], (C,), f32) * scale,
            ln2_g=jnp.ones((C,), f32),
            ln2_b=jnp.zeros((C,), f32),
        ))
    return params_list


# ---------------------------- main ----------------------------

if __name__ == "__main__":
    WIDTH, HEADS, LAYERS = 64, 4, 2
    SEQ, BATCH = 17, 2                 # 1 cls token + 16 patch tokens
    DPR = [0.5, 0.5]                   # EViT drop rates per layer

    key = jax.random.PRNGKey(0)
    kx, kp = jax.random.split(key)
    x = jax.random.normal(kx, (SEQ, BATCH, WIDTH), dtype=jnp.float32)
    params = init_params(kp, WIDTH, LAYERS)

    fwd = jax.jit(functools.partial(transformer_drop_forward, dpr=DPR, n_head=HEADS))
    out, _, cls_list = fwd(x, params)
    jax.block_until_ready(out)
    jax.block_until_ready(cls_list)

    # layer 0: 17 -> 1 + ceil(0.5*16) + 1 = 10 ; layer 1: 10 -> 1 + ceil(0.5*9) + 1 = 7
    assert out.shape == (7, BATCH, WIDTH), out.shape
    assert cls_list.shape == (LAYERS, WIDTH), cls_list.shape
    print("KERNEL_OK")
</pallas_src>

<mosaic_0001>
module attributes {stable_mosaic.version = 11 : i64} {
  func.func @_ln_linear_kernel(%arg0: i32, %arg1: i32, %arg2: memref<34x64xf32, #tpu.memory_space<vmem>>, %arg3: memref<1x64xf32, #tpu.memory_space<vmem>>, %arg4: memref<1x64xf32, #tpu.memory_space<vmem>>, %arg5: memref<64x192xbf16, #tpu.memory_space<vmem>>, %arg6: memref<1x192xf32, #tpu.memory_space<vmem>>, %arg7: memref<34x192xbf16, #tpu.memory_space<vmem>>, %arg8: memref<34x64xbf16, #tpu.memory_space<vmem>>) attributes {dimension_semantics = [#tpu.dimension_semantics<parallel>, #tpu.dimension_semantics<arbitrary>], iteration_bounds = array<i64: 1, 1>, scalar_prefetch = 0 : i64, scratch_operands = 1 : i64, tpu.core_type = #tpu.core_type<tc>, window_params = [{transform_indices = @transform_0, window_bounds = array<i64: 34, 64>}, {pipeline_mode = #tpu.pipeline_mode<synchronous>, transform_indices = @transform_1, window_bounds = array<i64: 1, 64>}, {pipeline_mode = #tpu.pipeline_mode<synchronous>, transform_indices = @transform_2, window_bounds = array<i64: 1, 64>}, {transform_indices = @transform_3, window_bounds = array<i64: 64, 192>}, {transform_indices = @transform_4, window_bounds = array<i64: 1, 192>}, {transform_indices = @transform_5, window_bounds = array<i64: 34, 192>}]} {
    %c0_i32 = arith.constant 0 : i32
    %0 = arith.cmpi eq, %arg1, %c0_i32 : i32
    %1 = arith.extui %0 : i1 to i32
    %c0_i32_0 = arith.constant 0 : i32
    %2 = arith.cmpi ne, %1, %c0_i32_0 : i32
    scf.if %2 {
      %c0_8 = arith.constant 0 : index
      %c0_9 = arith.constant 0 : index
      %11 = vector.load %arg2[%c0_8, %c0_9] : memref<34x64xf32, #tpu.memory_space<vmem>>, vector<34x64xf32>
      %cst_10 = arith.constant dense<0.000000e+00> : vector<34xf32>
      %12 = vector.multi_reduction <add>, %11, %cst_10 [1] : vector<34x64xf32> to vector<34xf32>
      %13 = vector.shape_cast %12 : vector<34xf32> to vector<34x1xf32>
      %cst_11 = arith.constant 6.400000e+01 : f32
      %14 = vector.broadcast %cst_11 : f32 to vector<34x1xf32>
      %15 = arith.divf %13, %14 : vector<34x1xf32>
      %16 = vector.broadcast %15 : vector<34x1xf32> to vector<34x64xf32>
      %17 = arith.subf %11, %16 : vector<34x64xf32>
      %18 = arith.mulf %17, %17 : vector<34x64xf32>
      %cst_12 = arith.constant dense<0.000000e+00> : vector<34xf32>
      %19 = vector.multi_reduction <add>, %18, %cst_12 [1] : vector<34x64xf32> to vector<34xf32>
      %20 = vector.shape_cast %19 : vector<34xf32> to vector<34x1xf32>
      %cst_13 = arith.constant 6.400000e+01 : f32
      %21 = vector.broadcast %cst_13 : f32 to vector<34x1xf32>
      %22 = arith.divf %20, %21 : vector<34x1xf32>
      %23 = vector.broadcast %15 : vector<34x1xf32> to vector<34x64xf32>
      %24 = arith.subf %11, %23 : vector<34x64xf32>
      %cst_14 = arith.constant 9.99999974E-6 : f32
      %25 = vector.broadcast %cst_14 : f32 to vector<34x1xf32>
      %26 = arith.addf %22, %25 : vector<34x1xf32>
      %27 = math.rsqrt %26 : vector<34x1xf32>
      %28 = vector.broadcast %27 : vector<34x1xf32> to vector<34x64xf32>
      %29 = arith.mulf %24, %28 : vector<34x64xf32>
      %c0_15 = arith.constant 0 : index
      %c0_16 = arith.constant 0 : index
      %30 = vector.load %arg3[%c0_15, %c0_16] : memref<1x64xf32, #tpu.memory_space<vmem>>, vector<1x64xf32>
      %31 = vector.broadcast %30 : vector<1x64xf32> to vector<34x64xf32>
      %32 = arith.mulf %29, %31 : vector<34x64xf32>
      %c0_17 = arith.constant 0 : index
      %c0_18 = arith.constant 0 : index
      %33 = vector.load %arg4[%c0_17, %c0_18] : memref<1x64xf32, #tpu.memory_space<vmem>>, vector<1x64xf32>
      %34 = vector.broadcast %33 : vector<1x64xf32> to vector<34x64xf32>
      %35 = arith.addf %32, %34 : vector<34x64xf32>
      %36 = arith.truncf %35 : vector<34x64xf32> to vector<34x64xbf16>
      %c0_19 = arith.constant 0 : index
      %c0_20 = arith.constant 0 : index
      %37 = vector.load %arg8[%c0_19, %c0_20] : memref<34x64xbf16, #tpu.memory_space<vmem>>, vector<34x64xbf16>
      tpu.vector_store %arg8[%c0_19, %c0_20], %36 {strides = array<i32>} : memref<34x64xbf16, #tpu.memory_space<vmem>>, vector<34x64xbf16>,
    } else {
    }
    %c0 = arith.constant 0 : index
    %c0_1 = arith.constant 0 : index
    %3 = vector.load %arg8[%c0, %c0_1] : memref<34x64xbf16, #tpu.memory_space<vmem>>, vector<34x64xbf16>
    %c0_2 = arith.constant 0 : index
    %c0_3 = arith.constant 0 : index
    %4 = vector.load %arg5[%c0_2, %c0_3] : memref<64x192xbf16, #tpu.memory_space<vmem>>, vector<64x192xbf16>
    %cst = arith.constant dense<0.000000e+00> : vector<34x192xf32>
    %5 = tpu.matmul %3, %4, %cst {dimension_numbers = #tpu.dot_dimension_numbers<[1], [0], [0], [1], [0, 0, 1, 1], [], []>} : vector<34x64xbf16>, vector<64x192xbf16>, vector<34x192xf32> -> vector<34x192xf32>
    %c0_4 = arith.constant 0 : index
    %c0_5 = arith.constant 0 : index
    %6 = vector.load %arg6[%c0_4, %c0_5] : memref<1x192xf32, #tpu.memory_space<vmem>>, vector<1x192xf32>
    %7 = vector.broadcast %6 : vector<1x192xf32> to vector<34x192xf32>
    %8 = arith.addf %5, %7 : vector<34x192xf32>
    %9 = arith.truncf %8 : vector<34x192xf32> to vector<34x192xbf16>
    %c0_6 = arith.constant 0 : index
    %c0_7 = arith.constant 0 : index
    %10 = vector.load %arg7[%c0_6, %c0_7] : memref<34x192xbf16, #tpu.memory_space<vmem>>, vector<34x192xbf16>
    tpu.vector_store %arg7[%c0_6, %c0_7], %9 {strides = array<i32>} : memref<34x192xbf16, #tpu.memory_space<vmem>>, vector<34x192xbf16>,
    return
  }
  func.func @transform_0(%arg0: i32, %arg1: i32) -> (i32, i32) {
    %c0_i32 = arith.constant 0 : i32
    %c0_i32_0 = arith.constant 0 : i32
    return %arg0, %c0_i32 : i32, i32
  }
  func.func @transform_1(%arg0: i32, %arg1: i32) -> (i32, i32) {
    %c0_i32 = arith.constant 0 : i32
    %c0_i32_0 = arith.constant 0 : i32
    %c0_i32_1 = arith.constant 0 : i32
    return %c0_i32, %c0_i32_0 : i32, i32
  }
  func.func @transform_2(%arg0: i32, %arg1: i32) -> (i32, i32) {
    %c0_i32 = arith.constant 0 : i32
    %c0_i32_0 = arith.constant 0 : i32
    %c0_i32_1 = arith.constant 0 : i32
    return %c0_i32, %c0_i32_0 : i32, i32
  }
  func.func @transform_3(%arg0: i32, %arg1: i32) -> (i32, i32) {
    %c0_i32 = arith.constant 0 : i32
    %c0_i32_0 = arith.constant 0 : i32
    return %c0_i32, %arg1 : i32, i32
  }
  func.func @transform_4(%arg0: i32, %arg1: i32) -> (i32, i32) {
    %c0_i32 = arith.constant 0 : i32
    %c0_i32_0 = arith.constant 0 : i32
    return %c0_i32, %arg1 : i32, i32
  }
  func.func @transform_5(%arg0: i32, %arg1: i32) -> (i32, i32) {
    %c0_i32 = arith.constant 0 : i32
    return %arg0, %arg1 : i32, i32
  }
}

module attributes {stable_mosaic.version = 11 : i64} {
  func.func @_attn_kernel(%arg0: i32, %arg1: i32, %arg2: memref<1x1x1x128x16xbf16, #tpu.memory_space<vmem>>, %arg3: memref<1x1x1x128x16xbf16, #tpu.memory_space<vmem>>, %arg4: memref<1x1x1x128x16xbf16, #tpu.memory_space<vmem>>, %arg5: memref<1x128x64xf32, #tpu.memory_space<vmem>>, %arg6: memref<64x64xbf16, #tpu.memory_space<vmem>>, %arg7: memref<1x64xf32, #tpu.memory_space<vmem>>, %arg8: memref<1x128x64xf32, #tpu.memory_space<vmem>>, %arg9: memref<1x1x128xf32, #tpu.memory_space<vmem>>, %arg10: memref<4x128x16xbf16, #tpu.memory_space<vmem>>, %arg11: memref<1x128xf32, #tpu.memory_space<vmem>>) attributes {dimension_semantics = [#tpu.dimension_semantics<parallel>, #tpu.dimension_semantics<arbitrary>], iteration_bounds = array<i64: 2, 4>, scalar_prefetch = 0 : i64, scratch_operands = 2 : i64, tpu.core_type = #tpu.core_type<tc>, window_params = [{transform_indices = @transform_0, window_bounds = array<i64: 1, 1, 1, 128, 16>}, {transform_indices = @transform_1, window_bounds = array<i64: 1, 1, 1, 128, 16>}, {transform_indices = @transform_2, window_bounds = array<i64: 1, 1, 1, 128, 16>}, {transform_indices = @transform_3, window_bounds = array<i64: 1, 128, 64>}, {pipeline_mode = #tpu.pipeline_mode<synchronous>, transform_indices = @transform_4, window_bounds = array<i64: 64, 64>}, {pipeline_mode = #tpu.pipeline_mode<synchronous>, transform_indices = @transform_5, window_bounds = array<i64: 1, 64>}, {transform_indices = @transform_6, window_bounds = array<i64: 1, 128, 64>}, {transform_indices = @transform_7, window_bounds = array<i64: 1, 1, 128>}]} {
    %c0_i32 = arith.constant 0 : i32
    %0 = arith.cmpi eq, %arg1, %c0_i32 : i32
    %1 = arith.extui %0 : i1 to i32
    %c0_i32_0 = arith.constant 0 : i32
    %2 = arith.cmpi ne, %1, %c0_i32_0 : i32
    scf.if %2 {
      %cst_27 = arith.constant 0.000000e+00 : f32
      %41 = vector.broadcast %cst_27 : f32 to vector<1x128xf32>
      %c0_28 = arith.constant 0 : index
      %c0_29 = arith.constant 0 : index
      %42 = vector.load %arg11[%c0_28, %c0_29] : memref<1x128xf32, #tpu.memory_space<vmem>>, vector<1x128xf32>
      tpu.vector_store %arg11[%c0_28, %c0_29], %41 {strides = array<i32>} : memref<1x128xf32, #tpu.memory_space<vmem>>, vector<1x128xf32>,
    } else {
    }
    %c0 = arith.constant 0 : index
    %c0_1 = arith.constant 0 : index
    %c0_2 = arith.constant 0 : index
    %c0_3 = arith.constant 0 : index
    %c0_4 = arith.constant 0 : index
    %3 = vector.load %arg2[%c0, %c0_1, %c0_2, %c0_3, %c0_4] : memref<1x1x1x128x16xbf16, #tpu.memory_space<vmem>>, vector<1x1x1x128x16xbf16>
    %4 = vector.shape_cast %3 : vector<1x1x1x128x16xbf16> to vector<128x16xbf16>
    %cst = arith.constant 2.500000e-01 : bf16
    %5 = vector.broadcast %cst : bf16 to vector<128x16xbf16>
    %6 = arith.mulf %4, %5 : vector<128x16xbf16>
    %c0_5 = arith.constant 0 : index
    %c0_6 = arith.constant 0 : index
    %c0_7 = arith.constant 0 : index
    %c0_8 = arith.constant 0 : index
    %c0_9 = arith.constant 0 : index
    %7 = vector.load %arg3[%c0_5, %c0_6, %c0_7, %c0_8, %c0_9] : memref<1x1x1x128x16xbf16, #tpu.memory_space<vmem>>, vector<1x1x1x128x16xbf16>
    %8 = vector.shape_cast %7 : vector<1x1x1x128x16xbf16> to vector<128x16xbf16>
    %c0_10 = arith.constant 0 : index
    %c0_11 = arith.constant 0 : index
    %c0_12 = arith.constant 0 : index
    %c0_13 = arith.constant 0 : index
    %c0_14 = arith.constant 0 : index
    %9 = vector.load %arg4[%c0_10, %c0_11, %c0_12, %c0_13, %c0_14] : memref<1x1x1x128x16xbf16, #tpu.memory_space<vmem>>, vector<1x1x1x128x16xbf16>
    %10 = vector.shape_cast %9 : vector<1x1x1x128x16xbf16> to vector<128x16xbf16>
    %cst_15 = arith.constant dense<0.000000e+00> : vector<128x128xf32>
    %11 = tpu.matmul %6, %8, %cst_15 {dimension_numbers = #tpu.dot_dimension_numbers<[1], [1], [0], [0], [0, 0, 1, 0], [], []>} : vector<128x16xbf16>, vector<128x16xbf16>, vector<128x128xf32> -> vector<128x128xf32>
    %12 = tpu.iota {dimensions = array<i32: 1>} : vector<128x128xi32>
    %c17_i32 = arith.constant 17 : i32
    %13 = vector.broadcast %c17_i32 : i32 to vector<128x128xi32>
    %14 = arith.cmpi slt, %12, %13 : vector<128x128xi32>
    %cst_16 = arith.constant -1.000000e+30 : f32
    %15 = vector.broadcast %cst_16 : f32 to vector<128x128xf32>
    %16 = arith.select %14, %11, %15 : vector<128x128xi1>, vector<128x128xf32>
    %cst_17 = arith.constant dense<0xFF800000> : vector<128xf32>
    %17 = vector.multi_reduction <maximumf>, %16, %cst_17 [1] : vector<128x128xf32> to vector<128xf32>
    %18 = vector.shape_cast %17 : vector<128xf32> to vector<128x1xf32>
    %19 = vector.broadcast %18 : vector<128x1xf32> to vector<128x128xf32>
    %20 = arith.subf %16, %19 : vector<128x128xf32>
    %21 = math.exp %20 : vector<128x128xf32>
    %cst_18 = arith.constant dense<0.000000e+00> : vector<128xf32>
    %22 = vector.multi_reduction <add>, %21, %cst_18 [1] : vector<128x128xf32> to vector<128xf32>
    %23 = vector.shape_cast %22 : vector<128xf32> to vector<128x1xf32>
    %24 = tpu.reciprocal %23 {approx = true} : vector<128x1xf32> -> vector<128x1xf32>
    %25 = vector.broadcast %24 : vector<128x1xf32> to vector<128x128xf32>
    %26 = arith.mulf %21, %25 : vector<128x128xf32>
    %c0_19 = arith.constant 0 : index
    %c0_20 = arith.constant 0 : index
    %27 = vector.load %arg11[%c0_19, %c0_20] : memref<1x128xf32, #tpu.memory_space<vmem>>, vector<1x128xf32>
    %28 = vector.extract_strided_slice %26 {offsets = [0, 0], sizes = [1, 128], strides = [1, 1]} : vector<128x128xf32> to vector<1x128xf32>
    %29 = arith.addf %27, %28 : vector<1x128xf32>
    %c0_21 = arith.constant 0 : index
    %c0_22 = arith.constant 0 : index
    %30 = vector.load %arg11[%c0_21, %c0_22] : memref<1x128xf32, #tpu.memory_space<vmem>>, vector<1x128xf32>
    tpu.vector_store %arg11[%c0_21, %c0_22], %29 {strides = array<i32>} : memref<1x128xf32, #tpu.memory_space<vmem>>, vector<1x128xf32>,
    %31 = arith.truncf %26 : vector<128x128xf32> to vector<128x128xbf16>
    %cst_23 = arith.constant dense<0.000000e+00> : vector<128x16xf32>
    %32 = tpu.matmul %31, %10, %cst_23 {dimension_numbers = #tpu.dot_dimension_numbers<[1], [0], [0], [1], [0, 0, 1, 1], [], []>} : vector<128x128xbf16>, vector<128x16xbf16>, vector<128x16xf32> -> vector<128x16xf32>
    %33 = arith.truncf %32 : vector<128x16xf32> to vector<128x16xbf16>
    %34 = arith.index_cast %arg1 : i32 to index
    %c0_24 = arith.constant 0 : index
    %c0_25 = arith.constant 0 : index
    %35 = vector.load %arg10[%34, %c0_24, %c0_25] : memref<4x128x16xbf16, #tpu.memory_space<vmem>>, vector<1x128x16xbf16>
    %36 = vector.shape_cast %35 : vector<1x128x16xbf16> to vector<128x16xbf16>
    %37 = vector.shape_cast %33 : vector<128x16xbf16> to vector<1x128x16xbf16>
    tpu.vector_store %arg10[%34, %c0_24, %c0_25], %37 {strides = array<i32>} : memref<4x128x16xbf16, #tpu.memory_space<vmem>>, vector<1x128x16xbf16>,
    %c3_i32 = arith.constant 3 : i32
    %38 = arith.cmpi eq, %arg1, %c3_i32 : i32
    %39 = arith.extui %38 : i1 to i32
    %c0_i32_26 = arith.constant 0 : i32
    %40 = arith.cmpi ne, %39, %c0_i32_26 : i32
    scf.if %40 {
      %c0_27 = arith.constant 0 : index
      %c0_28 = arith.constant 0 : index
      %c0_29 = arith.constant 0 : index
      %41 = vector.load %arg10[%c0_27, %c0_28, %c0_29] : memref<4x128x16xbf16, #tpu.memory_space<vmem>>, vector<1x128x16xbf16>
      %42 = vector.shape_cast %41 : vector<1x128x16xbf16> to vector<128x16xbf16>
      %c1 = arith.constant 1 : index
      %c0_30 = arith.constant 0 : index
      %c0_31 = arith.constant 0 : index
      %43 = vector.load %arg10[%c1, %c0_30, %c0_31] : memref<4x128x16xbf16, #tpu.memory_space<vmem>>, vector<1x128x16xbf16>
      %44 = vector.shape_cast %43 : vector<1x128x16xbf16> to vector<128x16xbf16>
      %c2 = arith.constant 2 : index
      %c0_32 = arith.constant 0 : index
      %c0_33 = arith.constant 0 : index
      %45 = vector.load %arg10[%c2, %c0_32, %c0_33] : memref<4x128x16xbf16, #tpu.memory_space<vmem>>, vector<1x128x16xbf16>
      %46 = vector.shape_cast %45 : vector<1x128x16xbf16> to vector<128x16xbf16>
      %c3 = arith.constant 3 : index
      %c0_34 = arith.constant 0 : index
      %c0_35 = arith.constant 0 : index
      %47 = vector.load %arg10[%c3, %c0_34, %c0_35] : memref<4x128x16xbf16, #tpu.memory_space<vmem>>, vector<1x128x16xbf16>
      %48 = vector.shape_cast %47 : vector<1x128x16xbf16> to vector<128x16xbf16>
      %49 = tpu.concatenate %42, %44, %46, %48 in 1 : vector<128x16xbf16>, vector<128x16xbf16>, vector<128x16xbf16>, vector<128x16xbf16> -> vector<128x64xbf16>
      %c0_36 = arith.constant 0 : index
      %c0_37 = arith.constant 0 : index
      %50 = vector.load %arg6[%c0_36, %c0_37] : memref<64x64xbf16, #tpu.memory_space<vmem>>, vector<64x64xbf16>
      %cst_38 = arith.constant dense<0.000000e+00> : vector<128x64xf32>
      %51 = tpu.matmul %49, %50, %cst_38 {dimension_numbers = #tpu.dot_dimension_numbers<[1], [0], [0], [1], [0, 0, 1, 1], [], []>} : vector<128x64xbf16>, vector<64x64xbf16>, vector<128x64xf32> -> vector<128x64xf32>
      %c0_39 = arith.constant 0 : index
      %c0_40 = arith.constant 0 : index
      %c0_41 = arith.constant 0 : index
      %52 = vector.load %arg5[%c0_39, %c0_40, %c0_41] : memref<1x128x64xf32, #tpu.memory_space<vmem>>, vector<1x128x64xf32>
      %53 = vector.shape_cast %52 : vector<1x128x64xf32> to vector<128x64xf32>
      %54 = arith.addf %53, %51 : vector<128x64xf32>
      %c0_42 = arith.constant 0 : index
      %c0_43 = arith.constant 0 : index
      %55 = vector.load %arg7[%c0_42, %c0_43] : memref<1x64xf32, #tpu.memory_space<vmem>>, vector<1x64xf32>
      %56 = vector.broadcast %55 : vector<1x64xf32> to vector<128x64xf32>
      %57 = arith.addf %54, %56 : vector<128x64xf32>
      %c0_44 = arith.constant 0 : index
      %c0_45 = arith.constant 0 : index
      %c0_46 = arith.constant 0 : index
      %58 = vector.load %arg8[%c0_44, %c0_45, %c0_46] : memref<1x128x64xf32, #tpu.memory_space<vmem>>, vector<1x128x64xf32>
      %59 = vector.shape_cast %58 : vector<1x128x64xf32> to vector<128x64xf32>
      %60 = vector.shape_cast %57 : vector<128x64xf32> to vector<1x128x64xf32>
      tpu.vector_store %arg8[%c0_44, %c0_45, %c0_46], %60 {strides = array<i32>} : memref<1x128x64xf32, #tpu.memory_space<vmem>>, vector<1x128x64xf32>,
      %c0_47 = arith.constant 0 : index
      %c0_48 = arith.constant 0 : index
      %61 = vector.load %arg11[%c0_47, %c0_48] : memref<1x128xf32, #tpu.memory_space<vmem>>, vector<1x128xf32>
      %cst_49 = arith.constant 2.500000e-01 : f32
      %62 = vector.broadcast %cst_49 : f32 to vector<1x128xf32>
      %63 = arith.mulf %61, %62 : vector<1x128xf32>
      %c0_50 = arith.constant 0 : index
      %c0_51 = arith.constant 0 : index
      %c0_52 = arith.constant 0 : index
      %64 = vector.load %arg9[%c0_50, %c0_51, %c0_52] : memref<1x1x128xf32, #tpu.memory_space<vmem>>, vector<1x1x128xf32>
      %65 = vector.shape_cast %64 : vector<1x1x128xf32> to vector<1x128xf32>
      %66 = vector.shape_cast %63 : vector<1x128xf32> to vector<1x1x128xf32>
      tpu.vector_store %arg9[%c0_50, %c0_51, %c0_52], %66 {strides = array<i32>} : memref<1x1x128xf32, #tpu.memory_space<vmem>>, vector<1x1x128xf32>,
    } else {
    }
    return
  }
  func.func @transform_0(%arg0: i32, %arg1: i32) -> (i32, i32, i32, i32, i32) {
    %c0_i32 = arith.constant 0 : i32
    %c0_i32_0 = arith.constant 0 : i32
    %c0_i32_1 = arith.constant 0 : i32
    %c0_i32_2 = arith.constant 0 : i32
    return %arg0, %c0_i32, %arg1, %c0_i32_0, %c0_i32_1 : i32, i32, i32, i32, i32
  }
  func.func @transform_1(%arg0: i32, %arg1: i32) -> (i32, i32, i32, i32, i32) {
    %c1_i32 = arith.constant 1 : i32
    %c0_i32 = arith.constant 0 : i32
    %c0_i32_0 = arith.constant 0 : i32
    %c0_i32_1 = arith.constant 0 : i32
    return %arg0, %c1_i32, %arg1, %c0_i32, %c0_i32_0 : i32, i32, i32, i32, i32
  }
  func.func @transform_2(%arg0: i32, %arg1: i32) -> (i32, i32, i32, i32, i32) {
    %c2_i32 = arith.constant 2 : i32
    %c0_i32 = arith.constant 0 : i32
    %c0_i32_0 = arith.constant 0 : i32
    %c0_i32_1 = arith.constant 0 : i32
    return %arg0, %c2_i32, %arg1, %c0_i32, %c0_i32_0 : i32, i32, i32, i32, i32
  }
  func.func @transform_3(%arg0: i32, %arg1: i32) -> (i32, i32, i32) {
    %c0_i32 = arith.constant 0 : i32
    %c0_i32_0 = arith.constant 0 : i32
    %c0_i32_1 = arith.constant 0 : i32
    return %arg0, %c0_i32, %c0_i32_0 : i32, i32, i32
  }
  func.func @transform_4(%arg0: i32, %arg1: i32) -> (i32, i32) {
    %c0_i32 = arith.constant 0 : i32
    %c0_i32_0 = arith.constant 0 : i32
    %c0_i32_1 = arith.constant 0 : i32
    return %c0_i32, %c0_i32_0 : i32, i32
  }
  func.func @transform_5(%arg0: i32, %arg1: i32) -> (i32, i32) {
    %c0_i32 = arith.constant 0 : i32
    %c0_i32_0 = arith.constant 0 : i32
    %c0_i32_1 = arith.constant 0 : i32
    return %c0_i32, %c0_i32_0 : i32, i32
  }
  func.func @transform_6(%arg0: i32, %arg1: i32) -> (i32, i32, i32) {
    %c0_i32 = arith.constant 0 : i32
    %c0_i32_0 = arith.constant 0 : i32
    %c0_i32_1 = arith.constant 0 : i32
    return %arg0, %c0_i32, %c0_i32_0 : i32, i32, i32
  }
  func.func @transform_7(%arg0: i32, %arg1: i32) -> (i32, i32, i32) {
    %c0_i32 = arith.constant 0 : i32
    %c0_i32_0 = arith.constant 0 : i32
    %c0_i32_1 = arith.constant 0 : i32
    return %arg0, %c0_i32, %c0_i32_0 : i32, i32, i32
  }
}

module attributes {stable_mosaic.version = 11 : i64} {
  func.func @_ln_mlp_kernel(%arg0: i32, %arg1: i32, %arg2: memref<20x64xf32, #tpu.memory_space<vmem>>, %arg3: memref<1x64xf32, #tpu.memory_space<vmem>>, %arg4: memref<1x64xf32, #tpu.memory_space<vmem>>, %arg5: memref<64x256xbf16, #tpu.memory_space<vmem>>, %arg6: memref<1x256xf32, #tpu.memory_space<vmem>>, %arg7: memref<256x64xbf16, #tpu.memory_space<vmem>>, %arg8: memref<1x64xf32, #tpu.memory_space<vmem>>, %arg9: memref<20x64xf32, #tpu.memory_space<vmem>>, %arg10: memref<20x64xf32, #tpu.memory_space<vmem>>, %arg11: memref<20x64xbf16, #tpu.memory_space<vmem>>) attributes {dimension_semantics = [#tpu.dimension_semantics<parallel>, #tpu.dimension_semantics<arbitrary>], iteration_bounds = array<i64: 1, 1>, scalar_prefetch = 0 : i64, scratch_operands = 2 : i64, tpu.core_type = #tpu.core_type<tc>, window_params = [{transform_indices = @transform_0, window_bounds = array<i64: 20, 64>}, {pipeline_mode = #tpu.pipeline_mode<synchronous>, transform_indices = @transform_1, window_bounds = array<i64: 1, 64>}, {pipeline_mode = #tpu.pipeline_mode<synchronous>, transform_indices = @transform_2, window_bounds = array<i64: 1, 64>}, {transform_indices = @transform_3, window_bounds = array<i64: 64, 256>}, {transform_indices = @transform_4, window_bounds = array<i64: 1, 256>}, {transform_indices = @transform_5, window_bounds = array<i64: 256, 64>}, {pipeline_mode = #tpu.pipeline_mode<synchronous>, transform_indices = @transform_6, window_bounds = array<i64: 1, 64>}, {transform_indices = @transform_7, window_bounds = array<i64: 20, 64>}]} {
    %c0_i32 = arith.constant 0 : i32
    %0 = arith.cmpi eq, %arg1, %c0_i32 : i32
    %1 = arith.extui %0 : i1 to i32
    %c0_i32_0 = arith.constant 0 : i32
    %2 = arith.cmpi ne, %1, %c0_i32_0 : i32
    scf.if %2 {
      %cst_17 = arith.constant 0.000000e+00 : f32
      %26 = vector.broadcast %cst_17 : f32 to vector<20x64xf32>
      %c0_18 = arith.constant 0 : index
      %c0_19 = arith.constant 0 : index
      %27 = vector.load %arg10[%c0_18, %c0_19] : memref<20x64xf32, #tpu.memory_space<vmem>>, vector<20x64xf32>
      tpu.vector_store %arg10[%c0_18, %c0_19], %26 {strides = array<i32>} : memref<20x64xf32, #tpu.memory_space<vmem>>, vector<20x64xf32>,
      %c0_20 = arith.constant 0 : index
      %c0_21 = arith.constant 0 : index
      %28 = vector.load %arg2[%c0_20, %c0_21] : memref<20x64xf32, #tpu.memory_space<vmem>>, vector<20x64xf32>
      %cst_22 = arith.constant dense<0.000000e+00> : vector<20xf32>
      %29 = vector.multi_reduction <add>, %28, %cst_22 [1] : vector<20x64xf32> to vector<20xf32>
      %30 = vector.shape_cast %29 : vector<20xf32> to vector<20x1xf32>
      %cst_23 = arith.constant 6.400000e+01 : f32
      %31 = vector.broadcast %cst_23 : f32 to vector<20x1xf32>
      %32 = arith.divf %30, %31 : vector<20x1xf32>
      %33 = vector.broadcast %32 : vector<20x1xf32> to vector<20x64xf32>
      %34 = arith.subf %28, %33 : vector<20x64xf32>
      %35 = arith.mulf %34, %34 : vector<20x64xf32>
      %cst_24 = arith.constant dense<0.000000e+00> : vector<20xf32>
      %36 = vector.multi_reduction <add>, %35, %cst_24 [1] : vector<20x64xf32> to vector<20xf32>
      %37 = vector.shape_cast %36 : vector<20xf32> to vector<20x1xf32>
      %cst_25 = arith.constant 6.400000e+01 : f32
      %38 = vector.broadcast %cst_25 : f32 to vector<20x1xf32>
      %39 = arith.divf %37, %38 : vector<20x1xf32>
      %40 = vector.broadcast %32 : vector<20x1xf32> to vector<20x64xf32>
      %41 = arith.subf %28, %40 : vector<20x64xf32>
      %cst_26 = arith.constant 9.99999974E-6 : f32
      %42 = vector.broadcast %cst_26 : f32 to vector<20x1xf32>
      %43 = arith.addf %39, %42 : vector<20x1xf32>
      %44 = math.rsqrt %43 : vector<20x1xf32>
      %45 = vector.broadcast %44 : vector<20x1xf32> to vector<20x64xf32>
      %46 = arith.mulf %41, %45 : vector<20x64xf32>
      %c0_27 = arith.constant 0 : index
      %c0_28 = arith.constant 0 : index
      %47 = vector.load %arg3[%c0_27, %c0_28] : memref<1x64xf32, #tpu.memory_space<vmem>>, vector<1x64xf32>
      %48 = vector.broadcast %47 : vector<1x64xf32> to vector<20x64xf32>
      %49 = arith.mulf %46, %48 : vector<20x64xf32>
      %c0_29 = arith.constant 0 : index
      %c0_30 = arith.constant 0 : index
      %50 = vector.load %arg4[%c0_29, %c0_30] : memref<1x64xf32, #tpu.memory_space<vmem>>, vector<1x64xf32>
      %51 = vector.broadcast %50 : vector<1x64xf32> to vector<20x64xf32>
      %52 = arith.addf %49, %51 : vector<20x64xf32>
      %53 = arith.truncf %52 : vector<20x64xf32> to vector<20x64xbf16>
      %c0_31 = arith.constant 0 : index
      %c0_32 = arith.constant 0 : index
      %54 = vector.load %arg11[%c0_31, %c0_32] : memref<20x64xbf16, #tpu.memory_space<vmem>>, vector<20x64xbf16>
      tpu.vector_store %arg11[%c0_31, %c0_32], %53 {strides = array<i32>} : memref<20x64xbf16, #tpu.memory_space<vmem>>, vector<20x64xbf16>,
    } else {
    }
    %c0 = arith.constant 0 : index
    %c0_1 = arith.constant 0 : index
    %3 = vector.load %arg11[%c0, %c0_1] : memref<20x64xbf16, #tpu.memory_space<vmem>>, vector<20x64xbf16>
    %c0_2 = arith.constant 0 : index
    %c0_3 = arith.constant 0 : index
    %4 = vector.load %arg5[%c0_2, %c0_3] : memref<64x256xbf16, #tpu.memory_space<vmem>>, vector<64x256xbf16>
    %cst = arith.constant dense<0.000000e+00> : vector<20x256xf32>
    %5 = tpu.matmul %3, %4, %cst {dimension_numbers = #tpu.dot_dimension_numbers<[1], [0], [0], [1], [0, 0, 1, 1], [], []>} : vector<20x64xbf16>, vector<64x256xbf16>, vector<20x256xf32> -> vector<20x256xf32>
    %c0_4 = arith.constant 0 : index
    %c0_5 = arith.constant 0 : index
    %6 = vector.load %arg6[%c0_4, %c0_5] : memref<1x256xf32, #tpu.memory_space<vmem>>, vector<1x256xf32>
    %7 = vector.broadcast %6 : vector<1x256xf32> to vector<20x256xf32>
    %8 = arith.addf %5, %7 : vector<20x256xf32>
    %cst_6 = arith.constant 1.702000e+00 : f32
    %9 = vector.broadcast %cst_6 : f32 to vector<20x256xf32>
    %10 = arith.mulf %9, %8 : vector<20x256xf32>
    %11 = arith.negf %10 : vector<20x256xf32>
    %12 = math.exp %11 : vector<20x256xf32>
    %cst_7 = arith.constant 1.000000e+00 : f32
    %13 = vector.broadcast %cst_7 : f32 to vector<20x256xf32>
    %14 = arith.addf %13, %12 : vector<20x256xf32>
    %15 = arith.divf %13, %14 : vector<20x256xf32>
    %16 = arith.mulf %8, %15 : vector<20x256xf32>
    %c0_8 = arith.constant 0 : index
    %c0_9 = arith.constant 0 : index
    %17 = vector.load %arg10[%c0_8, %c0_9] : memref<20x64xf32, #tpu.memory_space<vmem>>, vector<20x64xf32>
    %18 = arith.truncf %16 : vector<20x256xf32> to vector<20x256xbf16>
    %c0_10 = arith.constant 0 : index
    %c0_11 = arith.constant 0 : index
    %19 = vector.load %arg7[%c0_10, %c0_11] : memref<256x64xbf16, #tpu.memory_space<vmem>>, vector<256x64xbf16>
    %cst_12 = arith.constant dense<0.000000e+00> : vector<20x64xf32>
    %20 = tpu.matmul %18, %19, %cst_12 {dimension_numbers = #tpu.dot_dimension_numbers<[1], [0], [0], [1], [0, 0, 1, 1], [], []>} : vector<20x256xbf16>, vector<256x64xbf16>, vector<20x64xf32> -> vector<20x64xf32>
    %21 = arith.addf %17, %20 : vector<20x64xf32>
    %c0_13 = arith.constant 0 : index
    %c0_14 = arith.constant 0 : index
    %22 = vector.load %arg10[%c0_13, %c0_14] : memref<20x64xf32, #tpu.memory_space<vmem>>, vector<20x64xf32>
    tpu.vector_store %arg10[%c0_13, %c0_14], %21 {strides = array<i32>} : memref<20x64xf32, #tpu.memory_space<vmem>>, vector<20x64xf32>,
    %c0_i32_15 = arith.constant 0 : i32
    %23 = arith.cmpi eq, %arg1, %c0_i32_15 : i32
    %24 = arith.extui %23 : i1 to i32
    %c0_i32_16 = arith.constant 0 : i32
    %25 = arith.cmpi ne, %24, %c0_i32_16 : i32
    scf.if %25 {
      %c0_17 = arith.constant 0 : index
      %c0_18 = arith.constant 0 : index
      %26 = vector.load %arg2[%c0_17, %c0_18] : memref<20x64xf32, #tpu.memory_space<vmem>>, vector<20x64xf32>
      %c0_19 = arith.constant 0 : index
      %c0_20 = arith.constant 0 : index
      %27 = vector.load %arg10[%c0_19, %c0_20] : memref<20x64xf32, #tpu.memory_space<vmem>>, vector<20x64xf32>
      %28 = arith.addf %26, %27 : vector<20x64xf32>
      %c0_21 = arith.constant 0 : index
      %c0_22 = arith.constant 0 : index
      %29 = vector.load %arg8[%c0_21, %c0_22] : memref<1x64xf32, #tpu.memory_space<vmem>>, vector<1x64xf32>
      %30 = vector.broadcast %29 : vector<1x64xf32> to vector<20x64xf32>
      %31 = arith.addf %28, %30 : vector<20x64xf32>
      %c0_23 = arith.constant 0 : index
      %c0_24 = arith.constant 0 : index
      %32 = vector.load %arg9[%c0_23, %c0_24] : memref<20x64xf32, #tpu.memory_space<vmem>>, vector<20x64xf32>
      tpu.vector_store %arg9[%c0_23, %c0_24], %31 {strides = array<i32>} : memref<20x64xf32, #tpu.memory_space<vmem>>, vector<20x64xf32>,
    } else {
    }
    return
  }
  func.func @transform_0(%arg0: i32, %arg1: i32) -> (i32, i32) {
    %c0_i32 = arith.constant 0 : i32
    %c0_i32_0 = arith.constant 0 : i32
    return %arg0, %c0_i32 : i32, i32
  }
  func.func @transform_1(%arg0: i32, %arg1: i32) -> (i32, i32) {
    %c0_i32 = arith.constant 0 : i32
    %c0_i32_0 = arith.constant 0 : i32
    %c0_i32_1 = arith.constant 0 : i32
    return %c0_i32, %c0_i32_0 : i32, i32
  }
  func.func @transform_2(%arg0: i32, %arg1: i32) -> (i32, i32) {
    %c0_i32 = arith.constant 0 : i32
    %c0_i32_0 = arith.constant 0 : i32
    %c0_i32_1 = arith.constant 0 : i32
    return %c0_i32, %c0_i32_0 : i32, i32
  }
  func.func @transform_3(%arg0: i32, %arg1: i32) -> (i32, i32) {
    %c0_i32 = arith.constant 0 : i32
    %c0_i32_0 = arith.constant 0 : i32
    return %c0_i32, %arg1 : i32, i32
  }
  func.func @transform_4(%arg0: i32, %arg1: i32) -> (i32, i32) {
    %c0_i32 = arith.constant 0 : i32
    %c0_i32_0 = arith.constant 0 : i32
    return %c0_i32, %arg1 : i32, i32
  }
  func.func @transform_5(%arg0: i32, %arg1: i32) -> (i32, i32) {
    %c0_i32 = arith.constant 0 : i32
    %c0_i32_0 = arith.constant 0 : i32
    return %arg1, %c0_i32 : i32, i32
  }
  func.func @transform_6(%arg0: i32, %arg1: i32) -> (i32, i32) {
    %c0_i32 = arith.constant 0 : i32
    %c0_i32_0 = arith.constant 0 : i32
    %c0_i32_1 = arith.constant 0 : i32
    return %c0_i32, %c0_i32_0 : i32, i32
  }
  func.func @transform_7(%arg0: i32, %arg1: i32) -> (i32, i32) {
    %c0_i32 = arith.constant 0 : i32
    %c0_i32_0 = arith.constant 0 : i32
    return %arg0, %c0_i32 : i32, i32
  }
}

module attributes {stable_mosaic.version = 11 : i64} {
  func.func @_ln_linear_kernel(%arg0: i32, %arg1: i32, %arg2: memref<20x64xf32, #tpu.memory_space<vmem>>, %arg3: memref<1x64xf32, #tpu.memory_space<vmem>>, %arg4: memref<1x64xf32, #tpu.memory_space<vmem>>, %arg5: memref<64x192xbf16, #tpu.memory_space<vmem>>, %arg6: memref<1x192xf32, #tpu.memory_space<vmem>>, %arg7: memref<20x192xbf16, #tpu.memory_space<vmem>>, %arg8: memref<20x64xbf16, #tpu.memory_space<vmem>>) attributes {dimension_semantics = [#tpu.dimension_semantics<parallel>, #tpu.dimension_semantics<arbitrary>], iteration_bounds = array<i64: 1, 1>, scalar_prefetch = 0 : i64, scratch_operands = 1 : i64, tpu.core_type = #tpu.core_type<tc>, window_params = [{transform_indices = @transform_0, window_bounds = array<i64: 20, 64>}, {pipeline_mode = #tpu.pipeline_mode<synchronous>, transform_indices = @transform_1, window_bounds = array<i64: 1, 64>}, {pipeline_mode = #tpu.pipeline_mode<synchronous>, transform_indices = @transform_2, window_bounds = array<i64: 1, 64>}, {transform_indices = @transform_3, window_bounds = array<i64: 64, 192>}, {transform_indices = @transform_4, window_bounds = array<i64: 1, 192>}, {transform_indices = @transform_5, window_bounds = array<i64: 20, 192>}]} {
    %c0_i32 = arith.constant 0 : i32
    %0 = arith.cmpi eq, %arg1, %c0_i32 : i32
    %1 = arith.extui %0 : i1 to i32
    %c0_i32_0 = arith.constant 0 : i32
    %2 = arith.cmpi ne, %1, %c0_i32_0 : i32
    scf.if %2 {
      %c0_8 = arith.constant 0 : index
      %c0_9 = arith.constant 0 : index
      %11 = vector.load %arg2[%c0_8, %c0_9] : memref<20x64xf32, #tpu.memory_space<vmem>>, vector<20x64xf32>
      %cst_10 = arith.constant dense<0.000000e+00> : vector<20xf32>
      %12 = vector.multi_reduction <add>, %11, %cst_10 [1] : vector<20x64xf32> to vector<20xf32>
      %13 = vector.shape_cast %12 : vector<20xf32> to vector<20x1xf32>
      %cst_11 = arith.constant 6.400000e+01 : f32
      %14 = vector.broadcast %cst_11 : f32 to vector<20x1xf32>
      %15 = arith.divf %13, %14 : vector<20x1xf32>
      %16 = vector.broadcast %15 : vector<20x1xf32> to vector<20x64xf32>
      %17 = arith.subf %11, %16 : vector<20x64xf32>
      %18 = arith.mulf %17, %17 : vector<20x64xf32>
      %cst_12 = arith.constant dense<0.000000e+00> : vector<20xf32>
      %19 = vector.multi_reduction <add>, %18, %cst_12 [1] : vector<20x64xf32> to vector<20xf32>
      %20 = vector.shape_cast %19 : vector<20xf32> to vector<20x1xf32>
      %cst_13 = arith.constant 6.400000e+01 : f32
      %21 = vector.broadcast %cst_13 : f32 to vector<20x1xf32>
      %22 = arith.divf %20, %21 : vector<20x1xf32>
      %23 = vector.broadcast %15 : vector<20x1xf32> to vector<20x64xf32>
      %24 = arith.subf %11, %23 : vector<20x64xf32>
      %cst_14 = arith.constant 9.99999974E-6 : f32
      %25 = vector.broadcast %cst_14 : f32 to vector<20x1xf32>
      %26 = arith.addf %22, %25 : vector<20x1xf32>
      %27 = math.rsqrt %26 : vector<20x1xf32>
      %28 = vector.broadcast %27 : vector<20x1xf32> to vector<20x64xf32>
      %29 = arith.mulf %24, %28 : vector<20x64xf32>
      %c0_15 = arith.constant 0 : index
      %c0_16 = arith.constant 0 : index
      %30 = vector.load %arg3[%c0_15, %c0_16] : memref<1x64xf32, #tpu.memory_space<vmem>>, vector<1x64xf32>
      %31 = vector.broadcast %30 : vector<1x64xf32> to vector<20x64xf32>
      %32 = arith.mulf %29, %31 : vector<20x64xf32>
      %c0_17 = arith.constant 0 : index
      %c0_18 = arith.constant 0 : index
      %33 = vector.load %arg4[%c0_17, %c0_18] : memref<1x64xf32, #tpu.memory_space<vmem>>, vector<1x64xf32>
      %34 = vector.broadcast %33 : vector<1x64xf32> to vector<20x64xf32>
      %35 = arith.addf %32, %34 : vector<20x64xf32>
      %36 = arith.truncf %35 : vector<20x64xf32> to vector<20x64xbf16>
      %c0_19 = arith.constant 0 : index
      %c0_20 = arith.constant 0 : index
      %37 = vector.load %arg8[%c0_19, %c0_20] : memref<20x64xbf16, #tpu.memory_space<vmem>>, vector<20x64xbf16>
      tpu.vector_store %arg8[%c0_19, %c0_20], %36 {strides = array<i32>} : memref<20x64xbf16, #tpu.memory_space<vmem>>, vector<20x64xbf16>,
    } else {
    }
    %c0 = arith.constant 0 : index
    %c0_1 = arith.constant 0 : index
    %3 = vector.load %arg8[%c0, %c0_1] : memref<20x64xbf16, #tpu.memory_space<vmem>>, vector<20x64xbf16>
    %c0_2 = arith.constant 0 : index
    %c0_3 = arith.constant 0 : index
    %4 = vector.load %arg5[%c0_2, %c0_3] : memref<64x192xbf16, #tpu.memory_space<vmem>>, vector<64x192xbf16>
    %cst = arith.constant dense<0.000000e+00> : vector<20x192xf32>
    %5 = tpu.matmul %3, %4, %cst {dimension_numbers = #tpu.dot_dimension_numbers<[1], [0], [0], [1], [0, 0, 1, 1], [], []>} : vector<20x64xbf16>, vector<64x192xbf16>, vector<20x192xf32> -> vector<20x192xf32>
    %c0_4 = arith.constant 0 : index
    %c0_5 = arith.constant 0 : index
    %6 = vector.load %arg6[%c0_4, %c0_5] : memref<1x192xf32, #tpu.memory_space<vmem>>, vector<1x192xf32>
    %7 = vector.broadcast %6 : vector<1x192xf32> to vector<20x192xf32>
    %8 = arith.addf %5, %7 : vector<20x192xf32>
    %9 = arith.truncf %8 : vector<20x192xf32> to vector<20x192xbf16>
    %c0_6 = arith.constant 0 : index
    %c0_7 = arith.constant 0 : index
    %10 = vector.load %arg7[%c0_6, %c0_7] : memref<20x192xbf16, #tpu.memory_space<vmem>>, vector<20x192xbf16>
    tpu.vector_store %arg7[%c0_6, %c0_7], %9 {strides = array<i32>} : memref<20x192xbf16, #tpu.memory_space<vmem>>, vector<20x192xbf16>,
    return
  }
  func.func @transform_0(%arg0: i32, %arg1: i32) -> (i32, i32) {
    %c0_i32 = arith.constant 0 : i32
    %c0_i32_0 = arith.constant 0 : i32
    return %arg0, %c0_i32 : i32, i32
  }
  func.func @transform_1(%arg0: i32, %arg1: i32) -> (i32, i32) {
    %c0_i32 = arith.constant 0 : i32
    %c0_i32_0 = arith.constant 0 : i32
    %c0_i32_1 = arith.constant 0 : i32
    return %c0_i32, %c0_i32_0 : i32, i32
  }
  func.func @transform_2(%arg0: i32, %arg1: i32) -> (i32, i32) {
    %c0_i32 = arith.constant 0 : i32
    %c0_i32_0 = arith.constant 0 : i32
    %c0_i32_1 = arith.constant 0 : i32
    return %c0_i32, %c0_i32_0 : i32, i32
  }
  func.func @transform_3(%arg0: i32, %arg1: i32) -> (i32, i32) {
    %c0_i32 = arith.constant 0 : i32
    %c0_i32_0 = arith.constant 0 : i32
    return %c0_i32, %arg1 : i32, i32
  }
  func.func @transform_4(%arg0: i32, %arg1: i32) -> (i32, i32) {
    %c0_i32 = arith.constant 0 : i32
    %c0_i32_0 = arith.constant 0 : i32
    return %c0_i32, %arg1 : i32, i32
  }
  func.func @transform_5(%arg0: i32, %arg1: i32) -> (i32, i32) {
    %c0_i32 = arith.constant 0 : i32
    return %arg0, %arg1 : i32, i32
  }
}

module attributes {stable_mosaic.version = 11 : i64} {
  func.func @_attn_kernel(%arg0: i32, %arg1: i32, %arg2: memref<1x1x1x128x16xbf16, #tpu.memory_space<vmem>>, %arg3: memref<1x1x1x128x16xbf16, #tpu.memory_space<vmem>>, %arg4: memref<1x1x1x128x16xbf16, #tpu.memory_space<vmem>>, %arg5: memref<1x128x64xf32, #tpu.memory_space<vmem>>, %arg6: memref<64x64xbf16, #tpu.memory_space<vmem>>, %arg7: memref<1x64xf32, #tpu.memory_space<vmem>>, %arg8: memref<1x128x64xf32, #tpu.memory_space<vmem>>, %arg9: memref<1x1x128xf32, #tpu.memory_space<vmem>>, %arg10: memref<4x128x16xbf16, #tpu.memory_space<vmem>>, %arg11: memref<1x128xf32, #tpu.memory_space<vmem>>) attributes {dimension_semantics = [#tpu.dimension_semantics<parallel>, #tpu.dimension_semantics<arbitrary>], iteration_bounds = array<i64: 2, 4>, scalar_prefetch = 0 : i64, scratch_operands = 2 : i64, tpu.core_type = #tpu.core_type<tc>, window_params = [{transform_indices = @transform_0, window_bounds = array<i64: 1, 1, 1, 128, 16>}, {transform_indices = @transform_1, window_bounds = array<i64: 1, 1, 1, 128, 16>}, {transform_indices = @transform_2, window_bounds = array<i64: 1, 1, 1, 128, 16>}, {transform_indices = @transform_3, window_bounds = array<i64: 1, 128, 64>}, {pipeline_mode = #tpu.pipeline_mode<synchronous>, transform_indices = @transform_4, window_bounds = array<i64: 64, 64>}, {pipeline_mode = #tpu.pipeline_mode<synchronous>, transform_indices = @transform_5, window_bounds = array<i64: 1, 64>}, {transform_indices = @transform_6, window_bounds = array<i64: 1, 128, 64>}, {transform_indices = @transform_7, window_bounds = array<i64: 1, 1, 128>}]} {
    %c0_i32 = arith.constant 0 : i32
    %0 = arith.cmpi eq, %arg1, %c0_i32 : i32
    %1 = arith.extui %0 : i1 to i32
    %c0_i32_0 = arith.constant 0 : i32
    %2 = arith.cmpi ne, %1, %c0_i32_0 : i32
    scf.if %2 {
      %cst_27 = arith.constant 0.000000e+00 : f32
      %41 = vector.broadcast %cst_27 : f32 to vector<1x128xf32>
      %c0_28 = arith.constant 0 : index
      %c0_29 = arith.constant 0 : index
      %42 = vector.load %arg11[%c0_28, %c0_29] : memref<1x128xf32, #tpu.memory_space<vmem>>, vector<1x128xf32>
      tpu.vector_store %arg11[%c0_28, %c0_29], %41 {strides = array<i32>} : memref<1x128xf32, #tpu.memory_space<vmem>>, vector<1x128xf32>,
    } else {
    }
    %c0 = arith.constant 0 : index
    %c0_1 = arith.constant 0 : index
    %c0_2 = arith.constant 0 : index
    %c0_3 = arith.constant 0 : index
    %c0_4 = arith.constant 0 : index
    %3 = vector.load %arg2[%c0, %c0_1, %c0_2, %c0_3, %c0_4] : memref<1x1x1x128x16xbf16, #tpu.memory_space<vmem>>, vector<1x1x1x128x16xbf16>
    %4 = vector.shape_cast %3 : vector<1x1x1x128x16xbf16> to vector<128x16xbf16>
    %cst = arith.constant 2.500000e-01 : bf16
    %5 = vector.broadcast %cst : bf16 to vector<128x16xbf16>
    %6 = arith.mulf %4, %5 : vector<128x16xbf16>
    %c0_5 = arith.constant 0 : index
    %c0_6 = arith.constant 0 : index
    %c0_7 = arith.constant 0 : index
    %c0_8 = arith.constant 0 : index
    %c0_9 = arith.constant 0 : index
    %7 = vector.load %arg3[%c0_5, %c0_6, %c0_7, %c0_8, %c0_9] : memref<1x1x1x128x16xbf16, #tpu.memory_space<vmem>>, vector<1x1x1x128x16xbf16>
    %8 = vector.shape_cast %7 : vector<1x1x1x128x16xbf16> to vector<128x16xbf16>
    %c0_10 = arith.constant 0 : index
    %c0_11 = arith.constant 0 : index
    %c0_12 = arith.constant 0 : index
    %c0_13 = arith.constant 0 : index
    %c0_14 = arith.constant 0 : index
    %9 = vector.load %arg4[%c0_10, %c0_11, %c0_12, %c0_13, %c0_14] : memref<1x1x1x128x16xbf16, #tpu.memory_space<vmem>>, vector<1x1x1x128x16xbf16>
    %10 = vector.shape_cast %9 : vector<1x1x1x128x16xbf16> to vector<128x16xbf16>
    %cst_15 = arith.constant dense<0.000000e+00> : vector<128x128xf32>
    %11 = tpu.matmul %6, %8, %cst_15 {dimension_numbers = #tpu.dot_dimension_numbers<[1], [1], [0], [0], [0, 0, 1, 0], [], []>} : vector<128x16xbf16>, vector<128x16xbf16>, vector<128x128xf32> -> vector<128x128xf32>
    %12 = tpu.iota {dimensions = array<i32: 1>} : vector<128x128xi32>
    %c10_i32 = arith.constant 10 : i32
    %13 = vector.broadcast %c10_i32 : i32 to vector<128x128xi32>
    %14 = arith.cmpi slt, %12, %13 : vector<128x128xi32>
    %cst_16 = arith.constant -1.000000e+30 : f32
    %15 = vector.broadcast %cst_16 : f32 to vector<128x128xf32>
    %16 = arith.select %14, %11, %15 : vector<128x128xi1>, vector<128x128xf32>
    %cst_17 = arith.constant dense<0xFF800000> : vector<128xf32>
    %17 = vector.multi_reduction <maximumf>, %16, %cst_17 [1] : vector<128x128xf32> to vector<128xf32>
    %18 = vector.shape_cast %17 : vector<128xf32> to vector<128x1xf32>
    %19 = vector.broadcast %18 : vector<128x1xf32> to vector<128x128xf32>
    %20 = arith.subf %16, %19 : vector<128x128xf32>
    %21 = math.exp %20 : vector<128x128xf32>
    %cst_18 = arith.constant dense<0.000000e+00> : vector<128xf32>
    %22 = vector.multi_reduction <add>, %21, %cst_18 [1] : vector<128x128xf32> to vector<128xf32>
    %23 = vector.shape_cast %22 : vector<128xf32> to vector<128x1xf32>
    %24 = tpu.reciprocal %23 {approx = true} : vector<128x1xf32> -> vector<128x1xf32>
    %25 = vector.broadcast %24 : vector<128x1xf32> to vector<128x128xf32>
    %26 = arith.mulf %21, %25 : vector<128x128xf32>
    %c0_19 = arith.constant 0 : index
    %c0_20 = arith.constant 0 : index
    %27 = vector.load %arg11[%c0_19, %c0_20] : memref<1x128xf32, #tpu.memory_space<vmem>>, vector<1x128xf32>
    %28 = vector.extract_strided_slice %26 {offsets = [0, 0], sizes = [1, 128], strides = [1, 1]} : vector<128x128xf32> to vector<1x128xf32>
    %29 = arith.addf %27, %28 : vector<1x128xf32>
    %c0_21 = arith.constant 0 : index
    %c0_22 = arith.constant 0 : index
    %30 = vector.load %arg11[%c0_21, %c0_22] : memref<1x128xf32, #tpu.memory_space<vmem>>, vector<1x128xf32>
    tpu.vector_store %arg11[%c0_21, %c0_22], %29 {strides = array<i32>} : memref<1x128xf32, #tpu.memory_space<vmem>>, vector<1x128xf32>,
    %31 = arith.truncf %26 : vector<128x128xf32> to vector<128x128xbf16>
    %cst_23 = arith.constant dense<0.000000e+00> : vector<128x16xf32>
    %32 = tpu.matmul %31, %10, %cst_23 {dimension_numbers = #tpu.dot_dimension_numbers<[1], [0], [0], [1], [0, 0, 1, 1], [], []>} : vector<128x128xbf16>, vector<128x16xbf16>, vector<128x16xf32> -> vector<128x16xf32>
    %33 = arith.truncf %32 : vector<128x16xf32> to vector<128x16xbf16>
    %34 = arith.index_cast %arg1 : i32 to index
    %c0_24 = arith.constant 0 : index
    %c0_25 = arith.constant 0 : index
    %35 = vector.load %arg10[%34, %c0_24, %c0_25] : memref<4x128x16xbf16, #tpu.memory_space<vmem>>, vector<1x128x16xbf16>
    %36 = vector.shape_cast %35 : vector<1x128x16xbf16> to vector<128x16xbf16>
    %37 = vector.shape_cast %33 : vector<128x16xbf16> to vector<1x128x16xbf16>
    tpu.vector_store %arg10[%34, %c0_24, %c0_25], %37 {strides = array<i32>} : memref<4x128x16xbf16, #tpu.memory_space<vmem>>, vector<1x128x16xbf16>,
    %c3_i32 = arith.constant 3 : i32
    %38 = arith.cmpi eq, %arg1, %c3_i32 : i32
    %39 = arith.extui %38 : i1 to i32
    %c0_i32_26 = arith.constant 0 : i32
    %40 = arith.cmpi ne, %39, %c0_i32_26 : i32
    scf.if %40 {
      %c0_27 = arith.constant 0 : index
      %c0_28 = arith.constant 0 : index
      %c0_29 = arith.constant 0 : index
      %41 = vector.load %arg10[%c0_27, %c0_28, %c0_29] : memref<4x128x16xbf16, #tpu.memory_space<vmem>>, vector<1x128x16xbf16>
      %42 = vector.shape_cast %41 : vector<1x128x16xbf16> to vector<128x16xbf16>
      %c1 = arith.constant 1 : index
      %c0_30 = arith.constant 0 : index
      %c0_31 = arith.constant 0 : index
      %43 = vector.load %arg10[%c1, %c0_30, %c0_31] : memref<4x128x16xbf16, #tpu.memory_space<vmem>>, vector<1x128x16xbf16>
      %44 = vector.shape_cast %43 : vector<1x128x16xbf16> to vector<128x16xbf16>
      %c2 = arith.constant 2 : index
      %c0_32 = arith.constant 0 : index
      %c0_33 = arith.constant 0 : index
      %45 = vector.load %arg10[%c2, %c0_32, %c0_33] : memref<4x128x16xbf16, #tpu.memory_space<vmem>>, vector<1x128x16xbf16>
      %46 = vector.shape_cast %45 : vector<1x128x16xbf16> to vector<128x16xbf16>
      %c3 = arith.constant 3 : index
      %c0_34 = arith.constant 0 : index
      %c0_35 = arith.constant 0 : index
      %47 = vector.load %arg10[%c3, %c0_34, %c0_35] : memref<4x128x16xbf16, #tpu.memory_space<vmem>>, vector<1x128x16xbf16>
      %48 = vector.shape_cast %47 : vector<1x128x16xbf16> to vector<128x16xbf16>
      %49 = tpu.concatenate %42, %44, %46, %48 in 1 : vector<128x16xbf16>, vector<128x16xbf16>, vector<128x16xbf16>, vector<128x16xbf16> -> vector<128x64xbf16>
      %c0_36 = arith.constant 0 : index
      %c0_37 = arith.constant 0 : index
      %50 = vector.load %arg6[%c0_36, %c0_37] : memref<64x64xbf16, #tpu.memory_space<vmem>>, vector<64x64xbf16>
      %cst_38 = arith.constant dense<0.000000e+00> : vector<128x64xf32>
      %51 = tpu.matmul %49, %50, %cst_38 {dimension_numbers = #tpu.dot_dimension_numbers<[1], [0], [0], [1], [0, 0, 1, 1], [], []>} : vector<128x64xbf16>, vector<64x64xbf16>, vector<128x64xf32> -> vector<128x64xf32>
      %c0_39 = arith.constant 0 : index
      %c0_40 = arith.constant 0 : index
      %c0_41 = arith.constant 0 : index
      %52 = vector.load %arg5[%c0_39, %c0_40, %c0_41] : memref<1x128x64xf32, #tpu.memory_space<vmem>>, vector<1x128x64xf32>
      %53 = vector.shape_cast %52 : vector<1x128x64xf32> to vector<128x64xf32>
      %54 = arith.addf %53, %51 : vector<128x64xf32>
      %c0_42 = arith.constant 0 : index
      %c0_43 = arith.constant 0 : index
      %55 = vector.load %arg7[%c0_42, %c0_43] : memref<1x64xf32, #tpu.memory_space<vmem>>, vector<1x64xf32>
      %56 = vector.broadcast %55 : vector<1x64xf32> to vector<128x64xf32>
      %57 = arith.addf %54, %56 : vector<128x64xf32>
      %c0_44 = arith.constant 0 : index
      %c0_45 = arith.constant 0 : index
      %c0_46 = arith.constant 0 : index
      %58 = vector.load %arg8[%c0_44, %c0_45, %c0_46] : memref<1x128x64xf32, #tpu.memory_space<vmem>>, vector<1x128x64xf32>
      %59 = vector.shape_cast %58 : vector<1x128x64xf32> to vector<128x64xf32>
      %60 = vector.shape_cast %57 : vector<128x64xf32> to vector<1x128x64xf32>
      tpu.vector_store %arg8[%c0_44, %c0_45, %c0_46], %60 {strides = array<i32>} : memref<1x128x64xf32, #tpu.memory_space<vmem>>, vector<1x128x64xf32>,
      %c0_47 = arith.constant 0 : index
      %c0_48 = arith.constant 0 : index
      %61 = vector.load %arg11[%c0_47, %c0_48] : memref<1x128xf32, #tpu.memory_space<vmem>>, vector<1x128xf32>
      %cst_49 = arith.constant 2.500000e-01 : f32
      %62 = vector.broadcast %cst_49 : f32 to vector<1x128xf32>
      %63 = arith.mulf %61, %62 : vector<1x128xf32>
      %c0_50 = arith.constant 0 : index
      %c0_51 = arith.constant 0 : index
      %c0_52 = arith.constant 0 : index
      %64 = vector.load %arg9[%c0_50, %c0_51, %c0_52] : memref<1x1x128xf32, #tpu.memory_space<vmem>>, vector<1x1x128xf32>
      %65 = vector.shape_cast %64 : vector<1x1x128xf32> to vector<1x128xf32>
      %66 = vector.shape_cast %63 : vector<1x128xf32> to vector<1x1x128xf32>
      tpu.vector_store %arg9[%c0_50, %c0_51, %c0_52], %66 {strides = array<i32>} : memref<1x1x128xf32, #tpu.memory_space<vmem>>, vector<1x1x128xf32>,
    } else {
    }
    return
  }
  func.func @transform_0(%arg0: i32, %arg1: i32) -> (i32, i32, i32, i32, i32) {
    %c0_i32 = arith.constant 0 : i32
    %c0_i32_0 = arith.constant 0 : i32
    %c0_i32_1 = arith.constant 0 : i32
    %c0_i32_2 = arith.constant 0 : i32
    return %arg0, %c0_i32, %arg1, %c0_i32_0, %c0_i32_1 : i32, i32, i32, i32, i32
  }
  func.func @transform_1(%arg0: i32, %arg1: i32) -> (i32, i32, i32, i32, i32) {
    %c1_i32 = arith.constant 1 : i32
    %c0_i32 = arith.constant 0 : i32
    %c0_i32_0 = arith.constant 0 : i32
    %c0_i32_1 = arith.constant 0 : i32
    return %arg0, %c1_i32, %arg1, %c0_i32, %c0_i32_0 : i32, i32, i32, i32, i32
  }
  func.func @transform_2(%arg0: i32, %arg1: i32) -> (i32, i32, i32, i32, i32) {
    %c2_i32 = arith.constant 2 : i32
    %c0_i32 = arith.constant 0 : i32
    %c0_i32_0 = arith.constant 0 : i32
    %c0_i32_1 = arith.constant 0 : i32
    return %arg0, %c2_i32, %arg1, %c0_i32, %c0_i32_0 : i32, i32, i32, i32, i32
  }
  func.func @transform_3(%arg0: i32, %arg1: i32) -> (i32, i32, i32) {
    %c0_i32 = arith.constant 0 : i32
    %c0_i32_0 = arith.constant 0 : i32
    %c0_i32_1 = arith.constant 0 : i32
    return %arg0, %c0_i32, %c0_i32_0 : i32, i32, i32
  }
  func.func @transform_4(%arg0: i32, %arg1: i32) -> (i32, i32) {
    %c0_i32 = arith.constant 0 : i32
    %c0_i32_0 = arith.constant 0 : i32
    %c0_i32_1 = arith.constant 0 : i32
    return %c0_i32, %c0_i32_0 : i32, i32
  }
  func.func @transform_5(%arg0: i32, %arg1: i32) -> (i32, i32) {
    %c0_i32 = arith.constant 0 : i32
    %c0_i32_0 = arith.constant 0 : i32
    %c0_i32_1 = arith.constant 0 : i32
    return %c0_i32, %c0_i32_0 : i32, i32
  }
  func.func @transform_6(%arg0: i32, %arg1: i32) -> (i32, i32, i32) {
    %c0_i32 = arith.constant 0 : i32
    %c0_i32_0 = arith.constant 0 : i32
    %c0_i32_1 = arith.constant 0 : i32
    return %arg0, %c0_i32, %c0_i32_0 : i32, i32, i32
  }
  func.func @transform_7(%arg0: i32, %arg1: i32) -> (i32, i32, i32) {
    %c0_i32 = arith.constant 0 : i32
    %c0_i32_0 = arith.constant 0 : i32
    %c0_i32_1 = arith.constant 0 : i32
    return %arg0, %c0_i32, %c0_i32_0 : i32, i32, i32
  }
}

module attributes {stable_mosaic.version = 11 : i64} {
  func.func @_ln_mlp_kernel(%arg0: i32, %arg1: i32, %arg2: memref<14x64xf32, #tpu.memory_space<vmem>>, %arg3: memref<1x64xf32, #tpu.memory_space<vmem>>, %arg4: memref<1x64xf32, #tpu.memory_space<vmem>>, %arg5: memref<64x256xbf16, #tpu.memory_space<vmem>>, %arg6: memref<1x256xf32, #tpu.memory_space<vmem>>, %arg7: memref<256x64xbf16, #tpu.memory_space<vmem>>, %arg8: memref<1x64xf32, #tpu.memory_space<vmem>>, %arg9: memref<14x64xf32, #tpu.memory_space<vmem>>, %arg10: memref<14x64xf32, #tpu.memory_space<vmem>>, %arg11: memref<14x64xbf16, #tpu.memory_space<vmem>>) attributes {dimension_semantics = [#tpu.dimension_semantics<parallel>, #tpu.dimension_semantics<arbitrary>], iteration_bounds = array<i64: 1, 1>, scalar_prefetch = 0 : i64, scratch_operands = 2 : i64, tpu.core_type = #tpu.core_type<tc>, window_params = [{transform_indices = @transform_0, window_bounds = array<i64: 14, 64>}, {pipeline_mode = #tpu.pipeline_mode<synchronous>, transform_indices = @transform_1, window_bounds = array<i64: 1, 64>}, {pipeline_mode = #tpu.pipeline_mode<synchronous>, transform_indices = @transform_2, window_bounds = array<i64: 1, 64>}, {transform_indices = @transform_3, window_bounds = array<i64: 64, 256>}, {transform_indices = @transform_4, window_bounds = array<i64: 1, 256>}, {transform_indices = @transform_5, window_bounds = array<i64: 256, 64>}, {pipeline_mode = #tpu.pipeline_mode<synchronous>, transform_indices = @transform_6, window_bounds = array<i64: 1, 64>}, {transform_indices = @transform_7, window_bounds = array<i64: 14, 64>}]} {
    %c0_i32 = arith.constant 0 : i32
    %0 = arith.cmpi eq, %arg1, %c0_i32 : i32
    %1 = arith.extui %0 : i1 to i32
    %c0_i32_0 = arith.constant 0 : i32
    %2 = arith.cmpi ne, %1, %c0_i32_0 : i32
    scf.if %2 {
      %cst_17 = arith.constant 0.000000e+00 : f32
      %26 = vector.broadcast %cst_17 : f32 to vector<14x64xf32>
      %c0_18 = arith.constant 0 : index
      %c0_19 = arith.constant 0 : index
      %27 = vector.load %arg10[%c0_18, %c0_19] : memref<14x64xf32, #tpu.memory_space<vmem>>, vector<14x64xf32>
      tpu.vector_store %arg10[%c0_18, %c0_19], %26 {strides = array<i32>} : memref<14x64xf32, #tpu.memory_space<vmem>>, vector<14x64xf32>,
      %c0_20 = arith.constant 0 : index
      %c0_21 = arith.constant 0 : index
      %28 = vector.load %arg2[%c0_20, %c0_21] : memref<14x64xf32, #tpu.memory_space<vmem>>, vector<14x64xf32>
      %cst_22 = arith.constant dense<0.000000e+00> : vector<14xf32>
      %29 = vector.multi_reduction <add>, %28, %cst_22 [1] : vector<14x64xf32> to vector<14xf32>
      %30 = vector.shape_cast %29 : vector<14xf32> to vector<14x1xf32>
      %cst_23 = arith.constant 6.400000e+01 : f32
      %31 = vector.broadcast %cst_23 : f32 to vector<14x1xf32>
      %32 = arith.divf %30, %31 : vector<14x1xf32>
      %33 = vector.broadcast %32 : vector<14x1xf32> to vector<14x64xf32>
      %34 = arith.subf %28, %33 : vector<14x64xf32>
      %35 = arith.mulf %34, %34 : vector<14x64xf32>
      %cst_24 = arith.constant dense<0.000000e+00> : vector<14xf32>
      %36 = vector.multi_reduction <add>, %35, %cst_24 [1] : vector<14x64xf32> to vector<14xf32>
      %37 = vector.shape_cast %36 : vector<14xf32> to vector<14x1xf32>
      %cst_25 = arith.constant 6.400000e+01 : f32
      %38 = vector.broadcast %cst_25 : f32 to vector<14x1xf32>
      %39 = arith.divf %37, %38 : vector<14x1xf32>
      %40 = vector.broadcast %32 : vector<14x1xf32> to vector<14x64xf32>
      %41 = arith.subf %28, %40 : vector<14x64xf32>
      %cst_26 = arith.constant 9.99999974E-6 : f32
      %42 = vector.broadcast %cst_26 : f32 to vector<14x1xf32>
      %43 = arith.addf %39, %42 : vector<14x1xf32>
      %44 = math.rsqrt %43 : vector<14x1xf32>
      %45 = vector.broadcast %44 : vector<14x1xf32> to vector<14x64xf32>
      %46 = arith.mulf %41, %45 : vector<14x64xf32>
      %c0_27 = arith.constant 0 : index
      %c0_28 = arith.constant 0 : index
      %47 = vector.load %arg3[%c0_27, %c0_28] : memref<1x64xf32, #tpu.memory_space<vmem>>, vector<1x64xf32>
      %48 = vector.broadcast %47 : vector<1x64xf32> to vector<14x64xf32>
      %49 = arith.mulf %46, %48 : vector<14x64xf32>
      %c0_29 = arith.constant 0 : index
      %c0_30 = arith.constant 0 : index
      %50 = vector.load %arg4[%c0_29, %c0_30] : memref<1x64xf32, #tpu.memory_space<vmem>>, vector<1x64xf32>
      %51 = vector.broadcast %50 : vector<1x64xf32> to vector<14x64xf32>
      %52 = arith.addf %49, %51 : vector<14x64xf32>
      %53 = arith.truncf %52 : vector<14x64xf32> to vector<14x64xbf16>
      %c0_31 = arith.constant 0 : index
      %c0_32 = arith.constant 0 : index
      %54 = vector.load %arg11[%c0_31, %c0_32] : memref<14x64xbf16, #tpu.memory_space<vmem>>, vector<14x64xbf16>
      tpu.vector_store %arg11[%c0_31, %c0_32], %53 {strides = array<i32>} : memref<14x64xbf16, #tpu.memory_space<vmem>>, vector<14x64xbf16>,
    } else {
    }
    %c0 = arith.constant 0 : index
    %c0_1 = arith.constant 0 : index
    %3 = vector.load %arg11[%c0, %c0_1] : memref<14x64xbf16, #tpu.memory_space<vmem>>, vector<14x64xbf16>
    %c0_2 = arith.constant 0 : index
    %c0_3 = arith.constant 0 : index
    %4 = vector.load %arg5[%c0_2, %c0_3] : memref<64x256xbf16, #tpu.memory_space<vmem>>, vector<64x256xbf16>
    %cst = arith.constant dense<0.000000e+00> : vector<14x256xf32>
    %5 = tpu.matmul %3, %4, %cst {dimension_numbers = #tpu.dot_dimension_numbers<[1], [0], [0], [1], [0, 0, 1, 1], [], []>} : vector<14x64xbf16>, vector<64x256xbf16>, vector<14x256xf32> -> vector<14x256xf32>
    %c0_4 = arith.constant 0 : index
    %c0_5 = arith.constant 0 : index
    %6 = vector.load %arg6[%c0_4, %c0_5] : memref<1x256xf32, #tpu.memory_space<vmem>>, vector<1x256xf32>
    %7 = vector.broadcast %6 : vector<1x256xf32> to vector<14x256xf32>
    %8 = arith.addf %5, %7 : vector<14x256xf32>
    %cst_6 = arith.constant 1.702000e+00 : f32
    %9 = vector.broadcast %cst_6 : f32 to vector<14x256xf32>
    %10 = arith.mulf %9, %8 : vector<14x256xf32>
    %11 = arith.negf %10 : vector<14x256xf32>
    %12 = math.exp %11 : vector<14x256xf32>
    %cst_7 = arith.constant 1.000000e+00 : f32
    %13 = vector.broadcast %cst_7 : f32 to vector<14x256xf32>
    %14 = arith.addf %13, %12 : vector<14x256xf32>
    %15 = arith.divf %13, %14 : vector<14x256xf32>
    %16 = arith.mulf %8, %15 : vector<14x256xf32>
    %c0_8 = arith.constant 0 : index
    %c0_9 = arith.constant 0 : index
    %17 = vector.load %arg10[%c0_8, %c0_9] : memref<14x64xf32, #tpu.memory_space<vmem>>, vector<14x64xf32>
    %18 = arith.truncf %16 : vector<14x256xf32> to vector<14x256xbf16>
    %c0_10 = arith.constant 0 : index
    %c0_11 = arith.constant 0 : index
    %19 = vector.load %arg7[%c0_10, %c0_11] : memref<256x64xbf16, #tpu.memory_space<vmem>>, vector<256x64xbf16>
    %cst_12 = arith.constant dense<0.000000e+00> : vector<14x64xf32>
    %20 = tpu.matmul %18, %19, %cst_12 {dimension_numbers = #tpu.dot_dimension_numbers<[1], [0], [0], [1], [0, 0, 1, 1], [], []>} : vector<14x256xbf16>, vector<256x64xbf16>, vector<14x64xf32> -> vector<14x64xf32>
    %21 = arith.addf %17, %20 : vector<14x64xf32>
    %c0_13 = arith.constant 0 : index
    %c0_14 = arith.constant 0 : index
    %22 = vector.load %arg10[%c0_13, %c0_14] : memref<14x64xf32, #tpu.memory_space<vmem>>, vector<14x64xf32>
    tpu.vector_store %arg10[%c0_13, %c0_14], %21 {strides = array<i32>} : memref<14x64xf32, #tpu.memory_space<vmem>>, vector<14x64xf32>,
    %c0_i32_15 = arith.constant 0 : i32
    %23 = arith.cmpi eq, %arg1, %c0_i32_15 : i32
    %24 = arith.extui %23 : i1 to i32
    %c0_i32_16 = arith.constant 0 : i32
    %25 = arith.cmpi ne, %24, %c0_i32_16 : i32
    scf.if %25 {
      %c0_17 = arith.constant 0 : index
      %c0_18 = arith.constant 0 : index
      %26 = vector.load %arg2[%c0_17, %c0_18] : memref<14x64xf32, #tpu.memory_space<vmem>>, vector<14x64xf32>
      %c0_19 = arith.constant 0 : index
      %c0_20 = arith.constant 0 : index
      %27 = vector.load %arg10[%c0_19, %c0_20] : memref<14x64xf32, #tpu.memory_space<vmem>>, vector<14x64xf32>
      %28 = arith.addf %26, %27 : vector<14x64xf32>
      %c0_21 = arith.constant 0 : index
      %c0_22 = arith.constant 0 : index
      %29 = vector.load %arg8[%c0_21, %c0_22] : memref<1x64xf32, #tpu.memory_space<vmem>>, vector<1x64xf32>
      %30 = vector.broadcast %29 : vector<1x64xf32> to vector<14x64xf32>
      %31 = arith.addf %28, %30 : vector<14x64xf32>
      %c0_23 = arith.constant 0 : index
      %c0_24 = arith.constant 0 : index
      %32 = vector.load %arg9[%c0_23, %c0_24] : memref<14x64xf32, #tpu.memory_space<vmem>>, vector<14x64xf32>
      tpu.vector_store %arg9[%c0_23, %c0_24], %31 {strides = array<i32>} : memref<14x64xf32, #tpu.memory_space<vmem>>, vector<14x64xf32>,
    } else {
    }
    return
  }
  func.func @transform_0(%arg0: i32, %arg1: i32) -> (i32, i32) {
    %c0_i32 = arith.constant 0 : i32
    %c0_i32_0 = arith.constant 0 : i32
    return %arg0, %c0_i32 : i32, i32
  }
  func.func @transform_1(%arg0: i32, %arg1: i32) -> (i32, i32) {
    %c0_i32 = arith.constant 0 : i32
    %c0_i32_0 = arith.constant 0 : i32
    %c0_i32_1 = arith.constant 0 : i32
    return %c0_i32, %c0_i32_0 : i32, i32
  }
  func.func @transform_2(%arg0: i32, %arg1: i32) -> (i32, i32) {
    %c0_i32 = arith.constant 0 : i32
    %c0_i32_0 = arith.constant 0 : i32
    %c0_i32_1 = arith.constant 0 : i32
    return %c0_i32, %c0_i32_0 : i32, i32
  }
  func.func @transform_3(%arg0: i32, %arg1: i32) -> (i32, i32) {
    %c0_i32 = arith.constant 0 : i32
    %c0_i32_0 = arith.constant 0 : i32
    return %c0_i32, %arg1 : i32, i32
  }
  func.func @transform_4(%arg0: i32, %arg1: i32) -> (i32, i32) {
    %c0_i32 = arith.constant 0 : i32
    %c0_i32_0 = arith.constant 0 : i32
    return %c0_i32, %arg1 : i32, i32
  }
  func.func @transform_5(%arg0: i32, %arg1: i32) -> (i32, i32) {
    %c0_i32 = arith.constant 0 : i32
    %c0_i32_0 = arith.constant 0 : i32
    return %arg1, %c0_i32 : i32, i32
  }
  func.func @transform_6(%arg0: i32, %arg1: i32) -> (i32, i32) {
    %c0_i32 = arith.constant 0 : i32
    %c0_i32_0 = arith.constant 0 : i32
    %c0_i32_1 = arith.constant 0 : i32
    return %c0_i32, %c0_i32_0 : i32, i32
  }
  func.func @transform_7(%arg0: i32, %arg1: i32) -> (i32, i32) {
    %c0_i32 = arith.constant 0 : i32
    %c0_i32_0 = arith.constant 0 : i32
    return %arg0, %c0_i32 : i32, i32
  }
}

</mosaic_0001>

<bundles_post_ra>
// kernel: transformer_drop_forward.6
= control target key start
LH: loop header
LB: loop body
LE: loop exit
PB: predicated region body
PF: predicated region fallthrough
CT: control target
= control target key end

     0   :  { %vm43_vm0 = vcmask 517120   ;;  %vm30_vm1 = vcmask 523264   ;;  %v406_v10 = vmov 64.0   ;;  %vm172_vm12 = vcmask 519168   ;;  %s613_s0 = inlined_call_operand.vmem [shape: f32[34,64], index: 0, kind: input, shape index: {}]   ;;  %s614_s1 = inlined_call_operand.vmem [shape: f32[1,64], index: 1, kind: input, shape index: {}]   ;;  %s615_s2 = inlined_call_operand.vmem [shape: f32[1,64], index: 2, kind: input, shape index: {}]   ;;  %s616_s3 = inlined_call_operand.vmem [shape: bf16[64,192], index: 3, kind: input, shape index: {}]   ;;  %s617_s4 = inlined_call_operand.vmem [shape: f32[1,192], index: 4, kind: input, shape index: {}]   ;;  %s618_s5 = inlined_call_operand.vmem [shape: bf16[34,192], index: 5, kind: output, shape index: {}]  }
   0x1   :  { %v29_v0 = vld [vmem:[%s613_s0 + $0x20] sm:$0x3]  ;;  %v27_v1 = vld [vmem:[%s613_s0 + $0x10] sm:$0xff]  ;;  %v26_v4 = vld [vmem:[%s613_s0 + $0x8] sm:$0xff]  ;;  %394 = vrcp.f32 %v406_v10  ;;  %vm177_vm15 = vcmask 516096  }
   0x2   :  { %v44_v2 = vsel %vm43_vm0, %v29_v0, 0.0  ;;  %v37_v3 = vsel %vm30_vm1, %v27_v1, 0.0  ;;  %v34_v5 = vsel %vm30_vm1, %v26_v4, 0.0  ;;  %v28_v6 = vld [vmem:[%s613_s0 + $0x18] sm:$0xff]  ;;  %v25_v7 = vld [vmem:[%s613_s0] sm:$0xff] }
   0x3   :  { %45 = vadd.xlane.f32.xlu1 %v44_v2  ;;  %38 = vadd.xlane.f32.xlu0 %v37_v3  ;;  %v40_v8 = vsel %vm30_vm1, %v28_v6, 0.0  ;;  %v31_v9 = vsel %vm30_vm1, %v25_v7, 0.0  ;;  %v361_v42 = vld [vmem:[%s616_s3 + $0x30] sm:$0xf]  ;;  %v382_v43 = vld [vmem:[%s616_s3 + $0x34] sm:$0xf0] }
   0x4   :  { %35 = vadd.xlane.f32.xlu2 %v34_v5  ;;  %v381_v44 = vld [vmem:[%s616_s3 + $0x34] sm:$0xf]  ;;  %v362_v47 = vor.u32 %v382_v43, %v361_v42  ;;  %v363_v48 = vld [vmem:[%s616_s3 + $0x38] sm:$0xf0]  ;;  %v353_v54 = vld [vmem:[%s616_s3 + $0x20] sm:$0xf] }
   0x5   :  { %v366_v51 = vor.u32 %v381_v44, %v363_v48  ;;  %v380_v55 = vld [vmem:[%s616_s3 + $0x24] sm:$0xf0]  ;;  %v379_v56 = vld [vmem:[%s616_s3 + $0x24] sm:$0xf]  ;;  %v355_v57 = vld [vmem:[%s616_s3 + $0x28] sm:$0xf0] }
   0x6   :  { %383 = vmatpush.bf16.msra.mxu2 %v362_v47  ;;  %265 = vmatpush.bf16.msra.mxu0 %v362_v47  ;;  %v354_v58 = vor.u32 %v380_v55, %v353_v54  ;;  %v358_v59 = vor.u32 %v379_v56, %v355_v57  ;;  %v345_v60 = vld [vmem:[%s616_s3 + $0x10] sm:$0xf]  ;;  %v378_v61 = vld [vmem:[%s616_s3 + $0x14] sm:$0xf0]  ;;  %v377_v62 = vld [vmem:[%s616_s3 + $0x14] sm:$0xf] }
   0x7   :  { %v395_v11 = vpop.eup %394  ;;  %387 = vmatpush.bf16.msra.mxu3 %v366_v51  ;;  %288 = vmatpush.bf16.msra.mxu1 %v366_v51  ;;  %v347_v2 = vld [vmem:[%s616_s3 + $0x18] sm:$0xf0] }
   0x8   :  { %v48_v12 = vmul.f32 64.0, %v395_v11  ;;  %vm52_vm2 = vweird.f32 %v395_v11  ;;  %v350_v5 = vor.u32 %v377_v62, %v347_v2 }
   0xa   :  { %v49_v13 = vsub.f32 1.0, %v48_v12  ;;  %384 = vmatpush.bf16.msra.mxu2 %v354_v58  ;;  %266 = vmatpush.bf16.msra.mxu0 %v354_v58  ;;  %v376_v12 = vld [vmem:[%s616_s3 + $0x4] sm:$0xf0] }
   0xb   :  { %41 = vadd.xlane.f32.xlu0 %v40_v8  ;;  %32 = vadd.xlane.f32.xlu1 %v31_v9  ;;  %v337_v9 = vld [vmem:[%s616_s3] sm:$0xf] }
   0xc   :  { %v50_v14 = vmul.f32 %v395_v11, %v49_v13  ;;  %388 = vmatpush.bf16.msra.mxu3 %v358_v59  ;;  %289 = vmatpush.bf16.msra.mxu1 %v358_v59  ;;  %v375_v13 = vld [vmem:[%s616_s3 + $0x4] sm:$0xf] }
   0xe   :  { %v51_v15 = vadd.f32 %v395_v11, %v50_v14  ;;  %v339_v14 = vld [vmem:[%s616_s3 + $0x8] sm:$0xf0] }
  0x10   :  { %v457_v16 = vsel %vm52_vm2, %v395_v11, %v51_v15  ;;  %389 = vmatpush.bf16.msra.mxu3 %v350_v5  ;;  %290 = vmatpush.bf16.msra.mxu1 %v350_v5 }
  0x76   :  { %v46_v17 = vpop.xlane.xlu1 %45  ;;  %v39_v18 = vpop.xlane.xlu0 %38 }
  0x77   :  { %v58_v19 = vmul.f32 %v457_v16, %v46_v17  ;;  %v56_v20 = vmul.f32 %v457_v16, %v39_v18  ;;  %v36_v25 = vpop.xlane.xlu2 %35  ;;  %v338_v18 = vor.u32 %v376_v12, %v337_v9 }
  0x78   :  { %v55_v32 = vmul.f32 %v457_v16, %v36_v25 }
  0x79   :  { %v461_v21 = vsub.f32 %v29_v0, %v58_v19  ;;  %v463_v22 = vsub.f32 %v27_v1, %v56_v20  ;;  %v346_v1 = vor.u32 %v378_v61, %v345_v60  ;;  %v342_v20 = vor.u32 %v375_v13, %v339_v14 }
  0x7a   :  { %v480_v36 = vsub.f32 %v26_v4, %v55_v32 }
  0x7b   :  { %v66_v23 = vmul.f32 %v463_v22, %v463_v22  ;;  %v68_v24 = vmul.f32 %v461_v21, %v461_v21  ;;  %385 = vmatpush.bf16.msra.mxu2 %v346_v1  ;;  %267 = vmatpush.bf16.msra.mxu0 %v346_v1 }
  0x7c   :  { %v65_v40 = vmul.f32 %v480_v36, %v480_v36  ;;  %390 = vmatpush.bf16.msra.mxu3 %v342_v20  ;;  %291 = vmatpush.bf16.msra.mxu1 %v342_v20 }
  0x7d   :  { %v75_v26 = vsel %vm30_vm1, %v66_v23, 0.0  ;;  %v81_v27 = vsel %vm43_vm0, %v68_v24, 0.0 }
  0x7e   :  { %v42_v28 = vpop.xlane.xlu0 %41  ;;  %76 = vadd.xlane.f32.xlu2 %v75_v26  ;;  %82 = vadd.xlane.f32.xlu1 %v81_v27  ;;  %v33_v29 = vpop.xlane.xlu1 %32  ;;  %v72_v41 = vsel %vm30_vm1, %v65_v40, 0.0 }
  0x7f   :  { %v57_v30 = vmul.f32 %v457_v16, %v42_v28  ;;  %v54_v31 = vmul.f32 %v457_v16, %v33_v29  ;;  %386 = vmatpush.bf16.msra.mxu2 %v338_v18  ;;  %268 = vmatpush.bf16.msra.mxu0 %v338_v18 }
  0x81   :  { %v474_v33 = vsub.f32 %v28_v6, %v57_v30  ;;  %v476_v34 = vsub.f32 %v25_v7, %v54_v31 }
  0x83   :  { %v67_v35 = vmul.f32 %v474_v33, %v474_v33  ;;  %v64_v37 = vmul.f32 %v476_v34, %v476_v34 }
  0x85   :  { %v78_v38 = vsel %vm30_vm1, %v67_v35, 0.0  ;;  %v69_v39 = vsel %vm30_vm1, %v64_v37, 0.0  ;;  %v392_v37 = vld [vmem:[%s614_s1] ss:$0 sm:$0xff] }
  0x86   :  { %79 = vadd.xlane.f32.xlu0 %v78_v38  ;;  %70 = vadd.xlane.f32.xlu2 %v69_v39 }
  0x8e   :  { %73 = vadd.xlane.f32.xlu0 %v72_v41  ;;  %v393_v41 = vld [vmem:[%s615_s2] ss:$0 sm:$0xff] }
  0xf1   :  { %v77_v45 = vpop.xlane.xlu2 %76  ;;  %v83_v46 = vpop.xlane.xlu1 %82 }
  0xf2   :  { %v86_v49 = vmul.f32 %v77_v45, %v457_v16  ;;  %v88_v50 = vmul.f32 %v83_v46, %v457_v16 }
  0xf4   :  { %v503_v52 = vadd.f32 1e-05, %v86_v49  ;;  %v505_v53 = vadd.f32 1e-05, %v88_v50 }
  0xf6   :  { %396 = vrsqrt.f32 %v503_v52  ;;  %vm140_vm3 = vweird.f32 %v505_v53  ;;  %vm120_vm6 = vweird.f32 %v503_v52 }
  0xf7   :  { %398 = vrsqrt.f32 %v505_v53 }
  0xf9   :  { %v80_v63 = vpop.xlane.xlu0 %79  ;;  %v71_v0 = vpop.xlane.xlu2 %70 }
  0xfa   :  { %v87_v3 = vmul.f32 %v80_v63, %v457_v16  ;;  %v84_v4 = vmul.f32 %v71_v0, %v457_v16 }
  0xfc   :  { %v397_v6 = vpop.eup %396  ;;  %v535_v7 = vadd.f32 1e-05, %v87_v3  ;;  %v537_v8 = vadd.f32 1e-05, %v84_v4 }
  0xfd   :  { %v399_v10 = vpop.eup %398  ;;  %v115_v11 = vmul.f32 %v397_v6, %v503_v52  ;;  %vm121_vm5 = vweird.f32 %v397_v6 }
  0xfe   :  { %v135_v15 = vmul.f32 %v399_v10, %v505_v53  ;;  %400 = vrsqrt.f32 %v535_v7  ;;  %vm141_vm4 = vweird.f32 %v399_v10  ;;  %vm122_vm8 = vmor %vm120_vm6, %vm121_vm5  ;;  %vm100_vm9 = vweird.f32 %v537_v8 }
  0xff   :  { %v116_v17 = vmul.f32 %v397_v6, %v115_v11  ;;  %402 = vrsqrt.f32 %v537_v8  ;;  %vm142_vm7 = vmor %vm140_vm3, %vm141_vm4  ;;  %vm130_vm13 = vweird.f32 %v535_v7  ;;  %vm312_vm5 = vcmask 1043456  }
 0x100   :  { %v136_v19 = vmul.f32 %v399_v10, %v135_v15  ;;  %v192_v15 = vld [vmem:[%s617_s4] sm:$0x3]  ;;  %vm313_vm6 = vcmask 523268  }
 0x101   :  { %v117_v23 = vmul.f32 0.5, %v116_v17  ;;  %v74_v24 = vpop.xlane.xlu0 %73  ;;  %v194_v17 = vperm.slane %v192_v15, 0  ;;  %v195_v18 = vperm.slane %v192_v15, 1 }
 0x102   :  { %v137_v25 = vmul.f32 0.5, %v136_v19  ;;  %v85_v26 = vmul.f32 %v74_v24, %v457_v16 }
 0x103   :  { %v118_v27 = vsub.f32 1.5, %v117_v23 }
 0x104   :  { %v401_v28 = vpop.eup %400  ;;  %v138_v29 = vsub.f32 1.5, %v137_v25  ;;  %v90_v30 = vadd.f32 1e-05, %v85_v26 }
 0x105   :  { %v403_v31 = vpop.eup %402  ;;  %v119_v32 = vmul.f32 %v397_v6, %v118_v27  ;;  %v125_v35 = vmul.f32 %v401_v28, %v535_v7  ;;  %vm131_vm11 = vweird.f32 %v401_v28 }
 0x106   :  { %v139_v16 = vmul.f32 %v399_v10, %v138_v29  ;;  %v95_v38 = vmul.f32 %v403_v31, %v537_v8  ;;  %404 = vrsqrt.f32 %v90_v30  ;;  %vm101_vm10 = vweird.f32 %v403_v31  ;;  %vm132_vm0 = vmor %vm130_vm13, %vm131_vm11 }
 0x107   :  { %v123_v39 = vsel %vm122_vm8, %v397_v6, %v119_v32  ;;  %v126_v40 = vmul.f32 %v401_v28, %v125_v35  ;;  %vm102_vm14 = vmor %vm100_vm9, %vm101_vm10  ;;  %vm110_vm2 = vweird.f32 %v90_v30  ;;  %vm320_vm8 = vcmask 520196  }
 0x108   :  { %v146_v42 = vmul.f32 %v123_v39, %v463_v22  ;;  %v143_v43 = vsel %vm142_vm7, %v399_v10, %v139_v16  ;;  %v96_v44 = vmul.f32 %v403_v31, %v95_v38  ;;  %vm586_vm7 = vmor %vm313_vm6, %vm312_vm5 }
 0x109   :  { %v148_v45 = vmul.f32 %v143_v43, %v461_v21  ;;  %v127_v46 = vmul.f32 0.5, %v126_v40 }
 0x10a   :  { %v155_v47 = vmul.f32 %v392_v37, %v146_v42  ;;  %v97_v48 = vmul.f32 0.5, %v96_v44 }
 0x10b   :  { %v157_v49 = vmul.f32 %v392_v37, %v148_v45  ;;  %v128_v50 = vsub.f32 1.5, %v127_v46 }
 0x10c   :  { %v405_v51 = vpop.eup %404  ;;  %v164_v52 = vadd.f32 %v393_v41, %v155_v47  ;;  %v98_v53 = vsub.f32 1.5, %v97_v48 }
 0x10d   :  { %v166_v54 = vadd.f32 %v393_v41, %v157_v49  ;;  %v129_v55 = vmul.f32 %v401_v28, %v128_v50  ;;  %v105_v22 = vmul.f32 %v405_v51, %v90_v30  ;;  %vm111_vm3 = vweird.f32 %v405_v51 }
 0x10e   :  { %v169_v21 = vpack.c.bf16 %v164_v52, %v164_v52  ;;  %v99_v56 = vmul.f32 %v403_v31, %v98_v53  ;;  %vm112_vm4 = vmor %vm110_vm2, %vm111_vm3 }
 0x10f   :  { %v171_v57 = vpack.c.bf16 %v166_v54, %v166_v54  ;;  %v133_v58 = vsel %vm132_vm0, %v401_v28, %v129_v55  ;;  %v106_v59 = vmul.f32 %v405_v51, %v105_v22 }
 0x110   :  { %175 = vst.msk [vmem:[#allocation2 + $0x8] sm:$0xf] %vm172_vm12, %v169_v21  ;;  %v147_v60 = vmul.f32 %v133_v58, %v474_v33  ;;  %v103_v61 = vsel %vm102_vm14, %v403_v31, %v99_v56 }
 0x111   :  { %178 = vst.msk [vmem:[#allocation2 + $0x10] sm:$0x1] %vm177_vm15, %v171_v57  ;;  %v144_v62 = vmul.f32 %v103_v61, %v476_v34  ;;  %v107_v63 = vmul.f32 0.5, %v106_v59 }
 0x112   :  { %v156_v0 = vmul.f32 %v392_v37, %v147_v60 }
 0x113   :  { %v153_v1 = vmul.f32 %v392_v37, %v144_v62  ;;  %v108_v2 = vsub.f32 1.5, %v107_v63 }
 0x114   :  { %v165_v3 = vadd.f32 %v393_v41, %v156_v0 }
 0x115   :  { %v162_v4 = vadd.f32 %v393_v41, %v153_v1  ;;  %v109_v5 = vmul.f32 %v405_v51, %v108_v2 }
 0x116   :  { %v170_v6 = vpack.c.bf16 %v165_v3, %v165_v3 }
 0x117   :  { %v167_v7 = vpack.c.bf16 %v162_v4, %v162_v4  ;;  %v113_v8 = vsel %vm112_vm4, %v405_v51, %v109_v5 }
 0x118   :  { %176 = vst.msk [vmem:[#allocation2 + $0xc] sm:$0xf] %vm172_vm12, %v170_v6  ;;  %v145_v33 = vmul.f32 %v113_v8, %v480_v36  ;;  %v183_v13 = vld [vmem:[#allocation2 + $0x10] sm:$0x1] }
 0x119   :  { %173 = vst.msk [vmem:[#allocation2] sm:$0xf] %vm172_vm12, %v167_v7  ;;  %v207_v14 = vunpack.c.l.b16 %v183_v13 }
 0x11a   :  { %v154_v34 = vmul.f32 %v392_v37, %v145_v33 }
 0x11b   :  { %v210_v36 = vpack.c.b16 %v207_v14, %v207_v14 }
 0x11c   :  { %v163_v9 = vadd.f32 %v393_v41, %v154_v34 }
 0x11e   :  { %v168_v10 = vpack.c.bf16 %v163_v9, %v163_v9 }
 0x11f   :  { %v374_v11 = vld [vmem:[#allocation2 + $0x8] sm:$0xff] }
 0x120   :  { %174 = vst.msk [vmem:[#allocation2 + $0x4] sm:$0xf] %vm172_vm12, %v168_v10  ;;  %368 = vmatmul.msk.bf16.vlgmr.msra.gmra.mxu2 %vm30_vm1, %v374_v11  ;;  %371 = vmatmul.msk.bf16.vlgmr.msra.gmra.mxu3 %vm30_vm1, %v374_v11 }
 0x127   :  { %v373_v12 = vld [vmem:[#allocation2] sm:$0xff] }
 0x128   :  { %367 = vmatmul.msk.bf16.vlgmr.msra.gmra.mxu0 %vm30_vm1, %v373_v12  ;;  %370 = vmatmul.msk.bf16.vlgmr.msra.gmra.mxu1 %vm30_vm1, %v373_v12 }
 0x130   :  { %369 = vmatmul.msk.bf16.gmra.mxu2 %vm30_vm1, %v210_v36  ;;  %372 = vmatmul.msk.bf16.gmra.mxu3 %vm30_vm1, %v210_v36  ;;  %vm319_vm1 = vcmask 1040384  }
 0x131   :  { %vm321_vm9 = vmor %vm320_vm8, %vm319_vm1 }
 0x1a3   :  { %v275_v19 = vpop.f32.mrf.mxu2  ;;  %v298_v20 = vpop.f32.mrf.mxu3 }
 0x1a4   :  { %v276_v23 = vadd.f32 %v275_v19, %v194_v17  ;;  %v299_v24 = vadd.f32 %v298_v20, %v195_v18 }
 0x1a5   :  { %v270_v26 = vpop.f32.mrf.mxu0  ;;  %v293_v27 = vpop.f32.mrf.mxu1 }
 0x1a6   :  { %v309_v28 = vpack.c.bf16 %v299_v24, %v276_v23  ;;  %v271_v29 = vadd.f32 %v270_v26, %v194_v17  ;;  %v294_v30 = vadd.f32 %v293_v27, %v195_v18 }
 0x1a8   :  { %317 = vst.msk [vmem:[%s618_s5 + $0x10] sm:$0xff] %vm586_vm7, %v309_v28  ;;  %v307_v31 = vpack.c.bf16 %v294_v30, %v271_v29 }
 0x1aa   :  { %315 = vst.msk [vmem:[%s618_s5] sm:$0xff] %vm586_vm7, %v307_v31 }
 0x1ab   :  { %v277_v32 = vpop.f32.mrf.mxu2  ;;  %v300_v35 = vpop.f32.mrf.mxu3 }
 0x1ac   :  { %v278_v37 = vadd.f32 %v277_v32, %v194_v17  ;;  %v301_v16 = vadd.f32 %v300_v35, %v195_v18 }
 0x1ad   :  { %v272_v38 = vpop.f32.mrf.mxu0  ;;  %v295_v39 = vpop.f32.mrf.mxu1 }
 0x1ae   :  { %v310_v40 = vpack.c.bf16 %v301_v16, %v278_v37  ;;  %v273_v41 = vadd.f32 %v272_v38, %v194_v17  ;;  %v296_v42 = vadd.f32 %v295_v39, %v195_v18 }
 0x1b0   :  { %318 = vst.msk [vmem:[%s618_s5 + $0x18] sm:$0xff] %vm586_vm7, %v310_v40  ;;  %v308_v43 = vpack.c.bf16 %v296_v42, %v273_v41 }
 0x1b2   :  { %316 = vst.msk [vmem:[%s618_s5 + $0x8] sm:$0xff] %vm586_vm7, %v308_v43 }
 0x1b3   :  { %v280_v44 = vpop.f32.mrf.mxu2  ;;  %v303_v45 = vpop.f32.mrf.mxu3 }
 0x1b4   :  { %v281_v46 = vadd.f32 %v280_v44, %v194_v17  ;;  %v304_v47 = vadd.f32 %v303_v45, %v195_v18 }
 0x1b6   :  { %v311_v48 = vpack.c.bf16 %v304_v47, %v281_v46 }
 0x1b8   :  { %322 = vst.msk [vmem:[%s618_s5 + $0x20] sm:$0x11] %vm321_vm9, %v311_v48 }
 0x1bb   :  { %v282_v49 = vpop.f32.mrf.mxu2  ;;  %v305_v50 = vpop.f32.mrf.mxu3 }

// kernel: transformer_drop_forward.7
= control target key start
LH: loop header
LB: loop body
LE: loop exit
PB: predicated region body
PF: predicated region fallthrough
CT: control target
= control target key end

     0   :  { %s2208_s24 = smov 0   ;;  %s2210_s25 = smov 0   ;;  %s2644_s0 = inlined_call_operand.vmem [shape: bf16[2,3,4,128,16], index: 0, kind: input, shape index: {}, may-alias: {0,1,2}]   ;;  %s2645_s1 = inlined_call_operand.vmem [shape: bf16[2,3,4,128,16], index: 1, kind: input, shape index: {}, may-alias: {0,1,2}]   ;;  %s2646_s2 = inlined_call_operand.vmem [shape: bf16[2,3,4,128,16], index: 2, kind: input, shape index: {}, may-alias: {0,1,2}]   ;;  %s2647_s3 = inlined_call_operand.vmem [shape: f32[2,128,64], index: 3, kind: input, shape index: {}]   ;;  %s2648_s4 = inlined_call_operand.vmem [shape: bf16[64,64], index: 4, kind: input, shape index: {}]   ;;  %s2649_s5 = inlined_call_operand.vmem [shape: f32[1,64], index: 5, kind: input, shape index: {}]   ;;  %s2650_s6 = inlined_call_operand.vmem [shape: f32[2,128,64], index: 6, kind: output, shape index: {0}]   ;;  %s2651_s7 = inlined_call_operand.vmem [shape: f32[2,1,128], index: 7, kind: output, shape index: {1}]  }
   0x1   :  { %s2212_s26 = smov 0   ;;  %s2214_s27 = smov 0  }
   0x2   :  { %s2216_s28 = smov 0  }
   0x3 LB: > { %s27_s29 = sadd.s32 1, %s2154_s26  ;;  %s30_s30 = sadd.s32 1, %s2158_s27  ;;  %s2162_s28 = sphi %s2216_s28, %s18_s28   ;;  %s2158_s27 = sphi %s2214_s27, %s2659_s27   ;;  %s2154_s26 = sphi %s2212_s26, %s2658_s26   ;;  %s2150_s25 = sphi %s2210_s25, %s2657_s25   ;;  %s2146_s24 = sphi %s2208_s24, %s2656_s24  }
   0x4   : > { %p28_p0 = scmp.ge.s32.totalorder %s27_s29, 4  ;;  %p1619_p1 = scmp.ge.s32.totalorder %s2162_s28, 1 }
   0x5   : > { %p302_p2 = scmp.lt.s32.totalorder %s2162_s28, 9 }
   0x6   : > { %s2661_s29 = smov (%p28_p0, %s27_s29), 0  ;;  %s2663_s30 = smov (!%p28_p0, %s30_s30), %s2158_s27 }
   0x7   : > { %2652 = sst [smem:[#allocation4_spill]] %s2661_s29  ;;  %p303_p3 = pnand %p1619_p1, %p302_p2 }
   0x8   : > { %p32_p4 = scmp.ge.s32.totalorder %s2663_s30, 2  ;;  %p366_p5 = scmp.lt.s32.totalorder (!%p303_p3), %s2150_s25, 1 }
   0x9   : > { %306 = sbr.rel (%p303_p3) target bundleno = 1074 (0x432), region = 44  ;;  %p368_p6 = scmp.lt.s32.totalorder (!%p303_p3), %s2146_s24, 3 }
   0xa   : > { %s2665_s30 = smov (%p32_p4, %s2663_s30), 0  ;;  %p1630_p7 = scmp.ne.s32.totalorder (!%p303_p3), %s2146_s24, 0 }
   0xb   : > { %2653 = sst [smem:[#allocation5_spill]] %s2665_s30 }
   0xe   : > { %s2667_s25 = smov (!%p366_p5, %s2150_s25), 1 }
   0xf   : > { %s369_s8 = scalar_select %p368_p6, %s2146_s24, 3 }
  0x10   : > { %s2014_s9 = smul.u32 192, %s2667_s25  ;;  %s1892_s10 = sshll.u32 %s2667_s25, 7 }
  0x11   : > { %s1620_s11 = sshll.u32 %s369_s8, 4  ;;  %s2249_s14 = scalar_lea.vmem %s2647_s3, %s1892_s10 }
  0x12   : > { %s372_s15 = sadd.s32 %s2014_s9, %s1620_s11  ;;  %s2254_s18 = scalar_lea.vmem %s2650_s6, %s1892_s10 }
  0x13   : > { %s1621_s19 = sshll.u32 %s372_s15, 2  ;;  %s407_s22 = scalar_lea.vmem %s2651_s7, %s2667_s25 }
  0x14   : > { %s2263_s8 = scalar_lea.vmem %s2644_s0, %s1621_s19  ;;  %s2268_s13 = scalar_lea.vmem %s2645_s1, %s1621_s19 }
  0x15   : > { %s2273_s10 = scalar_lea.vmem %s2646_s2, %s1621_s19  ;;  %412 = sbr.rel (%p1630_p7) target bundleno = 28 (0x1c), region = 48 }
  0x1a   : > { %v2164_v0 = vmov 0.0  }
  0x1b   : > { %413 = vst [vmem:[#allocation3] sm:$0x1] %v2164_v0 }
  0x1c PF: > { %v1901_v1 = vld [vmem:[%s2268_s13 + $0x138] sm:$0xff]  ;;  %vm542_vm0 = vcmask 130048   ;;  %v1900_v3 = vld [vmem:[%s2268_s13 + $0x130] sm:$0xff]  ;;  %v1899_v5 = vld [vmem:[%s2268_s13 + $0x128] sm:$0xff]  ;;  %s1910_s29 = sshll.u32 %s2146_s24, 6  ;;  %vm930_vm2 = vcmask 125952  }
  0x1d   : > { %v589_v2 = vsel %vm542_vm0, %v1901_v1, 0  ;;  %v586_v4 = vsel %vm542_vm0, %v1900_v3, 0  ;;  %v583_v6 = vsel %vm542_vm0, %v1899_v5, 0  ;;  %v1898_v7 = vld [vmem:[%s2268_s13 + $0x120] sm:$0xff]  ;;  %v1897_v9 = vld [vmem:[%s2268_s13 + $0x118] sm:$0xff]  ;;  %v1896_v11 = vld [vmem:[%s2268_s13 + $0x110] sm:$0xff]  ;;  %v640_v1 = vlaneseq }
  0x1e   : > { %591 = vmatpush.bf16.xpose.msra.mxu0 %v589_v2  ;;  %1986 = vmatpush.bf16.xpose.msra.mxu2 %v589_v2  ;;  %v580_v8 = vsel %vm542_vm0, %v1898_v7, 0  ;;  %v577_v10 = vsel %vm542_vm0, %v1897_v9, 0  ;;  %v574_v12 = vsel %vm542_vm0, %v1896_v11, 0  ;;  %v1895_v13 = vld [vmem:[%s2268_s13 + $0x108] sm:$0xff]  ;;  %v1948_v15 = vld [vmem:[%s2263_s8] sm:$0xff]   ;;  %v1981_v16 = vld [vmem:[%s2263_s8 + $0x18] sm:$0xff]  }
  0x1f   : > { %v571_v14 = vsel %vm542_vm0, %v1895_v13, 0  ;;  %v1894_v17 = vld [vmem:[%s2268_s13 + $0x100] sm:$0xff]  ;;  %v1949_v18 = vunpack.c.l.bf16 %v1948_v15  ;;  %v1950_v19 = vunpack.c.h.bf16 %v1948_v15  ;;  %v1961_v20 = vunpack.c.l.bf16 %v1981_v16  ;;  %v1979_v29 = vld [vmem:[%s2263_s8 + $0x8] sm:$0xff]   ;;  %v1980_v41 = vld [vmem:[%s2263_s8 + $0x10] sm:$0xff]   ;;  %s2450_s30 = scalar_lea.vmem [#allocation2], %s1910_s29  ;;  %p1737_p8 = scmp.ne.s32.totalorder %s2146_s24, 3 }
  0x20   : > { %v1962_v21 = vunpack.c.h.bf16 %v1981_v16  ;;  %v568_v22 = vsel %vm542_vm0, %v1894_v17, 0  ;;  %v1982_v30 = vld [vmem:[%s2263_s8 + $0x20] sm:$0xff]   ;;  %v1953_v31 = vunpack.c.l.bf16 %v1979_v29  ;;  %v1954_v32 = vunpack.c.h.bf16 %v1979_v29  ;;  %v1983_v42 = vld [vmem:[%s2263_s8 + $0x28] sm:$0xff]   ;;  %v1984_v53 = vld [vmem:[%s2263_s8 + $0x30] sm:$0xff]   ;;  %s2165_s15 = smov (!%p1737_p8), 32   ;;  %s2166_s16 = smov (!%p1737_p8), 16  }
  0x21   : > { %v446_v23 = vmul.f32 0.25, %v1949_v18  ;;  %v447_v24 = vmul.f32 0.25, %v1950_v19  ;;  %v452_v25 = vmul.f32 0.25, %v1961_v20  ;;  %v1965_v33 = vunpack.c.l.bf16 %v1982_v30  ;;  %v1985_v59 = vld [vmem:[%s2263_s8 + $0x38] sm:$0xff]   ;;  %s2167_s17 = smov (!%p1737_p8), 48  }
  0x22   : > { %v453_v26 = vmul.f32 0.25, %v1962_v21  ;;  %v1966_v34 = vunpack.c.h.bf16 %v1982_v30  ;;  %v448_v35 = vmul.f32 0.25, %v1953_v31  ;;  %v449_v36 = vmul.f32 0.25, %v1954_v32 }
  0x23   : > { %v462_v27 = vpack.c.bf16 %v447_v24, %v446_v23  ;;  %v454_v37 = vmul.f32 0.25, %v1965_v33  ;;  %v1957_v43 = vunpack.c.l.bf16 %v1980_v41  ;;  %v1958_v44 = vunpack.c.h.bf16 %v1980_v41 }
  0x24   : > { %v465_v28 = vpack.c.bf16 %v453_v26, %v452_v25  ;;  %v455_v38 = vmul.f32 0.25, %v1966_v34  ;;  %v463_v39 = vpack.c.bf16 %v449_v36, %v448_v35  ;;  %v1969_v45 = vunpack.c.l.bf16 %v1983_v42 }
  0x25   : > { %v1970_v46 = vunpack.c.h.bf16 %v1983_v42  ;;  %v450_v47 = vmul.f32 0.25, %v1957_v43  ;;  %v451_v48 = vmul.f32 0.25, %v1958_v44  ;;  %v1973_v54 = vunpack.c.l.bf16 %v1984_v53 }
  0x26   : > { %592 = vmatpush.bf16.xpose.msra.mxu0 %v586_v4  ;;  %1987 = vmatpush.bf16.xpose.msra.mxu2 %v586_v4  ;;  %v466_v40 = vpack.c.bf16 %v455_v38, %v454_v37  ;;  %v456_v49 = vmul.f32 0.25, %v1969_v45  ;;  %v1974_v55 = vunpack.c.h.bf16 %v1984_v53  ;;  %v1977_v60 = vunpack.c.l.bf16 %v1985_v59 }
  0x27   : > { %v457_v50 = vmul.f32 0.25, %v1970_v46  ;;  %v464_v51 = vpack.c.bf16 %v451_v48, %v450_v47  ;;  %v458_v56 = vmul.f32 0.25, %v1973_v54  ;;  %v1978_v61 = vunpack.c.h.bf16 %v1985_v59 }
  0x28   : > { %v459_v57 = vmul.f32 0.25, %v1974_v55  ;;  %v460_v62 = vmul.f32 0.25, %v1977_v60  ;;  %v2308_v2 = vand.u32 127, %v640_v1 }
  0x29   : > { %v467_v52 = vpack.c.bf16 %v457_v50, %v456_v49  ;;  %v461_v63 = vmul.f32 0.25, %v1978_v61 }
  0x2a   : > { %v468_v58 = vpack.c.bf16 %v459_v57, %v458_v56  ;;  %vm642_vm1 = vcmp.lt.s32.totalorder %v2308_v2, 17 }
  0x2b   : > { %v469_v0 = vpack.c.bf16 %v461_v63, %v460_v62 }
  0x2e   : > { %593 = vmatpush.bf16.xpose.msra.mxu0 %v583_v6  ;;  %1988 = vmatpush.bf16.xpose.msra.mxu2 %v583_v6 }
  0x36   : > { %594 = vmatpush.bf16.xpose.msra.mxu0 %v580_v8  ;;  %1989 = vmatpush.bf16.xpose.msra.mxu2 %v580_v8 }
  0x3e   : > { %595 = vmatpush.bf16.xpose.msra.mxu0 %v577_v10  ;;  %1990 = vmatpush.bf16.xpose.msra.mxu2 %v577_v10 }
  0x46   : > { %596 = vmatpush.bf16.xpose.msra.mxu0 %v574_v12  ;;  %1991 = vmatpush.bf16.xpose.msra.mxu2 %v574_v12 }
  0x4e   : > { %597 = vmatpush.bf16.xpose.msra.mxu0 %v571_v14  ;;  %1992 = vmatpush.bf16.xpose.msra.mxu2 %v571_v14 }
  0x56   : > { %598 = vmatpush.bf16.xpose.msra.mxu0 %v568_v22  ;;  %1993 = vmatpush.bf16.xpose.msra.mxu2 %v568_v22 }
  0x5d   : > { %1695 = vmatmul.msk.bf16.vlgmr.msra.gmra.mxu0 %vm542_vm0, %v462_v27  ;;  %1698 = vmatmul.msk.bf16.vlgmr.msra.gmra.mxu2 %vm542_vm0, %v465_v28 }
  0x6d   : > { %1696 = vmatmul.msk.bf16.gmra.mxu0 %vm542_vm0, %v463_v39  ;;  %1699 = vmatmul.msk.bf16.gmra.mxu2 %vm542_vm0, %v466_v40 }
  0x7d   : > { %1697 = vmatmul.msk.bf16.gmra.mxu0 %vm542_vm0, %v464_v51  ;;  %1700 = vmatmul.msk.bf16.gmra.mxu2 %vm542_vm0, %v467_v52 }
  0x8d   : > { %1701 = vmatmul.msk.bf16.gmra.mxu2 %vm542_vm0, %v468_v58 }
  0x9d   : > { %1702 = vmatmul.msk.bf16.gmra.mxu2 %vm542_vm0, %v469_v0 }
  0xda   : > { %v600_v3 = vpop.f32.mrf.mxu0 }
  0xdb   : > { %v643_v4 = vsel %vm642_vm1, %v600_v3, -1e+30 }
  0xdc   : > { %659 = vmax.xlane.f32.xlu0 %v643_v4 }
  0xe0   : > { %v615_v5 = vpop.f32.mrf.mxu2 }
  0xe1   : > { %v2331_v23 = vsel %vm642_vm1, %v615_v5, -1e+30 }
  0xe2   : > { %v602_v6 = vpop.f32.mrf.mxu0 }
  0xe3   : > { %v644_v7 = vsel %vm642_vm1, %v602_v6, -1e+30 }
  0xe4   : > { %661 = vmax.xlane.f32.xlu0 %v644_v7 }
  0xe8   : > { %v617_v8 = vpop.f32.mrf.mxu2 }
  0xe9   : > { %v2342_v26 = vsel %vm642_vm1, %v617_v8, -1e+30 }
  0xea   : > { %v605_v9 = vpop.f32.mrf.mxu0 }
  0xeb   : > { %v645_v10 = vsel %vm642_vm1, %v605_v9, -1e+30  ;;  %v1909_v9 = vld [vmem:[%s2273_s10 + $0x238] sm:$0xff] }
  0xec   : > { %663 = vmax.xlane.f32.xlu1 %v645_v10  ;;  %862 = vmatpush.bf16.msra.mxu1 %v1909_v9 }
  0xed   : > { %1994 = vmatpush.bf16.msra.mxu3 %v1909_v9 }
  0xf0   : > { %v620_v11 = vpop.f32.mrf.mxu2 }
  0xf1   : > { %v2375_v49 = vsel %vm642_vm1, %v620_v11, -1e+30 }
  0xf2   : > { %v607_v12 = vpop.f32.mrf.mxu0 }
  0xf3   : > { %v646_v13 = vsel %vm642_vm1, %v607_v12, -1e+30 }
  0xf4   : > { %665 = vmax.xlane.f32.xlu1 %v646_v13 }
  0xf8   : > { %v622_v14 = vpop.f32.mrf.mxu2 }
  0xf9   : > { %v2357_v31 = vsel %vm642_vm1, %v622_v14, -1e+30 }
  0xfa   : > { %v610_v15 = vpop.f32.mrf.mxu0 }
  0xfb   : > { %v647_v16 = vsel %vm642_vm1, %v610_v15, -1e+30 }
  0xfc   : > { %667 = vmax.xlane.f32.xlu0 %v647_v16 }
 0x100   : > { %v625_v17 = vpop.f32.mrf.mxu2 }
 0x101   : > { %v653_v18 = vsel %vm642_vm1, %v625_v17, -1e+30 }
 0x102   : > { %679 = vmax.xlane.f32.xlu2 %v653_v18  ;;  %v612_v19 = vpop.f32.mrf.mxu0 }
 0x103   : > { %v648_v20 = vsel %vm642_vm1, %v612_v19, -1e+30  ;;  %v1907_v19 = vld [vmem:[%s2273_s10 + $0x228] sm:$0xff] }
 0x104   : > { %669 = vmax.xlane.f32.xlu1 %v648_v20 }
 0x108   : > { %v627_v21 = vpop.f32.mrf.mxu2 }
 0x109   : > { %v2327_v22 = vsel %vm642_vm1, %v627_v21, -1e+30 }
 0x10a   : > { %681 = vmax.xlane.f32.xlu2 %v2327_v22 }
 0x10c   : > { %671 = vmax.xlane.f32.xlu1 %v2331_v23 }
 0x110   : > { %v630_v24 = vpop.f32.mrf.mxu2 }
 0x111   : > { %v2337_v25 = vsel %vm642_vm1, %v630_v24, -1e+30 }
 0x112   : > { %683 = vmax.xlane.f32.xlu2 %v2337_v25 }
 0x118   : > { %v632_v27 = vpop.f32.mrf.mxu2 }
 0x119   : > { %v2346_v28 = vsel %vm642_vm1, %v632_v27, -1e+30 }
 0x11a   : > { %673 = vmax.xlane.f32.xlu2 %v2342_v26  ;;  %685 = vmax.xlane.f32.xlu0 %v2346_v28 }
 0x120   : > { %v635_v29 = vpop.f32.mrf.mxu2 }
 0x121   : > { %v2352_v30 = vsel %vm642_vm1, %v635_v29, -1e+30 }
 0x122   : > { %687 = vmax.xlane.f32.xlu2 %v2352_v30 }
 0x128   : > { %v637_v39 = vpop.f32.mrf.mxu2 }
 0x129   : > { %v2367_v44 = vsel %vm642_vm1, %v637_v39, -1e+30 }
 0x12a   : > { %677 = vmax.xlane.f32.xlu2 %v2357_v31 }
 0x14f   : > { %v660_v32 = vpop.xlane.xlu0 %659 }
 0x150   : > { %v691_v33 = vsub.f32 %v643_v4, %v660_v32  ;;  %v1905_v32 = vld [vmem:[%s2273_s10 + $0x218] sm:$0xff] }
 0x152   : > { %v707_v34 = vmul.f32 1.442695, %v691_v33  ;;  %v1904_v33 = vld [vmem:[%s2273_s10 + $0x210] sm:$0xff] }
 0x154   : > { %2059 = vpow2.f32 %v707_v34  ;;  %v1902_v34 = vld [vmem:[%s2273_s10 + $0x200] sm:$0xff] }
 0x157   : > { %v662_v35 = vpop.xlane.xlu0 %661 }
 0x158   : > { %v692_v36 = vsub.f32 %v644_v7, %v662_v35 }
 0x15a   : > { %v2360_v37 = vpop.eup %2059  ;;  %v709_v38 = vmul.f32 1.442695, %v692_v36 }
 0x15b   : > { %739 = vadd.xlane.f32.xlu0 %v2360_v37 }
 0x15c   : > { %2061 = vpow2.f32 %v709_v38  ;;  %v803_v38 = vld [vmem:[#allocation3] sm:$0x1] }
 0x15f   : > { %v664_v40 = vpop.xlane.xlu1 %663 }
 0x160   : > { %v693_v41 = vsub.f32 %v645_v10, %v664_v40  ;;  %v1908_v10 = vld [vmem:[%s2273_s10 + $0x230] sm:$0xff] }
 0x161   : > { %863 = vmatpush.bf16.msra.mxu1 %v1908_v10  ;;  %1995 = vmatpush.bf16.msra.mxu3 %v1908_v10 }
 0x162   : > { %v2363_v42 = vpop.eup %2061  ;;  %v711_v43 = vmul.f32 1.442695, %v693_v41 }
 0x163   : > { %689 = vmax.xlane.f32.xlu0 %v2367_v44  ;;  %741 = vadd.xlane.f32.xlu1 %v2363_v42 }
 0x164   : > { %2063 = vpow2.f32 %v711_v43 }
 0x165   : > { %864 = vmatpush.bf16.msra.mxu1 %v1907_v19  ;;  %1996 = vmatpush.bf16.msra.mxu3 %v1907_v19 }
 0x167   : > { %v666_v45 = vpop.xlane.xlu1 %665 }
 0x168   : > { %v694_v46 = vsub.f32 %v646_v13, %v666_v45 }
 0x16a   : > { %v2371_v47 = vpop.eup %2063  ;;  %v713_v48 = vmul.f32 1.442695, %v694_v46 }
 0x16b   : > { %743 = vadd.xlane.f32.xlu0 %v2371_v47  ;;  %675 = vmax.xlane.f32.xlu1 %v2375_v49 }
 0x16c   : > { %2065 = vpow2.f32 %v713_v48 }
 0x16f   : > { %v668_v50 = vpop.xlane.xlu0 %667 }
 0x170   : > { %v695_v51 = vsub.f32 %v647_v16, %v668_v50 }
 0x172   : > { %v2379_v52 = vpop.eup %2065  ;;  %v715_v53 = vmul.f32 1.442695, %v695_v51 }
 0x173   : > { %745 = vadd.xlane.f32.xlu1 %v2379_v52 }
 0x174   : > { %2067 = vpow2.f32 %v715_v53 }
 0x175   : > { %v680_v54 = vpop.xlane.xlu2 %679 }
 0x176   : > { %v701_v55 = vsub.f32 %v653_v18, %v680_v54 }
 0x177   : > { %v670_v56 = vpop.xlane.xlu1 %669 }
 0x178   : > { %v727_v57 = vmul.f32 1.442695, %v701_v55  ;;  %v696_v58 = vsub.f32 %v648_v20, %v670_v56 }
 0x17a   : > { %v2382_v59 = vpop.eup %2067  ;;  %2069 = vpow2.f32 %v727_v57  ;;  %v717_v60 = vmul.f32 1.442695, %v696_v58 }
 0x17b   : > { %747 = vadd.xlane.f32.xlu1 %v2382_v59 }
 0x17c   : > { %2071 = vpow2.f32 %v717_v60 }
 0x17d   : > { %v682_v61 = vpop.xlane.xlu2 %681 }
 0x17e   : > { %v702_v62 = vsub.f32 %v2327_v22, %v682_v61 }
 0x17f   : > { %v672_v63 = vpop.xlane.xlu1 %671 }
 0x180   : > { %v2386_v0 = vpop.eup %2069  ;;  %v729_v1 = vmul.f32 1.442695, %v702_v62  ;;  %v697_v2 = vsub.f32 %v2331_v23, %v672_v63 }
 0x181   : > { %759 = vadd.xlane.f32.xlu2 %v2386_v0 }
 0x182   : > { %2073 = vpow2.f32 %v729_v1  ;;  %v719_v3 = vmul.f32 1.442695, %v697_v2  ;;  %v2391_v6 = vpop.eup %2071 }
 0x184   : > { %2075 = vpow2.f32 %v719_v3 }
 0x185   : > { %v684_v4 = vpop.xlane.xlu2 %683 }
 0x186   : > { %v703_v5 = vsub.f32 %v2337_v25, %v684_v4 }
 0x188   : > { %v2393_v7 = vpop.eup %2073  ;;  %v731_v8 = vmul.f32 1.442695, %v703_v5 }
 0x189   : > { %761 = vadd.xlane.f32.xlu0 %v2393_v7  ;;  %749 = vadd.xlane.f32.xlu2 %v2391_v6 }
 0x18a   : > { %2077 = vpow2.f32 %v731_v8  ;;  %v2401_v15 = vpop.eup %2075 }
 0x18d   : > { %v674_v11 = vpop.xlane.xlu2 %673  ;;  %v686_v12 = vpop.xlane.xlu0 %685 }
 0x18e   : > { %v698_v13 = vsub.f32 %v2342_v26, %v674_v11  ;;  %v704_v14 = vsub.f32 %v2346_v28, %v686_v12 }
 0x190   : > { %v2403_v16 = vpop.eup %2077  ;;  %v721_v17 = vmul.f32 1.442695, %v698_v13  ;;  %v733_v18 = vmul.f32 1.442695, %v704_v14 }
 0x191   : > { %763 = vadd.xlane.f32.xlu0 %v2403_v16  ;;  %751 = vadd.xlane.f32.xlu2 %v2401_v15 }
 0x192   : > { %2079 = vpow2.f32 %v721_v17 }
 0x193   : > { %2081 = vpow2.f32 %v733_v18 }
 0x195   : > { %v688_v20 = vpop.xlane.xlu2 %687 }
 0x196   : > { %v705_v21 = vsub.f32 %v2352_v30, %v688_v20  ;;  %v1906_v30 = vld [vmem:[%s2273_s10 + $0x220] sm:$0xff] }
 0x197   : > { %865 = vmatpush.bf16.msra.mxu1 %v1906_v30  ;;  %1997 = vmatpush.bf16.msra.mxu3 %v1906_v30 }
 0x198   : > { %v2409_v22 = vpop.eup %2079  ;;  %v735_v23 = vmul.f32 1.442695, %v705_v21 }
 0x199   : > { %v2411_v24 = vpop.eup %2081  ;;  %753 = vadd.xlane.f32.xlu0 %v2409_v22 }
 0x19a   : > { %2083 = vpow2.f32 %v735_v23  ;;  %765 = vadd.xlane.f32.xlu1 %v2411_v24 }
 0x19b   : > { %866 = vmatpush.bf16.msra.mxu1 %v1905_v32  ;;  %1998 = vmatpush.bf16.msra.mxu3 %v1905_v32 }
 0x19d   : > { %v678_v25 = vpop.xlane.xlu2 %677 }
 0x19e   : > { %v700_v26 = vsub.f32 %v2357_v31, %v678_v25  ;;  %v1903_v31 = vld [vmem:[%s2273_s10 + $0x208] sm:$0xff] }
 0x19f   : > { %867 = vmatpush.bf16.msra.mxu1 %v1904_v33  ;;  %1999 = vmatpush.bf16.msra.mxu3 %v1904_v33 }
 0x1a0   : > { %v2416_v27 = vpop.eup %2083  ;;  %v725_v28 = vmul.f32 1.442695, %v700_v26 }
 0x1a2   : > { %2085 = vpow2.f32 %v725_v28  ;;  %767 = vadd.xlane.f32.xlu1 %v2416_v27 }
 0x1a3   : > { %868 = vmatpush.bf16.msra.mxu1 %v1903_v31  ;;  %2000 = vmatpush.bf16.msra.mxu3 %v1903_v31 }
 0x1a7   : > { %869 = vmatpush.bf16.msra.mxu1 %v1902_v34  ;;  %2001 = vmatpush.bf16.msra.mxu3 %v1902_v34 }
 0x1a8   : > { %v2419_v29 = vpop.eup %2085 }
 0x1aa   : > { %757 = vadd.xlane.f32.xlu1 %v2419_v29 }
 0x1ce   : > { %v740_v35 = vpop.xlane.xlu0 %739 }
 0x1cf   : > { %2087 = vrcp.f32 %v740_v35 }
 0x1d5   : > { %v2088_v36 = vpop.eup %2087 }
 0x1d6   : > { %v690_v39 = vpop.xlane.xlu0 %689  ;;  %v742_v40 = vpop.xlane.xlu1 %741  ;;  %v787_v41 = vmul.f32 %v2088_v36, %v2360_v37 }
 0x1d7   : > { %v706_v43 = vsub.f32 %v2367_v44, %v690_v39  ;;  %2089 = vrcp.f32 %v742_v40 }
 0x1d8   : > { %v804_v45 = vadd.f32 %v803_v38, %v787_v41 }
 0x1d9   : > { %v737_v46 = vmul.f32 1.442695, %v706_v43 }
 0x1da   : > { %805 = vst [vmem:[#allocation3] sm:$0x1] %v804_v45 }
 0x1db   : > { %2091 = vpow2.f32 %v737_v46 }
 0x1dd   : > { %v2090_v48 = vpop.eup %2089 }
 0x1de   : > { %v676_v50 = vpop.xlane.xlu1 %675  ;;  %v788_v51 = vmul.f32 %v2090_v48, %v2363_v42  ;;  %v744_v57 = vpop.xlane.xlu0 %743 }
 0x1df   : > { %v699_v53 = vsub.f32 %v2375_v49, %v676_v50 }
 0x1e0   : > { %v806_v54 = vpack.c.bf16 %v788_v51, %v787_v41 }
 0x1e1   : > { %v2431_v55 = vpop.eup %2091  ;;  %v723_v56 = vmul.f32 1.442695, %v699_v53 }
 0x1e2   : > { %769 = vadd.xlane.f32.xlu2 %v2431_v55  ;;  %870 = vmatmul.bf16.vlgmr.msra.gmra.mxu1 %v806_v54 }
 0x1e3   : > { %2093 = vpow2.f32 %v723_v56 }
 0x1e4   : > { %2095 = vrcp.f32 %v744_v57 }
 0x1e6   : > { %v746_v37 = vpop.xlane.xlu1 %745 }
 0x1e7   : > { %2097 = vrcp.f32 %v746_v37 }
 0x1e9   : > { %v2434_v44 = vpop.eup %2093 }
 0x1ea   : > { %755 = vadd.xlane.f32.xlu0 %v2434_v44  ;;  %v2096_v58 = vpop.eup %2095 }
 0x1eb   : > { %v789_v49 = vmul.f32 %v2096_v58, %v2371_v47 }
 0x1ed   : > { %v2098_v42 = vpop.eup %2097 }
 0x1ee   : > { %v790_v60 = vmul.f32 %v2098_v42, %v2379_v52  ;;  %v748_v63 = vpop.xlane.xlu1 %747 }
 0x1f0   : > { %v807_v61 = vpack.c.bf16 %v790_v60, %v789_v49 }
 0x1f2   : > { %875 = vmatmul.bf16.gmra.mxu1 %v807_v61 }
 0x1f4   : > { %v760_v62 = vpop.xlane.xlu2 %759 }
 0x1f5   : > { %2099 = vrcp.f32 %v760_v62 }
 0x1f6   : > { %2101 = vrcp.f32 %v748_v63 }
 0x1fb   : > { %v2100_v3 = vpop.eup %2099 }
 0x1fc   : > { %v762_v1 = vpop.xlane.xlu0 %761  ;;  %v750_v2 = vpop.xlane.xlu2 %749  ;;  %v797_v10 = vmul.f32 %v2100_v3, %v2386_v0 }
 0x1fd   : > { %2103 = vrcp.f32 %v762_v1  ;;  %v2102_v4 = vpop.eup %2101 }
 0x1fe   : > { %2105 = vrcp.f32 %v750_v2  ;;  %v791_v52 = vmul.f32 %v2102_v4, %v2382_v59 }
 0x203   : > { %v2104_v5 = vpop.eup %2103 }
 0x204   : > { %v2106_v8 = vpop.eup %2105  ;;  %v764_v9 = vpop.xlane.xlu0 %763  ;;  %v798_v47 = vmul.f32 %v2104_v5, %v2393_v7 }
 0x205   : > { %v792_v11 = vmul.f32 %v2106_v8, %v2391_v6  ;;  %v752_v14 = vpop.xlane.xlu2 %751 }
 0x206   : > { %v811_v12 = vpack.c.bf16 %v798_v47, %v797_v10  ;;  %2107 = vrcp.f32 %v752_v14 }
 0x207   : > { %v808_v13 = vpack.c.bf16 %v792_v11, %v791_v52  ;;  %2109 = vrcp.f32 %v764_v9 }
 0x208   : > { %895 = vmatmul.bf16.vlgmr.msra.gmra.mxu3 %v811_v12 }
 0x209   : > { %880 = vmatmul.bf16.gmra.mxu1 %v808_v13 }
 0x20c   : > { %v754_v17 = vpop.xlane.xlu0 %753  ;;  %v2108_v19 = vpop.eup %2107 }
 0x20d   : > { %2111 = vrcp.f32 %v754_v17  ;;  %v766_v18 = vpop.xlane.xlu1 %765  ;;  %v2110_v20 = vpop.eup %2109  ;;  %v793_v7 = vmul.f32 %v2108_v19, %v2401_v15 }
 0x20e   : > { %2113 = vrcp.f32 %v766_v18  ;;  %v799_v6 = vmul.f32 %v2110_v20, %v2403_v16 }
 0x213   : > { %v2112_v0 = vpop.eup %2111 }
 0x214   : > { %v2114_v21 = vpop.eup %2113  ;;  %v794_v59 = vmul.f32 %v2112_v0, %v2409_v22 }
 0x215   : > { %v800_v23 = vmul.f32 %v2114_v21, %v2411_v24  ;;  %v768_v28 = vpop.xlane.xlu1 %767 }
 0x216   : > { %v809_v25 = vpack.c.bf16 %v794_v59, %v793_v7  ;;  %2115 = vrcp.f32 %v768_v28 }
 0x217   : > { %v812_v26 = vpack.c.bf16 %v800_v23, %v799_v6 }
 0x219   : > { %885 = vmatmul.bf16.gmra.mxu1 %v809_v25  ;;  %900 = vmatmul.bf16.gmra.mxu3 %v812_v26 }
 0x21c   : > { %v2116_v33 = vpop.eup %2115 }
 0x21d   : > { %v758_v32 = vpop.xlane.xlu1 %757  ;;  %v801_v22 = vmul.f32 %v2116_v33, %v2416_v27 }
 0x255   : > { %v770_v30 = vpop.xlane.xlu2 %769 }
 0x256   : > { %2117 = vrcp.f32 %v770_v30 }
 0x257   : > { %2119 = vrcp.f32 %v758_v32 }
 0x25c   : > { %v2118_v31 = vpop.eup %2117 }
 0x25d   : > { %v756_v15 = vpop.xlane.xlu0 %755  ;;  %v802_v16 = vmul.f32 %v2118_v31, %v2431_v55  ;;  %v2120_v36 = vpop.eup %2119 }
 0x25e   : > { %2121 = vrcp.f32 %v756_v15  ;;  %v796_v39 = vmul.f32 %v2120_v36, %v2419_v29 }
 0x25f   : > { %v871_v24 = vpop.f32.mrf.mxu1  ;;  %v813_v34 = vpack.c.bf16 %v802_v16, %v801_v22 }
 0x260   : > { %v911_v35 = vpack.c.bf16 %v871_v24, %v871_v24 }
 0x261   : > { %905 = vmatmul.bf16.gmra.mxu3 %v813_v34 }
 0x262   : > { %931 = vst.msk [vmem:[%s2450_s30] sm:$0xf] %vm930_vm2, %v911_v35 }
 0x264   : > { %v2122_v38 = vpop.eup %2121 }
 0x265   : > { %v795_v27 = vmul.f32 %v2122_v38, %v2434_v44 }
 0x267   : > { %v873_v40 = vpop.f32.mrf.mxu1  ;;  %v810_v41 = vpack.c.bf16 %v796_v39, %v795_v27 }
 0x268   : > { %v912_v43 = vpack.c.bf16 %v873_v40, %v873_v40 }
 0x269   : > { %890 = vmatmul.bf16.gmra.mxu1 %v810_v41 }
 0x26a   : > { %932 = vst.msk [vmem:[%s2450_s30 + $0x4] sm:$0xf] %vm930_vm2, %v912_v43 }
 0x26f   : > { %v876_v45 = vpop.f32.mrf.mxu1 }
 0x270   : > { %v913_v46 = vpack.c.bf16 %v876_v45, %v876_v45 }
 0x272   : > { %933 = vst.msk [vmem:[%s2450_s30 + $0x8] sm:$0xf] %vm930_vm2, %v913_v46 }
 0x277   : > { %v878_v48 = vpop.f32.mrf.mxu1 }
 0x278   : > { %v914_v50 = vpack.c.bf16 %v878_v48, %v878_v48 }
 0x27a   : > { %934 = vst.msk [vmem:[%s2450_s30 + $0xc] sm:$0xf] %vm930_vm2, %v914_v50 }
 0x286   : > { %v881_v51 = vpop.f32.mrf.mxu1 }
 0x287   : > { %v915_v29 = vpack.c.bf16 %v881_v51, %v881_v51 }
 0x289   : > { %935 = vst.msk [vmem:[%s2450_s30 + $0x10] sm:$0xf] %vm930_vm2, %v915_v29 }
 0x28b   : > { %v896_v53 = vpop.f32.mrf.mxu3 }
 0x28c   : > { %v921_v54 = vpack.c.bf16 %v896_v53, %v896_v53 }
 0x28e   : > { %941 = vst.msk [vmem:[%s2450_s30 + $0x28] sm:$0xf] %vm930_vm2, %v921_v54  ;;  %v883_v55 = vpop.f32.mrf.mxu1 }
 0x28f   : > { %v916_v56 = vpack.c.bf16 %v883_v55, %v883_v55 }
 0x291   : > { %936 = vst.msk [vmem:[%s2450_s30 + $0x14] sm:$0xf] %vm930_vm2, %v916_v56 }
 0x293   : > { %v898_v57 = vpop.f32.mrf.mxu3 }
 0x294   : > { %v922_v37 = vpack.c.bf16 %v898_v57, %v898_v57 }
 0x296   : > { %942 = vst.msk [vmem:[%s2450_s30 + $0x2c] sm:$0xf] %vm930_vm2, %v922_v37  ;;  %v886_v44 = vpop.f32.mrf.mxu1 }
 0x297   : > { %v917_v58 = vpack.c.bf16 %v886_v44, %v886_v44 }
 0x299   : > { %937 = vst.msk [vmem:[%s2450_s30 + $0x18] sm:$0xf] %vm930_vm2, %v917_v58 }
 0x29c   : > { %v901_v42 = vpop.f32.mrf.mxu3 }
 0x29d   : > { %v923_v49 = vpack.c.bf16 %v901_v42, %v901_v42 }
 0x29e   : > { %v888_v60 = vpop.f32.mrf.mxu1 }
 0x29f   : > { %943 = vst.msk [vmem:[%s2450_s30 + $0x30] sm:$0xf] %vm930_vm2, %v923_v49  ;;  %v918_v61 = vpack.c.bf16 %v888_v60, %v888_v60 }
 0x2a1   : > { %938 = vst.msk [vmem:[%s2450_s30 + $0x1c] sm:$0xf] %vm930_vm2, %v918_v61 }
 0x2a4   : > { %v903_v62 = vpop.f32.mrf.mxu3 }
 0x2a5   : > { %v924_v63 = vpack.c.bf16 %v903_v62, %v903_v62 }
 0x2a7   : > { %944 = vst.msk [vmem:[%s2450_s30 + $0x34] sm:$0xf] %vm930_vm2, %v924_v63 }
 0x2e4   : > { %v906_v1 = vpop.f32.mrf.mxu3 }
 0x2e5   : > { %v925_v2 = vpack.c.bf16 %v906_v1, %v906_v1 }
 0x2e6   : > { %v891_v3 = vpop.f32.mrf.mxu1 }
 0x2e7   : > { %945 = vst.msk [vmem:[%s2450_s30 + $0x38] sm:$0xf] %vm930_vm2, %v925_v2  ;;  %v919_v4 = vpack.c.bf16 %v891_v3, %v891_v3 }
 0x2e9   : > { %939 = vst.msk [vmem:[%s2450_s30 + $0x20] sm:$0xf] %vm930_vm2, %v919_v4 }
 0x2ec   : > { %v908_v5 = vpop.f32.mrf.mxu3 }
 0x2ed   : > { %v926_v8 = vpack.c.bf16 %v908_v5, %v908_v5  ;;  %950 = sbr.rel (%p1737_p8) target bundleno = 1074 (0x432), region = 52 }
 0x2ee   : > { %v893_v9 = vpop.f32.mrf.mxu1 }
 0x2ef   : > { %946 = vst.msk [vmem:[%s2450_s30 + $0x3c] sm:$0xf] %vm930_vm2, %v926_v8  ;;  %v920_v10 = vpack.c.bf16 %v893_v9, %v893_v9 }
 0x2f1   : > { %940 = vst.msk [vmem:[%s2450_s30 + $0x24] sm:$0xf] %vm930_vm2, %v920_v10 }
 0x2f2   : > { %v1946_v7 = vld [vmem:[%s2648_s4 + $0x18] sm:$0xff]  ;;  %v1945_v23 = vld [vmem:[%s2648_s4 + $0x10] sm:$0xff]  ;;  %v1944_v26 = vld [vmem:[%s2648_s4 + $0x8] sm:$0xff]  ;;  %vm1250_vm3 = vcmask 261120   ;;  %vm1267_vm4 = vcmask 392192   ;;  %vm1316_vm5 = vcmask 523264  }
 0x2f3   : > { %2003 = vmatpush.bf16.msra.mxu2 %v1946_v7  ;;  %2004 = vmatpush.bf16.msra.mxu3 %v1946_v7  ;;  %v1943_v34 = vld [vmem:[%s2648_s4] sm:$0xff] }
 0x2f4   : > { %1337 = vmatpush.bf16.msra.mxu0 %v1946_v7  ;;  %2002 = vmatpush.bf16.msra.mxu1 %v1946_v7 }
 0x2f7   : > { %2006 = vmatpush.bf16.msra.mxu2 %v1945_v23  ;;  %2007 = vmatpush.bf16.msra.mxu3 %v1945_v23 }
 0x2f8   : > { %v1931_v47 = vld [vmem:[#allocation2 + $0xa0] sm:$0xff]  ;;  %v1933_v12 = vld [vmem:[#allocation2 + $0xb0] sm:$0xff]  ;;  %v1926_v59 = vld [vmem:[#allocation2 + $0x78] sm:$0xff]  ;;  %1338 = vmatpush.bf16.msra.mxu0 %v1945_v23  ;;  %2005 = vmatpush.bf16.msra.mxu1 %v1945_v23 }
 0x2f9   : > { %v1923_v52 = vld [vmem:[#allocation2 + $0x60] sm:$0xff]  ;;  %1162 = vrot.lane.b32.xlu1 %v1931_v47, %s2165_s15  ;;  %v1925_v13 = vld [vmem:[#allocation2 + $0x70] sm:$0xff]  ;;  %v1924_v6 = vld [vmem:[#allocation2 + $0x68] sm:$0xff] }
 0x2fa   : > { %1106 = vrot.lane.b32.xlu0 %v1923_v52, %s2166_s16  ;;  %v1939_v11 = vld [vmem:[#allocation2 + $0xe0] sm:$0xff]  ;;  %v1941_v14 = vld [vmem:[#allocation2 + $0xf0] sm:$0xff]  ;;  %v1932_v25 = vld [vmem:[#allocation2 + $0xa8] sm:$0xff] }
 0x2fb   : > { %1218 = vrot.lane.b32.xlu2 %v1939_v11, %s2167_s17  ;;  %v1921_v17 = vld [vmem:[#allocation2 + $0x50] sm:$0xff]  ;;  %v1919_v18 = vld [vmem:[#allocation2 + $0x40] sm:$0xff]  ;;  %v1940_v28 = vld [vmem:[#allocation2 + $0xe8] sm:$0xff]  ;;  %2009 = vmatpush.bf16.msra.mxu2 %v1944_v26 }
 0x2fc   : > { %v1927_v19 = vld [vmem:[#allocation2 + $0x80] sm:$0xff]  ;;  %v1929_v0 = vld [vmem:[#allocation2 + $0x90] sm:$0xff]  ;;  %v1934_v30 = vld [vmem:[#allocation2 + $0xb8] sm:$0xff]  ;;  %2010 = vmatpush.bf16.msra.mxu3 %v1944_v26  ;;  %1339 = vmatpush.bf16.msra.mxu0 %v1944_v26 }
 0x2fd   : > { %v1935_v20 = vld [vmem:[#allocation2 + $0xc0] sm:$0xff]  ;;  %v1937_v21 = vld [vmem:[#allocation2 + $0xd0] sm:$0xff]  ;;  %v1942_v32 = vld [vmem:[#allocation2 + $0xf8] sm:$0xff]  ;;  %2008 = vmatpush.bf16.msra.mxu1 %v1944_v26 }
 0x2fe   : > { %v1922_v33 = vld [vmem:[#allocation2 + $0x58] sm:$0xff]  ;;  %v1920_v31 = vld [vmem:[#allocation2 + $0x48] sm:$0xff]  ;;  %v1915_v38 = vld [vmem:[#allocation2 + $0x20] sm:$0xff] }
 0x2ff   : > { %v1928_v15 = vld [vmem:[#allocation2 + $0x88] sm:$0xff]  ;;  %v1930_v16 = vld [vmem:[#allocation2 + $0x98] sm:$0xff]  ;;  %2012 = vmatpush.bf16.msra.mxu2 %v1943_v34  ;;  %v1917_v45 = vld [vmem:[#allocation2 + $0x30] sm:$0xff] }
 0x300   : > { %v1936_v22 = vld [vmem:[#allocation2 + $0xc8] sm:$0xff]  ;;  %v1938_v24 = vld [vmem:[#allocation2 + $0xd8] sm:$0xff]  ;;  %2013 = vmatpush.bf16.msra.mxu3 %v1943_v34  ;;  %1340 = vmatpush.bf16.msra.mxu0 %v1943_v34  ;;  %v1911_v57 = vld [vmem:[#allocation2] sm:$0xff] }
 0x301   : > { %1166 = vrot.lane.b32.xlu1 %v1933_v12, %s2165_s15  ;;  %2011 = vmatpush.bf16.msra.mxu1 %v1943_v34  ;;  %v1913_v37 = vld [vmem:[#allocation2 + $0x10] sm:$0xff]  ;;  %v1916_v4 = vld [vmem:[#allocation2 + $0x28] sm:$0xff]  ;;  %v1918_v8 = vld [vmem:[#allocation2 + $0x38] sm:$0xff] }
 0x302   : > { %1110 = vrot.lane.b32.xlu0 %v1925_v13, %s2166_s16 }
 0x303   : > { %1222 = vrot.lane.b32.xlu2 %v1941_v14, %s2167_s17 }
 0x309   : > { %1102 = vrot.lane.b32.xlu1 %v1921_v17, %s2166_s16 }
 0x30a   : > { %1098 = vrot.lane.b32.xlu0 %v1919_v18, %s2166_s16 }
 0x30b   : > { %1154 = vrot.lane.b32.xlu2 %v1927_v19, %s2165_s15 }
 0x311   : > { %1210 = vrot.lane.b32.xlu1 %v1935_v20, %s2167_s17  ;;  %v1912_v20 = vld [vmem:[#allocation2 + $0x8] sm:$0xff] }
 0x312   : > { %1158 = vrot.lane.b32.xlu0 %v1929_v0, %s2165_s15  ;;  %v1914_v0 = vld [vmem:[#allocation2 + $0x18] sm:$0xff] }
 0x313   : > { %1214 = vrot.lane.b32.xlu2 %v1937_v21, %s2167_s17 }
 0x319   : > { %1112 = vrot.lane.b32.xlu1 %v1926_v59, %s2166_s16 }
 0x31a   : > { %1108 = vrot.lane.b32.xlu0 %v1924_v6, %s2166_s16 }
 0x31b   : > { %1164 = vrot.lane.b32.xlu2 %v1932_v25, %s2165_s15 }
 0x321   : > { %1220 = vrot.lane.b32.xlu1 %v1940_v28, %s2167_s17 }
 0x322   : > { %1168 = vrot.lane.b32.xlu0 %v1934_v30, %s2165_s15 }
 0x323   : > { %1224 = vrot.lane.b32.xlu2 %v1942_v32, %s2167_s17  ;;  %v1390_v32 = vld [vmem:[%s2249_s14 + $0x40] sm:$0xff] }
 0x329   : > { %1104 = vrot.lane.b32.xlu1 %v1922_v33, %s2166_s16  ;;  %v2559_v33 = vld [vmem:[%s2649_s5] ss:$0 sm:$0xff] }
 0x32a   : > { %1100 = vrot.lane.b32.xlu0 %v1920_v31, %s2166_s16 }
 0x32b   : > { %1156 = vrot.lane.b32.xlu2 %v1928_v15, %s2165_s15 }
 0x331   : > { %1212 = vrot.lane.b32.xlu1 %v1936_v22, %s2167_s17 }
 0x332   : > { %1160 = vrot.lane.b32.xlu0 %v1930_v16, %s2165_s15  ;;  %v1391_v16 = vld [vmem:[%s2249_s14 + $0x48] sm:$0xff] }
 0x333   : > { %1216 = vrot.lane.b32.xlu2 %v1938_v24, %s2167_s17  ;;  %v1394_v24 = vld [vmem:[%s2249_s14 + $0x60] sm:$0xff] }
 0x355   : > { %v1219_v35 = vpop.permute.xlu2 %1218 }
 0x35d   : > { %v1223_v36 = vpop.permute.xlu2 %1222 }
 0x365   : > { %v1155_v46 = vpop.permute.xlu2 %1154 }
 0x36b   : > { %v1163_v27 = vpop.permute.xlu1 %1162 }
 0x36c   : > { %v1107_v39 = vpop.permute.xlu0 %1106 }
 0x36d   : > { %v1240_v40 = vsel %vm542_vm0, %v1915_v38, %v1107_v39  ;;  %v1215_v54 = vpop.permute.xlu2 %1214 }
 0x36e   : > { %v1260_v41 = vsel %vm1250_vm3, %v1240_v40, %v1163_v27  ;;  %v1382_v40 = vld [vmem:[%s2249_s14] sm:$0xff] }
 0x36f   : > { %v1277_v43 = vsel %vm1267_vm4, %v1260_v41, %v1219_v35  ;;  %v1395_v41 = vld [vmem:[%s2249_s14 + $0x68] sm:$0xff] }
 0x370   : > { %1886 = vmatmul.msk.bf16.vlgmr.msra.gmra.mxu2 %vm1316_vm5, %v1277_v43  ;;  %v1386_v43 = vld [vmem:[%s2249_s14 + $0x20] sm:$0xff] }
 0x373   : > { %v1167_v48 = vpop.permute.xlu1 %1166 }
 0x374   : > { %v1111_v50 = vpop.permute.xlu0 %1110 }
 0x375   : > { %v1246_v51 = vsel %vm542_vm0, %v1917_v45, %v1111_v50  ;;  %v1165_v63 = vpop.permute.xlu2 %1164 }
 0x376   : > { %v1264_v29 = vsel %vm1250_vm3, %v1246_v51, %v1167_v48 }
 0x377   : > { %v1281_v53 = vsel %vm1267_vm4, %v1264_v29, %v1223_v36 }
 0x378   : > { %1888 = vmatmul.msk.bf16.vlgmr.msra.gmra.mxu3 %vm1316_vm5, %v1281_v53 }
 0x37b   : > { %v1103_v55 = vpop.permute.xlu1 %1102 }
 0x37c   : > { %v1099_v56 = vpop.permute.xlu0 %1098  ;;  %v1234_v58 = vsel %vm542_vm0, %v1913_v37, %v1103_v55 }
 0x37d   : > { %v1228_v44 = vsel %vm542_vm0, %v1911_v57, %v1099_v56  ;;  %v1225_v5 = vpop.permute.xlu2 %1224  ;;  %v1383_v56 = vld [vmem:[%s2249_s14 + $0x8] sm:$0xff] }
 0x37e   : > { %v1252_v42 = vsel %vm1250_vm3, %v1228_v44, %v1155_v46  ;;  %v1387_v57 = vld [vmem:[%s2249_s14 + $0x28] sm:$0xff] }
 0x383   : > { %v1211_v49 = vpop.permute.xlu1 %1210 }
 0x384   : > { %v1159_v60 = vpop.permute.xlu0 %1158  ;;  %v1269_v62 = vsel %vm1267_vm4, %v1252_v42, %v1211_v49 }
 0x385   : > { %v1256_v61 = vsel %vm1250_vm3, %v1234_v58, %v1159_v60  ;;  %1882 = vmatmul.msk.bf16.vlgmr.msra.gmra.mxu0 %vm1316_vm5, %v1269_v62  ;;  %v1157_v17 = vpop.permute.xlu2 %1156 }
 0x386   : > { %v1273_v1 = vsel %vm1267_vm4, %v1256_v61, %v1215_v54  ;;  %v1450_v61 = vld [vmem:[#allocation3] sm:$0x1] }
 0x387   : > { %1884 = vmatmul.msk.bf16.vlgmr.msra.gmra.mxu1 %vm1316_vm5, %v1273_v1  ;;  %v1451_v62 = vmul.f32 0.25, %v1450_v61  ;;  %v1396_v1 = vld [vmem:[%s2249_s14 + $0x70] sm:$0xff] }
 0x389   : > { %1452 = vst [vmem:[%s407_s22] sm:$0x1] %v1451_v62 }
 0x38b   : > { %v1113_v2 = vpop.permute.xlu1 %1112 }
 0x38c   : > { %v1109_v3 = vpop.permute.xlu0 %1108  ;;  %v1249_v10 = vsel %vm542_vm0, %v1918_v8, %v1113_v2 }
 0x38d   : > { %v1243_v9 = vsel %vm542_vm0, %v1916_v4, %v1109_v3  ;;  %v1217_v7 = vpop.permute.xlu2 %1216 }
 0x38e   : > { %v1262_v47 = vsel %vm1250_vm3, %v1243_v9, %v1165_v63  ;;  %v1392_v63 = vld [vmem:[%s2249_s14 + $0x50] sm:$0xff] }
 0x393   : > { %v1221_v52 = vpop.permute.xlu1 %1220 }
 0x394   : > { %v1169_v11 = vpop.permute.xlu0 %1168  ;;  %v1279_v13 = vsel %vm1267_vm4, %v1262_v47, %v1221_v52  ;;  %v1397_v47 = vld [vmem:[%s2249_s14 + $0x78] sm:$0xff] }
 0x395   : > { %v1266_v12 = vsel %vm1250_vm3, %v1249_v10, %v1169_v11  ;;  %1887 = vmatmul.msk.bf16.gmra.mxu2 %vm1316_vm5, %v1279_v13  ;;  %v1393_v10 = vld [vmem:[%s2249_s14 + $0x58] sm:$0xff]  ;;  %v1384_v11 = vld [vmem:[%s2249_s14 + $0x10] sm:$0xff] }
 0x396   : > { %v1283_v14 = vsel %vm1267_vm4, %v1266_v12, %v1225_v5 }
 0x397   : > { %1889 = vmatmul.msk.bf16.gmra.mxu3 %vm1316_vm5, %v1283_v14  ;;  %v1388_v14 = vld [vmem:[%s2249_s14 + $0x30] sm:$0xff] }
 0x39b   : > { %v1105_v18 = vpop.permute.xlu1 %1104 }
 0x39c   : > { %v1101_v19 = vpop.permute.xlu0 %1100  ;;  %v1237_v59 = vsel %vm542_vm0, %v1914_v0, %v1105_v18 }
 0x39d   : > { %v1231_v21 = vsel %vm542_vm0, %v1912_v20, %v1101_v19 }
 0x39e   : > { %v1254_v6 = vsel %vm1250_vm3, %v1231_v21, %v1157_v17 }
 0x3a3   : > { %v1213_v23 = vpop.permute.xlu1 %1212 }
 0x3a4   : > { %v1161_v25 = vpop.permute.xlu0 %1160  ;;  %v1271_v28 = vsel %vm1267_vm4, %v1254_v6, %v1213_v23  ;;  %v1385_v23 = vld [vmem:[%s2249_s14 + $0x18] sm:$0xff] }
 0x3a5   : > { %v1258_v26 = vsel %vm1250_vm3, %v1237_v59, %v1161_v25  ;;  %1883 = vmatmul.msk.bf16.gmra.mxu0 %vm1316_vm5, %v1271_v28  ;;  %v1389_v25 = vld [vmem:[%s2249_s14 + $0x38] sm:$0xff] }
 0x3a6   : > { %v1275_v30 = vsel %vm1267_vm4, %v1258_v26, %v1217_v7 }
 0x3a7   : > { %1885 = vmatmul.msk.bf16.gmra.mxu1 %vm1316_vm5, %v1275_v30 }
 0x3f3   : > { %v1362_v31 = vpop.f32.mrf.mxu2 }
 0x3f4   : > { %v1406_v15 = vadd.f32 %v1390_v32, %v1362_v31 }
 0x3f6   : > { %v1426_v22 = vadd.f32 %v2559_v33, %v1406_v15 }
 0x3f8   : > { %1442 = vst.msk [vmem:[%s2254_s18 + $0x40] sm:$0xff] %vm1316_vm5, %v1426_v22 }
 0x3fb   : > { %v1364_v34 = vpop.f32.mrf.mxu2  ;;  %v1372_v35 = vpop.f32.mrf.mxu3 }
 0x3fc   : > { %v1407_v36 = vadd.f32 %v1391_v16, %v1364_v34  ;;  %v1410_v38 = vadd.f32 %v1394_v24, %v1372_v35 }
 0x3fe   : > { %v1427_v27 = vadd.f32 %v2559_v33, %v1407_v36  ;;  %v1430_v39 = vadd.f32 %v2559_v33, %v1410_v38 }
 0x400   : > { %1443 = vst.msk [vmem:[%s2254_s18 + $0x48] sm:$0xff] %vm1316_vm5, %v1427_v27 }
 0x401   : > { %1446 = vst.msk [vmem:[%s2254_s18 + $0x60] sm:$0xff] %vm1316_vm5, %v1430_v39 }
 0x402   : > { %v1342_v45 = vpop.f32.mrf.mxu0 }
 0x403   : > { %v1374_v46 = vpop.f32.mrf.mxu3  ;;  %v1398_v48 = vadd.f32 %v1382_v40, %v1342_v45 }
 0x404   : > { %v1411_v50 = vadd.f32 %v1395_v41, %v1374_v46  ;;  %v1352_v51 = vpop.f32.mrf.mxu1 }
 0x405   : > { %v1402_v29 = vadd.f32 %v1386_v43, %v1352_v51  ;;  %v1418_v53 = vadd.f32 %v2559_v33, %v1398_v48 }
 0x406   : > { %v1431_v54 = vadd.f32 %v2559_v33, %v1411_v50 }
 0x407   : > { %v1422_v55 = vadd.f32 %v2559_v33, %v1402_v29  ;;  %1434 = vst.msk [vmem:[%s2254_s18] sm:$0xff] %vm1316_vm5, %v1418_v53 }
 0x408   : > { %1447 = vst.msk [vmem:[%s2254_s18 + $0x68] sm:$0xff] %vm1316_vm5, %v1431_v54 }
 0x409   : > { %1438 = vst.msk [vmem:[%s2254_s18 + $0x20] sm:$0xff] %vm1316_vm5, %v1422_v55 }
 0x40a   : > { %v1344_v37 = vpop.f32.mrf.mxu0 }
 0x40b   : > { %v1399_v44 = vadd.f32 %v1383_v56, %v1344_v37 }
 0x40c   : > { %v1354_v58 = vpop.f32.mrf.mxu1 }
 0x40d   : > { %v1403_v42 = vadd.f32 %v1387_v57, %v1354_v58  ;;  %v1419_v49 = vadd.f32 %v2559_v33, %v1399_v44 }
 0x40f   : > { %v1423_v60 = vadd.f32 %v2559_v33, %v1403_v42  ;;  %1435 = vst.msk [vmem:[%s2254_s18 + $0x8] sm:$0xff] %vm1316_vm5, %v1419_v49 }
 0x411   : > { %1439 = vst.msk [vmem:[%s2254_s18 + $0x28] sm:$0xff] %vm1316_vm5, %v1423_v60 }
 0x418   : > { %v1367_v2 = vpop.f32.mrf.mxu2 }
 0x419   : > { %v1408_v3 = vadd.f32 %v1392_v63, %v1367_v2 }
 0x41a   : > { %v1377_v4 = vpop.f32.mrf.mxu3 }
 0x41b   : > { %v1412_v5 = vadd.f32 %v1396_v1, %v1377_v4  ;;  %v1428_v8 = vadd.f32 %v2559_v33, %v1408_v3 }
 0x41d   : > { %v1432_v9 = vadd.f32 %v2559_v33, %v1412_v5  ;;  %1444 = vst.msk [vmem:[%s2254_s18 + $0x50] sm:$0xff] %vm1316_vm5, %v1428_v8 }
 0x41f   : > { %1448 = vst.msk [vmem:[%s2254_s18 + $0x70] sm:$0xff] %vm1316_vm5, %v1432_v9 }
 0x420   : > { %v1369_v52 = vpop.f32.mrf.mxu2 }
 0x421   : > { %v1409_v12 = vadd.f32 %v1393_v10, %v1369_v52 }
 0x422   : > { %v1379_v13 = vpop.f32.mrf.mxu3  ;;  %v1347_v18 = vpop.f32.mrf.mxu0 }
 0x423   : > { %v1413_v17 = vadd.f32 %v1397_v47, %v1379_v13  ;;  %v1429_v19 = vadd.f32 %v2559_v33, %v1409_v12  ;;  %v1400_v20 = vadd.f32 %v1384_v11, %v1347_v18 }
 0x424   : > { %v1357_v0 = vpop.f32.mrf.mxu1 }
 0x425   : > { %v1433_v21 = vadd.f32 %v2559_v33, %v1413_v17  ;;  %v1404_v7 = vadd.f32 %v1388_v14, %v1357_v0  ;;  %1445 = vst.msk [vmem:[%s2254_s18 + $0x58] sm:$0xff] %vm1316_vm5, %v1429_v19  ;;  %v1420_v59 = vadd.f32 %v2559_v33, %v1400_v20 }
 0x427   : > { %1449 = vst.msk [vmem:[%s2254_s18 + $0x78] sm:$0xff] %vm1316_vm5, %v1433_v21  ;;  %v1424_v6 = vadd.f32 %v2559_v33, %v1404_v7 }
 0x428   : > { %1436 = vst.msk [vmem:[%s2254_s18 + $0x10] sm:$0xff] %vm1316_vm5, %v1420_v59 }
 0x429   : > { %1440 = vst.msk [vmem:[%s2254_s18 + $0x30] sm:$0xff] %vm1316_vm5, %v1424_v6 }
 0x42a   : > { %v1349_v26 = vpop.f32.mrf.mxu0 }
 0x42b   : > { %v1401_v28 = vadd.f32 %v1385_v23, %v1349_v26 }
 0x42c   : > { %v1359_v30 = vpop.f32.mrf.mxu1 }
 0x42d   : > { %v1405_v32 = vadd.f32 %v1389_v25, %v1359_v30  ;;  %v1421_v31 = vadd.f32 %v2559_v33, %v1401_v28 }
 0x42f   : > { %v1425_v15 = vadd.f32 %v2559_v33, %v1405_v32  ;;  %1437 = vst.msk [vmem:[%s2254_s18 + $0x18] sm:$0xff] %vm1316_vm5, %v1421_v31 }
 0x431   : > { %1441 = vst.msk [vmem:[%s2254_s18 + $0x38] sm:$0xff] %vm1316_vm5, %v1425_v15 }
 0x432 PF: > { %s18_s28 = sadd.s32 1, %s2162_s28   ;;  %s2654_s14 = sld [smem:[#allocation4_spill]] }
 0x433   : > { %p15_p9 = scmp.ge.s32.totalorder %s18_s28, 10   ;;  %s2655_s22 = sld [smem:[#allocation5_spill]] }
 0x434   : > { %s2656_s24 = smov %s2154_s26  ;;  %s2657_s25 = smov %s2158_s27 }
 0x435   :  { %17 = sbr.rel (!%p15_p9) target bundleno = 3 (0x3), region = 107 }
 0x438   : > { %s2658_s26 = smov %s2654_s14 }
 0x439   : > { %s2659_s27 = smov %s2655_s22 }

// kernel: transformer_drop_forward.8
= control target key start
LH: loop header
LB: loop body
LE: loop exit
PB: predicated region body
PF: predicated region fallthrough
CT: control target
= control target key end

     0   :  { %vm31_vm0 = vcmask 523264   ;;  %vm34_vm1 = vcmask 519168   ;;  %v743_v6 = vmov 64.0   ;;  %vm131_vm12 = vcmask 517120   ;;  %s1040_s0 = inlined_call_operand.vmem [shape: f32[20,64], index: 0, kind: input, shape index: {}]   ;;  %s1041_s1 = inlined_call_operand.vmem [shape: f32[1,64], index: 1, kind: input, shape index: {}]   ;;  %s1042_s2 = inlined_call_operand.vmem [shape: f32[1,64], index: 2, kind: input, shape index: {}]   ;;  %s1043_s3 = inlined_call_operand.vmem [shape: bf16[64,256], index: 3, kind: input, shape index: {}]   ;;  %s1044_s5 = inlined_call_operand.vmem [shape: bf16[256,64], index: 5, kind: input, shape index: {}]   ;;  %s1045_s4 = inlined_call_operand.vmem [shape: f32[1,256], index: 4, kind: input, shape index: {}]   ;;  %s1046_s6 = inlined_call_operand.vmem [shape: f32[1,64], index: 6, kind: input, shape index: {}]   ;;  %s1047_s7 = inlined_call_operand.vmem [shape: f32[20,64], index: 7, kind: output, shape index: {}]  }
   0x1   :  { %v788_v0 = vld [vmem:[%s1040_s0] sm:$0xff]  ;;  %v38_v2 = vld [vmem:[%s1040_s0 + $0x10] sm:$0xf]  ;;  %v799_v4 = vld [vmem:[%s1040_s0 + $0x8] sm:$0xff]  ;;  %711 = vrcp.f32 %v743_v6 }
   0x2   :  { %v39_v1 = vsel %vm31_vm0, %v788_v0, 0.0  ;;  %v45_v3 = vsel %vm34_vm1, %v38_v2, 0.0  ;;  %v42_v5 = vsel %vm31_vm0, %v799_v4, 0.0  ;;  %v601_v28 = vld [vmem:[%s1043_s3 + $0x30] sm:$0xf] }
   0x3   :  { %40 = vadd.xlane.f32.xlu0 %v39_v1  ;;  %46 = vadd.xlane.f32.xlu1 %v45_v3  ;;  %v689_v29 = vld [vmem:[%s1043_s3 + $0x34] sm:$0xf0]  ;;  %v688_v30 = vld [vmem:[%s1043_s3 + $0x34] sm:$0xf]  ;;  %v603_v32 = vld [vmem:[%s1043_s3 + $0x38] sm:$0xf0] }
   0x4   :  { %v602_v31 = vor.u32 %v689_v29, %v601_v28  ;;  %v606_v34 = vor.u32 %v688_v30, %v603_v32  ;;  %v593_v36 = vld [vmem:[%s1043_s3 + $0x20] sm:$0xf]  ;;  %v687_v37 = vld [vmem:[%s1043_s3 + $0x24] sm:$0xf0]  ;;  %v686_v38 = vld [vmem:[%s1043_s3 + $0x24] sm:$0xf] }
   0x5   :  { %v594_v40 = vor.u32 %v687_v37, %v593_v36  ;;  %v595_v41 = vld [vmem:[%s1043_s3 + $0x28] sm:$0xf0]  ;;  %v585_v43 = vld [vmem:[%s1043_s3 + $0x10] sm:$0xf]  ;;  %v685_v44 = vld [vmem:[%s1043_s3 + $0x14] sm:$0xf0] }
   0x6   :  { %209 = vmatpush.bf16.msra.mxu0 %v602_v31  ;;  %227 = vmatpush.bf16.msra.mxu1 %v606_v34  ;;  %v598_v42 = vor.u32 %v686_v38, %v595_v41  ;;  %v684_v45 = vld [vmem:[%s1043_s3 + $0x14] sm:$0xf]  ;;  %v586_v46 = vor.u32 %v685_v44, %v585_v43  ;;  %v587_v47 = vld [vmem:[%s1043_s3 + $0x18] sm:$0xf0]  ;;  %v577_v51 = vld [vmem:[%s1043_s3] sm:$0xf] }
   0x7   :  { %v712_v7 = vpop.eup %711  ;;  %v590_v49 = vor.u32 %v684_v45, %v587_v47  ;;  %v683_v52 = vld [vmem:[%s1043_s3 + $0x4] sm:$0xf0]  ;;  %v682_v53 = vld [vmem:[%s1043_s3 + $0x4] sm:$0xf]  ;;  %v579_v57 = vld [vmem:[%s1043_s3 + $0x8] sm:$0xf0] }
   0x8   :  { %v49_v8 = vmul.f32 64.0, %v712_v7  ;;  %vm53_vm2 = vweird.f32 %v712_v7  ;;  %v578_v56 = vor.u32 %v683_v52, %v577_v51  ;;  %v582_v59 = vor.u32 %v682_v53, %v579_v57  ;;  %v704_v41 = vld [vmem:[%s1044_s5 + $0x70] sm:$0xff]  ;;  %v695_v43 = vld [vmem:[%s1044_s5 + $0x28] sm:$0xff]  ;;  %v694_v47 = vld [vmem:[%s1044_s5 + $0x20] sm:$0xff] }
   0x9   :  { %v703_v44 = vld [vmem:[%s1044_s5 + $0x68] sm:$0xff]  ;;  %v693_v53 = vld [vmem:[%s1044_s5 + $0x18] sm:$0xff] }
   0xa   :  { %v50_v9 = vsub.f32 1.0, %v49_v8  ;;  %210 = vmatpush.bf16.msra.mxu0 %v594_v40  ;;  %228 = vmatpush.bf16.msra.mxu1 %v598_v42  ;;  %v696_v40 = vld [vmem:[%s1044_s5 + $0x30] sm:$0xff]  ;;  %v144_v42 = vld [vmem:[%s1045_s4] sm:$0x3] }
   0xb   :  { %43 = vadd.xlane.f32.xlu0 %v42_v5  ;;  %v146_v45 = vperm.slane %v144_v42, 0 }
   0xc   :  { %v51_v10 = vmul.f32 %v712_v7, %v50_v9 }
   0xe   :  { %v52_v11 = vadd.f32 %v712_v7, %v51_v10  ;;  %211 = vmatpush.bf16.msra.mxu0 %v586_v46  ;;  %229 = vmatpush.bf16.msra.mxu1 %v590_v49  ;;  %v709_v10 = vld [vmem:[%s1042_s2] ss:$0 sm:$0xff]  ;;  %v147_v46 = vperm.slane %v144_v42, 1 }
  0x10   :  { %v803_v12 = vsel %vm53_vm2, %v712_v7, %v52_v11  ;;  %v708_v7 = vld [vmem:[%s1041_s1] ss:$0 sm:$0xff] }
  0x12   :  { %212 = vmatpush.bf16.msra.mxu0 %v578_v56  ;;  %230 = vmatpush.bf16.msra.mxu1 %v582_v59  ;;  %v692_v59 = vld [vmem:[%s1044_s5 + $0x10] sm:$0xff] }
  0x76   :  { %v41_v13 = vpop.xlane.xlu0 %40  ;;  %v47_v17 = vpop.xlane.xlu1 %46 }
  0x77   :  { %v55_v14 = vmul.f32 %v803_v12, %v41_v13  ;;  %v57_v21 = vmul.f32 %v803_v12, %v47_v17 }
  0x79   :  { %v807_v15 = vsub.f32 %v788_v0, %v55_v14  ;;  %v817_v23 = vsub.f32 %v38_v2, %v57_v21 }
  0x7b   :  { %v61_v16 = vmul.f32 %v807_v15, %v807_v15  ;;  %v63_v26 = vmul.f32 %v817_v23, %v817_v23 }
  0x7d   :  { %v64_v18 = vsel %vm31_vm0, %v61_v16, 0.0  ;;  %v70_v27 = vsel %vm34_vm1, %v63_v26, 0.0 }
  0x7e   :  { %65 = vadd.xlane.f32.xlu1 %v64_v18  ;;  %v44_v19 = vpop.xlane.xlu0 %43 }
  0x7f   :  { %v56_v20 = vmul.f32 %v803_v12, %v44_v19 }
  0x81   :  { %v815_v22 = vsub.f32 %v799_v4, %v56_v20 }
  0x83   :  { %v62_v24 = vmul.f32 %v815_v22, %v815_v22 }
  0x85   :  { %v67_v25 = vsel %vm31_vm0, %v62_v24, 0.0 }
  0x86   :  { %68 = vadd.xlane.f32.xlu2 %v67_v25 }
  0x8e   :  { %71 = vadd.xlane.f32.xlu2 %v70_v27 }
  0xf1   :  { %v66_v33 = vpop.xlane.xlu1 %65 }
  0xf2   :  { %v73_v35 = vmul.f32 %v66_v33, %v803_v12 }
  0xf4   :  { %v76_v39 = vadd.f32 1e-05, %v73_v35 }
  0xf6   :  { %713 = vrsqrt.f32 %v76_v39  ;;  %vm85_vm4 = vweird.f32 %v76_v39 }
  0xf9   :  { %v69_v48 = vpop.xlane.xlu2 %68 }
  0xfa   :  { %v74_v50 = vmul.f32 %v69_v48, %v803_v12  ;;  %v702_v48 = vld [vmem:[%s1044_s5 + $0x60] sm:$0xff] }
  0xfc   :  { %v714_v54 = vpop.eup %713  ;;  %v77_v55 = vadd.f32 1e-05, %v74_v50 }
  0xfd   :  { %v80_v58 = vmul.f32 %v714_v54, %v76_v39  ;;  %vm86_vm3 = vweird.f32 %v714_v54  ;;  %v705_v39 = vld [vmem:[%s1044_s5 + $0x78] sm:$0xff] }
  0xfe   :  { %715 = vrsqrt.f32 %v77_v55  ;;  %vm87_vm5 = vmor %vm85_vm4, %vm86_vm3  ;;  %vm95_vm7 = vweird.f32 %v77_v55  ;;  %520 = vmatpush.bf16.msra.mxu3 %v705_v39 }
  0xff   :  { %v81_v60 = vmul.f32 %v714_v54, %v80_v58 }
 0x101   :  { %v82_v61 = vmul.f32 0.5, %v81_v60  ;;  %v72_v62 = vpop.xlane.xlu2 %71  ;;  %v700_v60 = vld [vmem:[%s1044_s5 + $0x50] sm:$0xff] }
 0x102   :  { %v75_v63 = vmul.f32 %v72_v62, %v803_v12  ;;  %521 = vmatpush.bf16.msra.mxu3 %v704_v41 }
 0x103   :  { %v83_v1 = vsub.f32 1.5, %v82_v61 }
 0x104   :  { %v716_v2 = vpop.eup %715  ;;  %v78_v3 = vadd.f32 1e-05, %v75_v63 }
 0x105   :  { %v84_v5 = vmul.f32 %v714_v54, %v83_v1  ;;  %v90_v6 = vmul.f32 %v716_v2, %v77_v55  ;;  %vm96_vm6 = vweird.f32 %v716_v2 }
 0x106   :  { %717 = vrsqrt.f32 %v78_v3  ;;  %vm97_vm8 = vmor %vm95_vm7, %vm96_vm6  ;;  %vm105_vm9 = vweird.f32 %v78_v3  ;;  %522 = vmatpush.bf16.msra.mxu3 %v703_v44 }
 0x107   :  { %v88_v8 = vsel %vm87_vm5, %v714_v54, %v84_v5  ;;  %v91_v9 = vmul.f32 %v716_v2, %v90_v6  ;;  %v701_v54 = vld [vmem:[%s1044_s5 + $0x58] sm:$0xff] }
 0x108   :  { %v109_v11 = vmul.f32 %v88_v8, %v807_v15  ;;  %v698_v8 = vld [vmem:[%s1044_s5 + $0x40] sm:$0xff] }
 0x109   :  { %v92_v12 = vmul.f32 0.5, %v91_v9 }
 0x10a   :  { %v116_v13 = vmul.f32 %v708_v7, %v109_v11  ;;  %523 = vmatpush.bf16.msra.mxu3 %v702_v48 }
 0x10b   :  { %v93_v14 = vsub.f32 1.5, %v92_v12 }
 0x10c   :  { %v718_v16 = vpop.eup %717  ;;  %v123_v17 = vadd.f32 %v709_v10, %v116_v13 }
 0x10d   :  { %v94_v18 = vmul.f32 %v716_v2, %v93_v14  ;;  %v100_v19 = vmul.f32 %v718_v16, %v78_v3  ;;  %vm106_vm10 = vweird.f32 %v718_v16  ;;  %v699_v3 = vld [vmem:[%s1044_s5 + $0x48] sm:$0xff] }
 0x10e   :  { %v126_v20 = vpack.c.bf16 %v123_v17, %v123_v17  ;;  %vm107_vm11 = vmor %vm105_vm9, %vm106_vm10  ;;  %524 = vmatpush.bf16.msra.mxu3 %v701_v54 }
 0x10f   :  { %v98_v21 = vsel %vm97_vm8, %v716_v2, %v94_v18  ;;  %v101_v24 = vmul.f32 %v718_v16, %v100_v19  ;;  %v691_v2 = vld [vmem:[%s1044_s5 + $0x8] sm:$0xff] }
 0x110   :  { %129 = vst.msk [vmem:[#allocation3] sm:$0xf] %vm34_vm1, %v126_v20  ;;  %v110_v25 = vmul.f32 %v98_v21, %v815_v22 }
 0x111   :  { %v102_v26 = vmul.f32 0.5, %v101_v24 }
 0x112   :  { %v117_v27 = vmul.f32 %v708_v7, %v110_v25  ;;  %525 = vmatpush.bf16.msra.mxu3 %v700_v60 }
 0x113   :  { %v103_v15 = vsub.f32 1.5, %v102_v26 }
 0x114   :  { %v124_v28 = vadd.f32 %v709_v10, %v117_v27 }
 0x115   :  { %v104_v29 = vmul.f32 %v718_v16, %v103_v15 }
 0x116   :  { %v127_v30 = vpack.c.bf16 %v124_v28, %v124_v28  ;;  %526 = vmatpush.bf16.msra.mxu3 %v699_v3 }
 0x117   :  { %v108_v31 = vsel %vm107_vm11, %v718_v16, %v104_v29 }
 0x118   :  { %130 = vst.msk [vmem:[#allocation3 + $0x4] sm:$0xf] %vm34_vm1, %v127_v30  ;;  %v111_v32 = vmul.f32 %v108_v31, %v817_v23  ;;  %v697_v23 = vld [vmem:[%s1044_s5 + $0x38] sm:$0xff] }
 0x119   :  { %502 = vmatpush.bf16.msra.mxu2 %v697_v23 }
 0x11a   :  { %v118_v33 = vmul.f32 %v708_v7, %v111_v32  ;;  %v690_v7 = vld [vmem:[%s1044_s5] sm:$0xff]  ;;  %527 = vmatpush.bf16.msra.mxu3 %v698_v8 }
 0x11c   :  { %v125_v34 = vadd.f32 %v709_v10, %v118_v33 }
 0x11d   :  { %503 = vmatpush.bf16.msra.mxu2 %v696_v40 }
 0x11e   :  { %v128_v35 = vpack.c.bf16 %v125_v34, %v125_v34 }
 0x11f   :  { %v681_v36 = vld [vmem:[#allocation3] sm:$0xff] }
 0x120   :  { %132 = vst.msk [vmem:[#allocation3 + $0x8] sm:$0x3] %vm131_vm12, %v128_v35  ;;  %607 = vmatmul.msk.bf16.vlgmr.msra.gmra.mxu0 %vm31_vm0, %v681_v36  ;;  %609 = vmatmul.msk.bf16.vlgmr.msra.gmra.mxu1 %vm31_vm0, %v681_v36 }
 0x121   :  { %504 = vmatpush.bf16.msra.mxu2 %v695_v43 }
 0x125   :  { %505 = vmatpush.bf16.msra.mxu2 %v694_v47 }
 0x127   :  { %v135_v22 = vld [vmem:[#allocation3 + $0x8] sm:$0x3] }
 0x128   :  { %v155_v37 = vunpack.c.l.b16 %v135_v22 }
 0x129   :  { %506 = vmatpush.bf16.msra.mxu2 %v693_v53 }
 0x12a   :  { %v157_v38 = vpack.c.b16 %v155_v37, %v155_v37 }
 0x12d   :  { %507 = vmatpush.bf16.msra.mxu2 %v692_v59 }
 0x130   :  { %608 = vmatmul.msk.bf16.gmra.mxu0 %vm31_vm0, %v157_v38  ;;  %610 = vmatmul.msk.bf16.gmra.mxu1 %vm31_vm0, %v157_v38 }
 0x131   :  { %508 = vmatpush.bf16.msra.mxu2 %v691_v2 }
 0x135   :  { %509 = vmatpush.bf16.msra.mxu2 %v690_v7 }
 0x19d   :  { %v214_v49 = vpop.f32.mrf.mxu0  ;;  %v232_v50 = vpop.f32.mrf.mxu1 }
 0x19e   :  { %v918_v51 = vadd.f32 %v214_v49, %v146_v45  ;;  %v920_v52 = vadd.f32 %v232_v50, %v147_v46 }
 0x1a0   :  { %v611_v55 = vmul.f32 -1.702, %v918_v51  ;;  %v612_v56 = vmul.f32 -1.702, %v920_v52 }
 0x1a2   :  { %v253_v57 = vmul.f32 1.442695, %v611_v55  ;;  %v255_v58 = vmul.f32 1.442695, %v612_v56 }
 0x1a4   :  { %719 = vpow2.f32 %v253_v57 }
 0x1a5   :  { %721 = vpow2.f32 %v255_v58  ;;  %v216_v61 = vpop.f32.mrf.mxu0  ;;  %v234_v62 = vpop.f32.mrf.mxu1 }
 0x1a6   :  { %v936_v63 = vadd.f32 %v216_v61, %v146_v45  ;;  %v938_v1 = vadd.f32 %v234_v62, %v147_v46 }
 0x1a8   :  { %v613_v5 = vmul.f32 -1.702, %v936_v63  ;;  %v614_v6 = vmul.f32 -1.702, %v938_v1 }
 0x1aa   :  { %v720_v9 = vpop.eup %719  ;;  %v257_v10 = vmul.f32 1.442695, %v613_v5  ;;  %v259_v13 = vmul.f32 1.442695, %v614_v6 }
 0x1ab   :  { %v722_v11 = vpop.eup %721  ;;  %v265_v12 = vadd.f32 1.0, %v720_v9 }
 0x1ac   :  { %v954_v14 = vadd.f32 1.0, %v722_v11  ;;  %723 = vpow2.f32 %v257_v10 }
 0x1ad   :  { %725 = vrcp.f32 %v265_v12  ;;  %v219_v16 = vpop.f32.mrf.mxu0  ;;  %v237_v17 = vpop.f32.mrf.mxu1  ;;  %v280_v37 = vand.u32 2147483647, %v265_v12  ;;  %v282_v38 = vand.u32 2147483648, %v265_v12  ;;  %vm276_vm14 = vweird.f32 %v265_v12 }
 0x1ae   :  { %727 = vrcp.f32 %v954_v14  ;;  %v957_v18 = vadd.f32 %v219_v16, %v146_v45  ;;  %v959_v19 = vadd.f32 %v237_v17, %v147_v46  ;;  %vm291_vm15 = vweird.f32 %v954_v14 }
 0x1af   :  { %729 = vpow2.f32 %v259_v13  ;;  %v295_v43 = vand.u32 2147483647, %v954_v14  ;;  %v297_v44 = vand.u32 2147483648, %v954_v14  ;;  %vm978_vm3 = vcmp.eq.f32.partialorder %v280_v37, 8.507059e+37 }
 0x1b0   :  { %v615_v20 = vmul.f32 -1.702, %v957_v18  ;;  %v616_v24 = vmul.f32 -1.702, %v959_v19  ;;  %v283_v49 = vor.u32 1.1754944e-38, %v282_v38 }
 0x1b1   :  { %v298_v10 = vor.u32 1.1754944e-38, %v297_v44  ;;  %vm296_vm11 = vcmp.eq.f32.partialorder %v295_v43, 8.507059e+37 }
 0x1b2   :  { %v724_v21 = vpop.eup %723  ;;  %v261_v27 = vmul.f32 1.442695, %v615_v20  ;;  %v263_v35 = vmul.f32 1.442695, %v616_v24 }
 0x1b3   :  { %v726_v25 = vpop.eup %725  ;;  %v267_v26 = vadd.f32 1.0, %v724_v21 }
 0x1b4   :  { %v963_v15 = vpop.eup %727  ;;  %v272_v28 = vmul.f32 %v726_v25, %v265_v12  ;;  %vm277_vm13 = vweird.f32 %v726_v25 }
 0x1b5   :  { %v730_v29 = vpop.eup %729  ;;  %v287_v30 = vmul.f32 %v963_v15, %v954_v14  ;;  %731 = vrcp.f32 %v267_v26  ;;  %v221_v31 = vpop.f32.mrf.mxu0  ;;  %v312_v45 = vand.u32 2147483648, %v267_v26  ;;  %vm974_vm2 = vmor %vm276_vm14, %vm277_vm13  ;;  %vm292_vm4 = vweird.f32 %v963_v15 }
 0x1b6   :  { %v239_v32 = vpop.f32.mrf.mxu1  ;;  %v273_v33 = vsub.f32 1.0, %v272_v28  ;;  %v967_v34 = vadd.f32 1.0, %v730_v29  ;;  %733 = vpow2.f32 %v261_v27  ;;  %v310_v59 = vand.u32 2147483647, %v267_v26  ;;  %vm994_vm7 = vmor %vm291_vm15, %vm292_vm4 }
 0x1b7   :  { %v288_v36 = vsub.f32 1.0, %v287_v30  ;;  %vm306_vm6 = vweird.f32 %v267_v26  ;;  %v313_v60 = vor.u32 1.1754944e-38, %v312_v45 }
 0x1b8   :  { %v274_v22 = vmul.f32 %v726_v25, %v273_v33  ;;  %735 = vrcp.f32 %v967_v34  ;;  %v325_v6 = vand.u32 2147483647, %v967_v34  ;;  %v327_v7 = vand.u32 2147483648, %v967_v34 }
 0x1b9   :  { %737 = vpow2.f32 %v263_v35  ;;  %v289_v40 = vmul.f32 %v963_v15, %v288_v36  ;;  %vm311_vm10 = vcmp.eq.f32.partialorder %v310_v59, 8.507059e+37  ;;  %vm321_vm12 = vweird.f32 %v967_v34 }
 0x1ba   :  { %v275_v39 = vadd.f32 %v726_v25, %v274_v22  ;;  %v328_v21 = vor.u32 1.1754944e-38, %v327_v7  ;;  %vm326_vm14 = vcmp.eq.f32.partialorder %v325_v6, 8.507059e+37 }
 0x1bb   :  { %v732_v23 = vpop.eup %731  ;;  %v290_v55 = vadd.f32 %v963_v15, %v289_v40 }
 0x1bc   :  { %v302_v41 = vmul.f32 %v732_v23, %v267_v26  ;;  %v734_v42 = vpop.eup %733  ;;  %v279_v54 = vsel %vm974_vm2, %v726_v25, %v275_v39  ;;  %vm307_vm5 = vweird.f32 %v732_v23 }
 0x1bd   :  { %v982_v53 = vadd.f32 1.0, %v734_v42  ;;  %v284_v2 = vsel %vm978_vm3, %v283_v49, %v279_v54  ;;  %v294_v8 = vsel %vm994_vm7, %v963_v15, %v290_v55  ;;  %vm308_vm8 = vmor %vm306_vm6, %vm307_vm5 }
 0x1be   :  { %v736_v46 = vpop.eup %735  ;;  %v303_v50 = vsub.f32 1.0, %v302_v41  ;;  %v361_v16 = vmul.f32 %v284_v2, %v918_v51  ;;  %v299_v17 = vsel %vm296_vm11, %v298_v10, %v294_v8  ;;  %v550_v10 = vld [vmem:[%s1040_s0 + $0x10] sm:$0xf] }
 0x1bf   :  { %v317_v56 = vmul.f32 %v736_v46, %v967_v34  ;;  %v738_v57 = vpop.eup %737  ;;  %739 = vrcp.f32 %v982_v53  ;;  %vm322_vm9 = vweird.f32 %v736_v46  ;;  %v362_v28 = vmul.f32 %v299_v17, %v920_v52 }
 0x1c0   :  { %v304_v58 = vmul.f32 %v732_v23, %v303_v50  ;;  %v270_v62 = vadd.f32 1.0, %v738_v57  ;;  %vm323_vm13 = vmor %vm321_vm12, %vm322_vm9  ;;  %v340_v33 = vand.u32 2147483647, %v982_v53  ;;  %vm336_vm2 = vweird.f32 %v982_v53 }
 0x1c1   :  { %v318_v61 = vsub.f32 1.0, %v317_v56  ;;  %v710_v56 = vld [vmem:[%s1046_s6] ss:$0 sm:$0xff] }
 0x1c2   :  { %v305_v5 = vadd.f32 %v732_v23, %v304_v58  ;;  %741 = vrcp.f32 %v270_v62  ;;  %v357_v52 = vand.u32 2147483648, %v270_v62  ;;  %v355_v37 = vand.u32 2147483647, %v270_v62 }
 0x1c3   :  { %v319_v9 = vmul.f32 %v736_v46, %v318_v61  ;;  %vm341_vm5 = vcmp.eq.f32.partialorder %v340_v33, 8.507059e+37  ;;  %vm351_vm6 = vweird.f32 %v270_v62 }
 0x1c4   :  { %v309_v11 = vsel %vm308_vm8, %v732_v23, %v305_v5  ;;  %v358_v40 = vor.u32 1.1754944e-38, %v357_v52  ;;  %vm356_vm8 = vcmp.eq.f32.partialorder %v355_v37, 8.507059e+37 }
 0x1c5   :  { %v314_v12 = vsel %vm311_vm10, %v313_v60, %v309_v11  ;;  %v320_v13 = vadd.f32 %v736_v46, %v319_v9  ;;  %v740_v14 = vpop.eup %739 }
 0x1c6   :  { %v363_v20 = vmul.f32 %v314_v12, %v936_v63  ;;  %v332_v25 = vmul.f32 %v740_v14, %v982_v53  ;;  %vm337_vm15 = vweird.f32 %v740_v14  ;;  %v342_v63 = vand.u32 2147483648, %v982_v53 }
 0x1c7   :  { %v324_v24 = vsel %vm323_vm13, %v736_v46, %v320_v13  ;;  %vm338_vm3 = vmor %vm336_vm2, %vm337_vm15  ;;  %v744_v46 = vmov 0.0  }
 0x1c8   :  { %v329_v26 = vsel %vm326_vm14, %v328_v21, %v324_v24  ;;  %v370_v27 = vpack.c.bf16 %v363_v20, %v361_v16  ;;  %v742_v15 = vpop.eup %741  ;;  %v333_v30 = vsub.f32 1.0, %v332_v25  ;;  %v343_v22 = vor.u32 1.1754944e-38, %v342_v63  ;;  %32 = vst.msk [vmem:[#allocation2] sm:$0xff] %vm31_vm0, %v744_v46 }
 0x1c9   :  { %v364_v29 = vmul.f32 %v329_v26, %v938_v1  ;;  %v347_v31 = vmul.f32 %v742_v15, %v270_v62  ;;  %vm352_vm4 = vweird.f32 %v742_v15  ;;  %33 = vst.msk [vmem:[#allocation2 + $0x8] sm:$0xff] %vm31_vm0, %v744_v46 }
 0x1ca   :  { %510 = vmatmul.bf16.vlgmr.msra.gmra.mxu2 %v370_v27  ;;  %v334_v32 = vmul.f32 %v740_v14, %v333_v30  ;;  %vm353_vm7 = vmor %vm351_vm6, %vm352_vm4  ;;  %35 = vst.msk [vmem:[#allocation2 + $0x10] sm:$0xf] %vm34_vm1, %v744_v46 }
 0x1cb   :  { %v371_v51 = vpack.c.bf16 %v364_v29, %v362_v28  ;;  %v348_v34 = vsub.f32 1.0, %v347_v31 }
 0x1cc   :  { %v335_v35 = vadd.f32 %v740_v14, %v334_v32 }
 0x1cd   :  { %528 = vmatmul.bf16.vlgmr.msra.gmra.mxu3 %v371_v51  ;;  %v349_v36 = vmul.f32 %v742_v15, %v348_v34 }
 0x1ce   :  { %v339_v1 = vsel %vm338_vm3, %v740_v14, %v335_v35 }
 0x1cf   :  { %v350_v38 = vadd.f32 %v742_v15, %v349_v36  ;;  %v344_v23 = vsel %vm341_vm5, %v343_v22, %v339_v1  ;;  %v367_v48 = vld [vmem:[#allocation2] sm:$0xff] }
 0x1d0   :  { %v365_v41 = vmul.f32 %v344_v23, %v957_v18 }
 0x1d1   :  { %v354_v39 = vsel %vm353_vm7, %v742_v15, %v350_v38  ;;  %v369_v62 = vld [vmem:[#allocation2 + $0x10] sm:$0xf] }
 0x1d2   :  { %v359_v42 = vsel %vm356_vm8, %v358_v40, %v354_v39  ;;  %v372_v44 = vpack.c.bf16 %v365_v41, %v365_v41 }
 0x1d3   :  { %v366_v43 = vmul.f32 %v359_v42, %v959_v19  ;;  %v368_v19 = vld [vmem:[#allocation2 + $0x8] sm:$0xff] }
 0x1d5   :  { %v373_v45 = vpack.c.bf16 %v366_v43, %v366_v43 }
 0x1da   :  { %515 = vmatmul.bf16.gmra.mxu2 %v372_v44 }
 0x1dd   :  { %533 = vmatmul.bf16.gmra.mxu3 %v373_v45 }
 0x24d   :  { %v511_v47 = vpop.f32.mrf.mxu2 }
 0x250   :  { %v529_v49 = vpop.f32.mrf.mxu3 }
 0x251   :  { %v530_v50 = vadd.f32 %v529_v49, %v511_v47 }
 0x253   :  { %v538_v53 = vadd.f32 %v530_v50, %v367_v48 }
 0x255   :  { %541 = vst.msk [vmem:[#allocation2] sm:$0xff] %vm31_vm0, %v538_v53  ;;  %v513_v18 = vpop.f32.mrf.mxu2 }
 0x258   :  { %v531_v54 = vpop.f32.mrf.mxu3 }
 0x259   :  { %v532_v55 = vadd.f32 %v531_v54, %v513_v18 }
 0x25b   :  { %v539_v57 = vadd.f32 %v532_v55, %v368_v19 }
 0x25c   :  { %v551_v58 = vld [vmem:[#allocation2] sm:$0xff] }
 0x25d   :  { %v554_v59 = vadd.f32 %v551_v58, %v788_v0  ;;  %542 = vst.msk [vmem:[#allocation2 + $0x8] sm:$0xff] %vm31_vm0, %v539_v57  ;;  %v516_v60 = vpop.f32.mrf.mxu2 }
 0x25f   :  { %v561_v61 = vadd.f32 %v710_v56, %v554_v59 }
 0x260   :  { %v534_v2 = vpop.f32.mrf.mxu3 }
 0x261   :  { %564 = vst.msk [vmem:[%s1047_s7] sm:$0xff] %vm31_vm0, %v561_v61  ;;  %v535_v3 = vadd.f32 %v534_v2, %v516_v60 }
 0x263   :  { %v540_v5 = vadd.f32 %v535_v3, %v369_v62 }
 0x264   :  { %v552_v6 = vld [vmem:[#allocation2 + $0x8] sm:$0xff] }
 0x265   :  { %v555_v7 = vadd.f32 %v552_v6, %v799_v4  ;;  %544 = vst.msk [vmem:[#allocation2 + $0x10] sm:$0xf] %vm34_vm1, %v540_v5  ;;  %v518_v8 = vpop.f32.mrf.mxu2 }
 0x267   :  { %v562_v0 = vadd.f32 %v710_v56, %v555_v7 }
 0x268   :  { %v536_v9 = vpop.f32.mrf.mxu3 }
 0x269   :  { %565 = vst.msk [vmem:[%s1047_s7 + $0x8] sm:$0xff] %vm31_vm0, %v562_v0 }
 0x26c   :  { %v553_v11 = vld [vmem:[#allocation2 + $0x10] sm:$0xf] }
 0x26d   :  { %v556_v12 = vadd.f32 %v553_v11, %v550_v10 }
 0x26f   :  { %v563_v13 = vadd.f32 %v710_v56, %v556_v12 }
 0x271   :  { %566 = vst.msk [vmem:[%s1047_s7 + $0x10] sm:$0xf] %vm34_vm1, %v563_v13 }

// kernel: transformer_drop_forward.9
= control target key start
LH: loop header
LB: loop body
LE: loop exit
PB: predicated region body
PF: predicated region fallthrough
CT: control target
= control target key end

     0   :  { %vm35_vm0 = vcmask 519168   ;;  %vm28_vm1 = vcmask 523264   ;;  %v316_v6 = vmov 64.0   ;;  %vm122_vm7 = vcmask 517120   ;;  %s457_s0 = inlined_call_operand.vmem [shape: f32[20,64], index: 0, kind: input, shape index: {}]   ;;  %s458_s1 = inlined_call_operand.vmem [shape: f32[1,64], index: 1, kind: input, shape index: {}]   ;;  %s459_s2 = inlined_call_operand.vmem [shape: f32[1,64], index: 2, kind: input, shape index: {}]   ;;  %s460_s3 = inlined_call_operand.vmem [shape: bf16[64,192], index: 3, kind: input, shape index: {}]   ;;  %s461_s4 = inlined_call_operand.vmem [shape: f32[1,192], index: 4, kind: input, shape index: {}]   ;;  %s462_s5 = inlined_call_operand.vmem [shape: bf16[20,192], index: 5, kind: output, shape index: {}]  }
   0x1   :  { %v27_v0 = vld [vmem:[%s457_s0 + $0x10] sm:$0xf]  ;;  %v26_v1 = vld [vmem:[%s457_s0 + $0x8] sm:$0xff]  ;;  %v25_v4 = vld [vmem:[%s457_s0] sm:$0xff]  ;;  %308 = vrcp.f32 %v316_v6  ;;  %vm240_vm13 = vcmask 1041408   ;;  %vm241_vm14 = vcmask 521220  }
   0x2   :  { %v36_v2 = vsel %vm35_vm0, %v27_v0, 0.0  ;;  %v32_v3 = vsel %vm28_vm1, %v26_v1, 0.0  ;;  %v29_v5 = vsel %vm28_vm1, %v25_v4, 0.0  ;;  %v278_v28 = vld [vmem:[%s460_s3 + $0x30] sm:$0xf]  ;;  %vm242_vm15 = vmor %vm241_vm14, %vm240_vm13 }
   0x3   :  { %37 = vadd.xlane.f32.xlu0 %v36_v2  ;;  %33 = vadd.xlane.f32.xlu1 %v32_v3  ;;  %v296_v29 = vld [vmem:[%s460_s3 + $0x34] sm:$0xf0]  ;;  %v295_v30 = vld [vmem:[%s460_s3 + $0x34] sm:$0xf]  ;;  %v280_v32 = vld [vmem:[%s460_s3 + $0x38] sm:$0xf0] }
   0x4   :  { %v279_v31 = vor.u32 %v296_v29, %v278_v28  ;;  %v283_v33 = vor.u32 %v295_v30, %v280_v32  ;;  %v270_v34 = vld [vmem:[%s460_s3 + $0x20] sm:$0xf]  ;;  %v294_v35 = vld [vmem:[%s460_s3 + $0x24] sm:$0xf0]  ;;  %v293_v36 = vld [vmem:[%s460_s3 + $0x24] sm:$0xf] }
   0x5   :  { %v271_v37 = vor.u32 %v294_v35, %v270_v34  ;;  %v272_v38 = vld [vmem:[%s460_s3 + $0x28] sm:$0xf0]  ;;  %v262_v42 = vld [vmem:[%s460_s3 + $0x10] sm:$0xf]  ;;  %v292_v43 = vld [vmem:[%s460_s3 + $0x14] sm:$0xf0] }
   0x6   :  { %297 = vmatpush.bf16.msra.mxu2 %v279_v31  ;;  %200 = vmatpush.bf16.msra.mxu0 %v279_v31  ;;  %v275_v39 = vor.u32 %v293_v36, %v272_v38  ;;  %v291_v44 = vld [vmem:[%s460_s3 + $0x14] sm:$0xf]  ;;  %v263_v45 = vor.u32 %v292_v43, %v262_v42  ;;  %v264_v46 = vld [vmem:[%s460_s3 + $0x18] sm:$0xf0]  ;;  %v254_v49 = vld [vmem:[%s460_s3] sm:$0xf] }
   0x7   :  { %v309_v7 = vpop.eup %308  ;;  %301 = vmatpush.bf16.msra.mxu3 %v283_v33  ;;  %218 = vmatpush.bf16.msra.mxu1 %v283_v33  ;;  %v267_v48 = vor.u32 %v291_v44, %v264_v46  ;;  %v290_v50 = vld [vmem:[%s460_s3 + $0x4] sm:$0xf0]  ;;  %v289_v51 = vld [vmem:[%s460_s3 + $0x4] sm:$0xf]  ;;  %v256_v53 = vld [vmem:[%s460_s3 + $0x8] sm:$0xf0] }
   0x8   :  { %v40_v8 = vmul.f32 64.0, %v309_v7  ;;  %vm44_vm2 = vweird.f32 %v309_v7  ;;  %v255_v52 = vor.u32 %v290_v50, %v254_v49  ;;  %v259_v54 = vor.u32 %v289_v51, %v256_v53 }
   0xa   :  { %v41_v9 = vsub.f32 1.0, %v40_v8  ;;  %298 = vmatpush.bf16.msra.mxu2 %v271_v37  ;;  %201 = vmatpush.bf16.msra.mxu0 %v271_v37  ;;  %v307_v8 = vld [vmem:[%s459_s2] ss:$0 sm:$0xff] }
   0xb   :  { %30 = vadd.xlane.f32.xlu0 %v29_v5  ;;  %302 = vmatpush.bf16.msra.mxu3 %v275_v39  ;;  %v306_v5 = vld [vmem:[%s458_s1] ss:$0 sm:$0xff] }
   0xc   :  { %v42_v10 = vmul.f32 %v309_v7, %v41_v9  ;;  %219 = vmatpush.bf16.msra.mxu1 %v275_v39 }
   0xe   :  { %v43_v11 = vadd.f32 %v309_v7, %v42_v10  ;;  %299 = vmatpush.bf16.msra.mxu2 %v263_v45  ;;  %202 = vmatpush.bf16.msra.mxu0 %v263_v45 }
   0xf   :  { %303 = vmatpush.bf16.msra.mxu3 %v267_v48 }
  0x10   :  { %v359_v12 = vsel %vm44_vm2, %v309_v7, %v43_v11  ;;  %220 = vmatpush.bf16.msra.mxu1 %v267_v48 }
  0x12   :  { %300 = vmatpush.bf16.msra.mxu2 %v255_v52  ;;  %203 = vmatpush.bf16.msra.mxu0 %v255_v52 }
  0x13   :  { %304 = vmatpush.bf16.msra.mxu3 %v259_v54 }
  0x14   :  { %221 = vmatpush.bf16.msra.mxu1 %v259_v54 }
  0x76   :  { %v38_v13 = vpop.xlane.xlu0 %37  ;;  %v34_v17 = vpop.xlane.xlu1 %33 }
  0x77   :  { %v48_v14 = vmul.f32 %v359_v12, %v38_v13  ;;  %v47_v21 = vmul.f32 %v359_v12, %v34_v17 }
  0x79   :  { %v362_v15 = vsub.f32 %v27_v0, %v48_v14  ;;  %v371_v23 = vsub.f32 %v26_v1, %v47_v21 }
  0x7b   :  { %v54_v16 = vmul.f32 %v362_v15, %v362_v15  ;;  %v53_v26 = vmul.f32 %v371_v23, %v371_v23 }
  0x7d   :  { %v61_v18 = vsel %vm35_vm0, %v54_v16, 0.0  ;;  %v58_v27 = vsel %vm28_vm1, %v53_v26, 0.0 }
  0x7e   :  { %62 = vadd.xlane.f32.xlu1 %v61_v18  ;;  %v31_v19 = vpop.xlane.xlu0 %30 }
  0x7f   :  { %v46_v20 = vmul.f32 %v359_v12, %v31_v19 }
  0x81   :  { %v369_v22 = vsub.f32 %v25_v4, %v46_v20 }
  0x83   :  { %v52_v24 = vmul.f32 %v369_v22, %v369_v22 }
  0x85   :  { %v55_v25 = vsel %vm28_vm1, %v52_v24, 0.0 }
  0x86   :  { %56 = vadd.xlane.f32.xlu2 %v55_v25 }
  0x8e   :  { %59 = vadd.xlane.f32.xlu2 %v58_v27 }
  0xf1   :  { %v63_v40 = vpop.xlane.xlu1 %62 }
  0xf2   :  { %v66_v41 = vmul.f32 %v63_v40, %v359_v12 }
  0xf4   :  { %v69_v47 = vadd.f32 1e-05, %v66_v41 }
  0xf6   :  { %310 = vrsqrt.f32 %v69_v47  ;;  %vm96_vm4 = vweird.f32 %v69_v47 }
  0xf9   :  { %v57_v55 = vpop.xlane.xlu2 %56 }
  0xfa   :  { %v64_v56 = vmul.f32 %v57_v55, %v359_v12 }
  0xfc   :  { %v311_v57 = vpop.eup %310  ;;  %v67_v58 = vadd.f32 1e-05, %v64_v56 }
  0xfd   :  { %v91_v59 = vmul.f32 %v311_v57, %v69_v47  ;;  %vm97_vm3 = vweird.f32 %v311_v57 }
  0xfe   :  { %312 = vrsqrt.f32 %v67_v58  ;;  %vm98_vm5 = vmor %vm96_vm4, %vm97_vm3  ;;  %vm76_vm8 = vweird.f32 %v67_v58 }
  0xff   :  { %v92_v60 = vmul.f32 %v311_v57, %v91_v59 }
 0x101   :  { %v93_v61 = vmul.f32 0.5, %v92_v60  ;;  %v60_v62 = vpop.xlane.xlu2 %59 }
 0x102   :  { %v65_v63 = vmul.f32 %v60_v62, %v359_v12 }
 0x103   :  { %v94_v0 = vsub.f32 1.5, %v93_v61 }
 0x104   :  { %v313_v1 = vpop.eup %312  ;;  %v68_v2 = vadd.f32 1e-05, %v65_v63 }
 0x105   :  { %v95_v3 = vmul.f32 %v311_v57, %v94_v0  ;;  %v71_v4 = vmul.f32 %v313_v1, %v67_v58  ;;  %vm77_vm6 = vweird.f32 %v313_v1 }
 0x106   :  { %314 = vrsqrt.f32 %v68_v2  ;;  %vm78_vm9 = vmor %vm76_vm8, %vm77_vm6  ;;  %vm86_vm11 = vweird.f32 %v68_v2 }
 0x107   :  { %v99_v6 = vsel %vm98_vm5, %v311_v57, %v95_v3  ;;  %v72_v7 = vmul.f32 %v313_v1, %v71_v4 }
 0x108   :  { %v102_v9 = vmul.f32 %v99_v6, %v362_v15 }
 0x109   :  { %v73_v10 = vmul.f32 0.5, %v72_v7 }
 0x10a   :  { %v109_v11 = vmul.f32 %v306_v5, %v102_v9 }
 0x10b   :  { %v74_v12 = vsub.f32 1.5, %v73_v10 }
 0x10c   :  { %v315_v13 = vpop.eup %314  ;;  %v116_v14 = vadd.f32 %v307_v8, %v109_v11 }
 0x10d   :  { %v75_v16 = vmul.f32 %v313_v1, %v74_v12  ;;  %v81_v17 = vmul.f32 %v315_v13, %v68_v2  ;;  %vm87_vm10 = vweird.f32 %v315_v13 }
 0x10e   :  { %v119_v18 = vpack.c.bf16 %v116_v14, %v116_v14  ;;  %vm88_vm12 = vmor %vm86_vm11, %vm87_vm10 }
 0x10f   :  { %v79_v19 = vsel %vm78_vm9, %v313_v1, %v75_v16  ;;  %v82_v20 = vmul.f32 %v315_v13, %v81_v17 }
 0x110   :  { %123 = vst.msk [vmem:[#allocation2 + $0x8] sm:$0x3] %vm122_vm7, %v119_v18  ;;  %v100_v21 = vmul.f32 %v79_v19, %v369_v22 }
 0x111   :  { %v83_v24 = vmul.f32 0.5, %v82_v20 }
 0x112   :  { %v107_v25 = vmul.f32 %v306_v5, %v100_v21 }
 0x113   :  { %v84_v15 = vsub.f32 1.5, %v83_v24 }
 0x114   :  { %v114_v26 = vadd.f32 %v307_v8, %v107_v25 }
 0x115   :  { %v85_v27 = vmul.f32 %v315_v13, %v84_v15 }
 0x116   :  { %v117_v28 = vpack.c.bf16 %v114_v26, %v114_v26 }
 0x117   :  { %v89_v29 = vsel %vm88_vm12, %v315_v13, %v85_v27  ;;  %v126_v30 = vld [vmem:[#allocation2 + $0x8] sm:$0x3] }
 0x118   :  { %120 = vst.msk [vmem:[#allocation2] sm:$0xf] %vm35_vm0, %v117_v28  ;;  %v101_v31 = vmul.f32 %v89_v29, %v371_v23  ;;  %v146_v32 = vunpack.c.l.b16 %v126_v30  ;;  %v135_v23 = vld [vmem:[%s461_s4] sm:$0x3] }
 0x119   :  { %v137_v37 = vperm.slane %v135_v23, 0  ;;  %v138_v38 = vperm.slane %v135_v23, 1 }
 0x11a   :  { %v108_v33 = vmul.f32 %v306_v5, %v101_v31  ;;  %v148_v34 = vpack.c.b16 %v146_v32, %v146_v32 }
 0x11c   :  { %v115_v35 = vadd.f32 %v307_v8, %v108_v33  ;;  %285 = vmatmul.msk.bf16.vlgmr.msra.gmra.mxu2 %vm28_vm1, %v148_v34  ;;  %287 = vmatmul.msk.bf16.vlgmr.msra.gmra.mxu3 %vm28_vm1, %v148_v34 }
 0x11e   :  { %v118_v22 = vpack.c.bf16 %v115_v35, %v115_v35 }
 0x120   :  { %121 = vst.msk [vmem:[#allocation2 + $0x4] sm:$0xf] %vm35_vm0, %v118_v22  ;;  %vm235_vm0 = vcmask 1043456  }
 0x127   :  { %v288_v36 = vld [vmem:[#allocation2] sm:$0xff] }
 0x128   :  { %284 = vmatmul.msk.bf16.vlgmr.msra.gmra.mxu0 %vm28_vm1, %v288_v36  ;;  %286 = vmatmul.msk.bf16.vlgmr.msra.gmra.mxu1 %vm28_vm1, %v288_v36  ;;  %vm236_vm1 = vcmask 523268  }
 0x129   :  { %vm237_vm2 = vmor %vm236_vm1, %vm235_vm0 }
 0x19f   :  { %v210_v39 = vpop.f32.mrf.mxu2  ;;  %v228_v40 = vpop.f32.mrf.mxu3 }
 0x1a0   :  { %v211_v41 = vadd.f32 %v210_v39, %v137_v37  ;;  %v229_v42 = vadd.f32 %v228_v40, %v138_v38 }
 0x1a2   :  { %v234_v43 = vpack.c.bf16 %v229_v42, %v211_v41 }
 0x1a4   :  { %243 = vst.msk [vmem:[%s462_s5 + $0x10] sm:$0x33] %vm242_vm15, %v234_v43 }
 0x1a5   :  { %v205_v44 = vpop.f32.mrf.mxu0  ;;  %v223_v45 = vpop.f32.mrf.mxu1 }
 0x1a6   :  { %v206_v46 = vadd.f32 %v205_v44, %v137_v37  ;;  %v224_v48 = vadd.f32 %v223_v45, %v138_v38 }
 0x1a7   :  { %v212_v47 = vpop.f32.mrf.mxu2  ;;  %v230_v49 = vpop.f32.mrf.mxu3 }
 0x1a8   :  { %v232_v50 = vpack.c.bf16 %v224_v48, %v206_v46 }
 0x1aa   :  { %238 = vst.msk [vmem:[%s462_s5] sm:$0xff] %vm237_vm2, %v232_v50 }
 0x1ad   :  { %v207_v51 = vpop.f32.mrf.mxu0  ;;  %v225_v52 = vpop.f32.mrf.mxu1 }
 0x1ae   :  { %v208_v53 = vadd.f32 %v207_v51, %v137_v37  ;;  %v226_v54 = vadd.f32 %v225_v52, %v138_v38 }
 0x1b0   :  { %v233_v55 = vpack.c.bf16 %v226_v54, %v208_v53 }
 0x1b2   :  { %239 = vst.msk [vmem:[%s462_s5 + $0x8] sm:$0xff] %vm237_vm2, %v233_v55 }

// kernel: transformer_drop_forward.10
= control target key start
LH: loop header
LB: loop body
LE: loop exit
PB: predicated region body
PF: predicated region fallthrough
CT: control target
= control target key end

     0   :  { %s2208_s24 = smov 0   ;;  %s2210_s25 = smov 0   ;;  %s2644_s0 = inlined_call_operand.vmem [shape: bf16[2,3,4,128,16], index: 0, kind: input, shape index: {}, may-alias: {0,1,2}]   ;;  %s2645_s1 = inlined_call_operand.vmem [shape: bf16[2,3,4,128,16], index: 1, kind: input, shape index: {}, may-alias: {0,1,2}]   ;;  %s2646_s2 = inlined_call_operand.vmem [shape: bf16[2,3,4,128,16], index: 2, kind: input, shape index: {}, may-alias: {0,1,2}]   ;;  %s2647_s3 = inlined_call_operand.vmem [shape: f32[2,128,64], index: 3, kind: input, shape index: {}]   ;;  %s2648_s4 = inlined_call_operand.vmem [shape: bf16[64,64], index: 4, kind: input, shape index: {}]   ;;  %s2649_s5 = inlined_call_operand.vmem [shape: f32[1,64], index: 5, kind: input, shape index: {}]   ;;  %s2650_s6 = inlined_call_operand.vmem [shape: f32[2,128,64], index: 6, kind: output, shape index: {0}]   ;;  %s2651_s7 = inlined_call_operand.vmem [shape: f32[2,1,128], index: 7, kind: output, shape index: {1}]  }
   0x1   :  { %s2212_s26 = smov 0   ;;  %s2214_s27 = smov 0  }
   0x2   :  { %s2216_s28 = smov 0  }
   0x3 LB: > { %s27_s29 = sadd.s32 1, %s2154_s26  ;;  %s30_s30 = sadd.s32 1, %s2158_s27  ;;  %s2162_s28 = sphi %s2216_s28, %s18_s28   ;;  %s2158_s27 = sphi %s2214_s27, %s2659_s27   ;;  %s2154_s26 = sphi %s2212_s26, %s2658_s26   ;;  %s2150_s25 = sphi %s2210_s25, %s2657_s25   ;;  %s2146_s24 = sphi %s2208_s24, %s2656_s24  }
   0x4   : > { %p28_p0 = scmp.ge.s32.totalorder %s27_s29, 4  ;;  %p1619_p1 = scmp.ge.s32.totalorder %s2162_s28, 1 }
   0x5   : > { %p302_p2 = scmp.lt.s32.totalorder %s2162_s28, 9 }
   0x6   : > { %s2661_s29 = smov (%p28_p0, %s27_s29), 0  ;;  %s2663_s30 = smov (!%p28_p0, %s30_s30), %s2158_s27 }
   0x7   : > { %2652 = sst [smem:[#allocation4_spill]] %s2661_s29  ;;  %p303_p3 = pnand %p1619_p1, %p302_p2 }
   0x8   : > { %p32_p4 = scmp.ge.s32.totalorder %s2663_s30, 2  ;;  %p366_p5 = scmp.lt.s32.totalorder (!%p303_p3), %s2150_s25, 1 }
   0x9   : > { %306 = sbr.rel (%p303_p3) target bundleno = 1074 (0x432), region = 44  ;;  %p368_p6 = scmp.lt.s32.totalorder (!%p303_p3), %s2146_s24, 3 }
   0xa   : > { %s2665_s30 = smov (%p32_p4, %s2663_s30), 0  ;;  %p1630_p7 = scmp.ne.s32.totalorder (!%p303_p3), %s2146_s24, 0 }
   0xb   : > { %2653 = sst [smem:[#allocation5_spill]] %s2665_s30 }
   0xe   : > { %s2667_s25 = smov (!%p366_p5, %s2150_s25), 1 }
   0xf   : > { %s369_s8 = scalar_select %p368_p6, %s2146_s24, 3 }
  0x10   : > { %s2014_s9 = smul.u32 192, %s2667_s25  ;;  %s1892_s10 = sshll.u32 %s2667_s25, 7 }
  0x11   : > { %s1620_s11 = sshll.u32 %s369_s8, 4  ;;  %s2249_s14 = scalar_lea.vmem %s2647_s3, %s1892_s10 }
  0x12   : > { %s372_s15 = sadd.s32 %s2014_s9, %s1620_s11  ;;  %s2254_s18 = scalar_lea.vmem %s2650_s6, %s1892_s10 }
  0x13   : > { %s1621_s19 = sshll.u32 %s372_s15, 2  ;;  %s407_s22 = scalar_lea.vmem %s2651_s7, %s2667_s25 }
  0x14   : > { %s2263_s8 = scalar_lea.vmem %s2644_s0, %s1621_s19  ;;  %s2268_s13 = scalar_lea.vmem %s2645_s1, %s1621_s19 }
  0x15   : > { %s2273_s10 = scalar_lea.vmem %s2646_s2, %s1621_s19  ;;  %412 = sbr.rel (%p1630_p7) target bundleno = 28 (0x1c), region = 48 }
  0x1a   : > { %v2164_v0 = vmov 0.0  }
  0x1b   : > { %413 = vst [vmem:[#allocation3] sm:$0x1] %v2164_v0 }
  0x1c PF: > { %v1901_v1 = vld [vmem:[%s2268_s13 + $0x138] sm:$0xff]  ;;  %vm542_vm0 = vcmask 130048   ;;  %v1900_v3 = vld [vmem:[%s2268_s13 + $0x130] sm:$0xff]  ;;  %v1899_v5 = vld [vmem:[%s2268_s13 + $0x128] sm:$0xff]  ;;  %s1910_s29 = sshll.u32 %s2146_s24, 6  ;;  %vm930_vm2 = vcmask 125952  }
  0x1d   : > { %v589_v2 = vsel %vm542_vm0, %v1901_v1, 0  ;;  %v586_v4 = vsel %vm542_vm0, %v1900_v3, 0  ;;  %v583_v6 = vsel %vm542_vm0, %v1899_v5, 0  ;;  %v1898_v7 = vld [vmem:[%s2268_s13 + $0x120] sm:$0xff]  ;;  %v1897_v9 = vld [vmem:[%s2268_s13 + $0x118] sm:$0xff]  ;;  %v1896_v11 = vld [vmem:[%s2268_s13 + $0x110] sm:$0xff]  ;;  %v640_v1 = vlaneseq }
  0x1e   : > { %591 = vmatpush.bf16.xpose.msra.mxu0 %v589_v2  ;;  %1986 = vmatpush.bf16.xpose.msra.mxu2 %v589_v2  ;;  %v580_v8 = vsel %vm542_vm0, %v1898_v7, 0  ;;  %v577_v10 = vsel %vm542_vm0, %v1897_v9, 0  ;;  %v574_v12 = vsel %vm542_vm0, %v1896_v11, 0  ;;  %v1895_v13 = vld [vmem:[%s2268_s13 + $0x108] sm:$0xff]  ;;  %v1948_v15 = vld [vmem:[%s2263_s8] sm:$0xff]   ;;  %v1981_v16 = vld [vmem:[%s2263_s8 + $0x18] sm:$0xff]  }
  0x1f   : > { %v571_v14 = vsel %vm542_vm0, %v1895_v13, 0  ;;  %v1894_v17 = vld [vmem:[%s2268_s13 + $0x100] sm:$0xff]  ;;  %v1949_v18 = vunpack.c.l.bf16 %v1948_v15  ;;  %v1950_v19 = vunpack.c.h.bf16 %v1948_v15  ;;  %v1961_v20 = vunpack.c.l.bf16 %v1981_v16  ;;  %v1979_v29 = vld [vmem:[%s2263_s8 + $0x8] sm:$0xff]   ;;  %v1980_v41 = vld [vmem:[%s2263_s8 + $0x10] sm:$0xff]   ;;  %s2450_s30 = scalar_lea.vmem [#allocation2], %s1910_s29  ;;  %p1737_p8 = scmp.ne.s32.totalorder %s2146_s24, 3 }
  0x20   : > { %v1962_v21 = vunpack.c.h.bf16 %v1981_v16  ;;  %v568_v22 = vsel %vm542_vm0, %v1894_v17, 0  ;;  %v1982_v30 = vld [vmem:[%s2263_s8 + $0x20] sm:$0xff]   ;;  %v1953_v31 = vunpack.c.l.bf16 %v1979_v29  ;;  %v1954_v32 = vunpack.c.h.bf16 %v1979_v29  ;;  %v1983_v42 = vld [vmem:[%s2263_s8 + $0x28] sm:$0xff]   ;;  %v1984_v53 = vld [vmem:[%s2263_s8 + $0x30] sm:$0xff]   ;;  %s2165_s15 = smov (!%p1737_p8), 32   ;;  %s2166_s16 = smov (!%p1737_p8), 16  }
  0x21   : > { %v446_v23 = vmul.f32 0.25, %v1949_v18  ;;  %v447_v24 = vmul.f32 0.25, %v1950_v19  ;;  %v452_v25 = vmul.f32 0.25, %v1961_v20  ;;  %v1965_v33 = vunpack.c.l.bf16 %v1982_v30  ;;  %v1985_v59 = vld [vmem:[%s2263_s8 + $0x38] sm:$0xff]   ;;  %s2167_s17 = smov (!%p1737_p8), 48  }
  0x22   : > { %v453_v26 = vmul.f32 0.25, %v1962_v21  ;;  %v1966_v34 = vunpack.c.h.bf16 %v1982_v30  ;;  %v448_v35 = vmul.f32 0.25, %v1953_v31  ;;  %v449_v36 = vmul.f32 0.25, %v1954_v32 }
  0x23   : > { %v462_v27 = vpack.c.bf16 %v447_v24, %v446_v23  ;;  %v454_v37 = vmul.f32 0.25, %v1965_v33  ;;  %v1957_v43 = vunpack.c.l.bf16 %v1980_v41  ;;  %v1958_v44 = vunpack.c.h.bf16 %v1980_v41 }
  0x24   : > { %v465_v28 = vpack.c.bf16 %v453_v26, %v452_v25  ;;  %v455_v38 = vmul.f32 0.25, %v1966_v34  ;;  %v463_v39 = vpack.c.bf16 %v449_v36, %v448_v35  ;;  %v1969_v45 = vunpack.c.l.bf16 %v1983_v42 }
  0x25   : > { %v1970_v46 = vunpack.c.h.bf16 %v1983_v42  ;;  %v450_v47 = vmul.f32 0.25, %v1957_v43  ;;  %v451_v48 = vmul.f32 0.25, %v1958_v44  ;;  %v1973_v54 = vunpack.c.l.bf16 %v1984_v53 }
  0x26   : > { %592 = vmatpush.bf16.xpose.msra.mxu0 %v586_v4  ;;  %1987 = vmatpush.bf16.xpose.msra.mxu2 %v586_v4  ;;  %v466_v40 = vpack.c.bf16 %v455_v38, %v454_v37  ;;  %v456_v49 = vmul.f32 0.25, %v1969_v45  ;;  %v1974_v55 = vunpack.c.h.bf16 %v1984_v53  ;;  %v1977_v60 = vunpack.c.l.bf16 %v1985_v59 }
  0x27   : > { %v457_v50 = vmul.f32 0.25, %v1970_v46  ;;  %v464_v51 = vpack.c.bf16 %v451_v48, %v450_v47  ;;  %v458_v56 = vmul.f32 0.25, %v1973_v54  ;;  %v1978_v61 = vunpack.c.h.bf16 %v1985_v59 }
  0x28   : > { %v459_v57 = vmul.f32 0.25, %v1974_v55  ;;  %v460_v62 = vmul.f32 0.25, %v1977_v60  ;;  %v2308_v2 = vand.u32 127, %v640_v1 }
  0x29   : > { %v467_v52 = vpack.c.bf16 %v457_v50, %v456_v49  ;;  %v461_v63 = vmul.f32 0.25, %v1978_v61 }
  0x2a   : > { %v468_v58 = vpack.c.bf16 %v459_v57, %v458_v56  ;;  %vm642_vm1 = vcmp.lt.s32.totalorder %v2308_v2, 10 }
  0x2b   : > { %v469_v0 = vpack.c.bf16 %v461_v63, %v460_v62 }
  0x2e   : > { %593 = vmatpush.bf16.xpose.msra.mxu0 %v583_v6  ;;  %1988 = vmatpush.bf16.xpose.msra.mxu2 %v583_v6 }
  0x36   : > { %594 = vmatpush.bf16.xpose.msra.mxu0 %v580_v8  ;;  %1989 = vmatpush.bf16.xpose.msra.mxu2 %v580_v8 }
  0x3e   : > { %595 = vmatpush.bf16.xpose.msra.mxu0 %v577_v10  ;;  %1990 = vmatpush.bf16.xpose.msra.mxu2 %v577_v10 }
  0x46   : > { %596 = vmatpush.bf16.xpose.msra.mxu0 %v574_v12  ;;  %1991 = vmatpush.bf16.xpose.msra.mxu2 %v574_v12 }
  0x4e   : > { %597 = vmatpush.bf16.xpose.msra.mxu0 %v571_v14  ;;  %1992 = vmatpush.bf16.xpose.msra.mxu2 %v571_v14 }
  0x56   : > { %598 = vmatpush.bf16.xpose.msra.mxu0 %v568_v22  ;;  %1993 = vmatpush.bf16.xpose.msra.mxu2 %v568_v22 }
  0x5d   : > { %1695 = vmatmul.msk.bf16.vlgmr.msra.gmra.mxu0 %vm542_vm0, %v462_v27  ;;  %1698 = vmatmul.msk.bf16.vlgmr.msra.gmra.mxu2 %vm542_vm0, %v465_v28 }
  0x6d   : > { %1696 = vmatmul.msk.bf16.gmra.mxu0 %vm542_vm0, %v463_v39  ;;  %1699 = vmatmul.msk.bf16.gmra.mxu2 %vm542_vm0, %v466_v40 }
  0x7d   : > { %1697 = vmatmul.msk.bf16.gmra.mxu0 %vm542_vm0, %v464_v51  ;;  %1700 = vmatmul.msk.bf16.gmra.mxu2 %vm542_vm0, %v467_v52 }
  0x8d   : > { %1701 = vmatmul.msk.bf16.gmra.mxu2 %vm542_vm0, %v468_v58 }
  0x9d   : > { %1702 = vmatmul.msk.bf16.gmra.mxu2 %vm542_vm0, %v469_v0 }
  0xda   : > { %v600_v3 = vpop.f32.mrf.mxu0 }
  0xdb   : > { %v643_v4 = vsel %vm642_vm1, %v600_v3, -1e+30 }
  0xdc   : > { %659 = vmax.xlane.f32.xlu0 %v643_v4 }
  0xe0   : > { %v615_v5 = vpop.f32.mrf.mxu2 }
  0xe1   : > { %v2331_v23 = vsel %vm642_vm1, %v615_v5, -1e+30 }
  0xe2   : > { %v602_v6 = vpop.f32.mrf.mxu0 }
  0xe3   : > { %v644_v7 = vsel %vm642_vm1, %v602_v6, -1e+30 }
  0xe4   : > { %661 = vmax.xlane.f32.xlu0 %v644_v7 }
  0xe8   : > { %v617_v8 = vpop.f32.mrf.mxu2 }
  0xe9   : > { %v2342_v26 = vsel %vm642_vm1, %v617_v8, -1e+30 }
  0xea   : > { %v605_v9 = vpop.f32.mrf.mxu0 }
  0xeb   : > { %v645_v10 = vsel %vm642_vm1, %v605_v9, -1e+30  ;;  %v1909_v9 = vld [vmem:[%s2273_s10 + $0x238] sm:$0xff] }
  0xec   : > { %663 = vmax.xlane.f32.xlu1 %v645_v10  ;;  %862 = vmatpush.bf16.msra.mxu1 %v1909_v9 }
  0xed   : > { %1994 = vmatpush.bf16.msra.mxu3 %v1909_v9 }
  0xf0   : > { %v620_v11 = vpop.f32.mrf.mxu2 }
  0xf1   : > { %v2375_v49 = vsel %vm642_vm1, %v620_v11, -1e+30 }
  0xf2   : > { %v607_v12 = vpop.f32.mrf.mxu0 }
  0xf3   : > { %v646_v13 = vsel %vm642_vm1, %v607_v12, -1e+30 }
  0xf4   : > { %665 = vmax.xlane.f32.xlu1 %v646_v13 }
  0xf8   : > { %v622_v14 = vpop.f32.mrf.mxu2 }
  0xf9   : > { %v2357_v31 = vsel %vm642_vm1, %v622_v14, -1e+30 }
  0xfa   : > { %v610_v15 = vpop.f32.mrf.mxu0 }
  0xfb   : > { %v647_v16 = vsel %vm642_vm1, %v610_v15, -1e+30 }
  0xfc   : > { %667 = vmax.xlane.f32.xlu0 %v647_v16 }
 0x100   : > { %v625_v17 = vpop.f32.mrf.mxu2 }
 0x101   : > { %v653_v18 = vsel %vm642_vm1, %v625_v17, -1e+30 }
 0x102   : > { %679 = vmax.xlane.f32.xlu2 %v653_v18  ;;  %v612_v19 = vpop.f32.mrf.mxu0 }
 0x103   : > { %v648_v20 = vsel %vm642_vm1, %v612_v19, -1e+30  ;;  %v1907_v19 = vld [vmem:[%s2273_s10 + $0x228] sm:$0xff] }
 0x104   : > { %669 = vmax.xlane.f32.xlu1 %v648_v20 }
 0x108   : > { %v627_v21 = vpop.f32.mrf.mxu2 }
 0x109   : > { %v2327_v22 = vsel %vm642_vm1, %v627_v21, -1e+30 }
 0x10a   : > { %681 = vmax.xlane.f32.xlu2 %v2327_v22 }
 0x10c   : > { %671 = vmax.xlane.f32.xlu1 %v2331_v23 }
 0x110   : > { %v630_v24 = vpop.f32.mrf.mxu2 }
 0x111   : > { %v2337_v25 = vsel %vm642_vm1, %v630_v24, -1e+30 }
 0x112   : > { %683 = vmax.xlane.f32.xlu2 %v2337_v25 }
 0x118   : > { %v632_v27 = vpop.f32.mrf.mxu2 }
 0x119   : > { %v2346_v28 = vsel %vm642_vm1, %v632_v27, -1e+30 }
 0x11a   : > { %673 = vmax.xlane.f32.xlu2 %v2342_v26  ;;  %685 = vmax.xlane.f32.xlu0 %v2346_v28 }
 0x120   : > { %v635_v29 = vpop.f32.mrf.mxu2 }
 0x121   : > { %v2352_v30 = vsel %vm642_vm1, %v635_v29, -1e+30 }
 0x122   : > { %687 = vmax.xlane.f32.xlu2 %v2352_v30 }
 0x128   : > { %v637_v39 = vpop.f32.mrf.mxu2 }
 0x129   : > { %v2367_v44 = vsel %vm642_vm1, %v637_v39, -1e+30 }
 0x12a   : > { %677 = vmax.xlane.f32.xlu2 %v2357_v31 }
 0x14f   : > { %v660_v32 = vpop.xlane.xlu0 %659 }
 0x150   : > { %v691_v33 = vsub.f32 %v643_v4, %v660_v32  ;;  %v1905_v32 = vld [vmem:[%s2273_s10 + $0x218] sm:$0xff] }
 0x152   : > { %v707_v34 = vmul.f32 1.442695, %v691_v33  ;;  %v1904_v33 = vld [vmem:[%s2273_s10 + $0x210] sm:$0xff] }
 0x154   : > { %2059 = vpow2.f32 %v707_v34  ;;  %v1902_v34 = vld [vmem:[%s2273_s10 + $0x200] sm:$0xff] }
 0x157   : > { %v662_v35 = vpop.xlane.xlu0 %661 }
 0x158   : > { %v692_v36 = vsub.f32 %v644_v7, %v662_v35 }
 0x15a   : > { %v2360_v37 = vpop.eup %2059  ;;  %v709_v38 = vmul.f32 1.442695, %v692_v36 }
 0x15b   : > { %739 = vadd.xlane.f32.xlu0 %v2360_v37 }
 0x15c   : > { %2061 = vpow2.f32 %v709_v38  ;;  %v803_v38 = vld [vmem:[#allocation3] sm:$0x1] }
 0x15f   : > { %v664_v40 = vpop.xlane.xlu1 %663 }
 0x160   : > { %v693_v41 = vsub.f32 %v645_v10, %v664_v40  ;;  %v1908_v10 = vld [vmem:[%s2273_s10 + $0x230] sm:$0xff] }
 0x161   : > { %863 = vmatpush.bf16.msra.mxu1 %v1908_v10  ;;  %1995 = vmatpush.bf16.msra.mxu3 %v1908_v10 }
 0x162   : > { %v2363_v42 = vpop.eup %2061  ;;  %v711_v43 = vmul.f32 1.442695, %v693_v41 }
 0x163   : > { %689 = vmax.xlane.f32.xlu0 %v2367_v44  ;;  %741 = vadd.xlane.f32.xlu1 %v2363_v42 }
 0x164   : > { %2063 = vpow2.f32 %v711_v43 }
 0x165   : > { %864 = vmatpush.bf16.msra.mxu1 %v1907_v19  ;;  %1996 = vmatpush.bf16.msra.mxu3 %v1907_v19 }
 0x167   : > { %v666_v45 = vpop.xlane.xlu1 %665 }
 0x168   : > { %v694_v46 = vsub.f32 %v646_v13, %v666_v45 }
 0x16a   : > { %v2371_v47 = vpop.eup %2063  ;;  %v713_v48 = vmul.f32 1.442695, %v694_v46 }
 0x16b   : > { %743 = vadd.xlane.f32.xlu0 %v2371_v47  ;;  %675 = vmax.xlane.f32.xlu1 %v2375_v49 }
 0x16c   : > { %2065 = vpow2.f32 %v713_v48 }
 0x16f   : > { %v668_v50 = vpop.xlane.xlu0 %667 }
 0x170   : > { %v695_v51 = vsub.f32 %v647_v16, %v668_v50 }
 0x172   : > { %v2379_v52 = vpop.eup %2065  ;;  %v715_v53 = vmul.f32 1.442695, %v695_v51 }
 0x173   : > { %745 = vadd.xlane.f32.xlu1 %v2379_v52 }
 0x174   : > { %2067 = vpow2.f32 %v715_v53 }
 0x175   : > { %v680_v54 = vpop.xlane.xlu2 %679 }
 0x176   : > { %v701_v55 = vsub.f32 %v653_v18, %v680_v54 }
 0x177   : > { %v670_v56 = vpop.xlane.xlu1 %669 }
 0x178   : > { %v727_v57 = vmul.f32 1.442695, %v701_v55  ;;  %v696_v58 = vsub.f32 %v648_v20, %v670_v56 }
 0x17a   : > { %v2382_v59 = vpop.eup %2067  ;;  %2069 = vpow2.f32 %v727_v57  ;;  %v717_v60 = vmul.f32 1.442695, %v696_v58 }
 0x17b   : > { %747 = vadd.xlane.f32.xlu1 %v2382_v59 }
 0x17c   : > { %2071 = vpow2.f32 %v717_v60 }
 0x17d   : > { %v682_v61 = vpop.xlane.xlu2 %681 }
 0x17e   : > { %v702_v62 = vsub.f32 %v2327_v22, %v682_v61 }
 0x17f   : > { %v672_v63 = vpop.xlane.xlu1 %671 }
 0x180   : > { %v2386_v0 = vpop.eup %2069  ;;  %v729_v1 = vmul.f32 1.442695, %v702_v62  ;;  %v697_v2 = vsub.f32 %v2331_v23, %v672_v63 }
 0x181   : > { %759 = vadd.xlane.f32.xlu2 %v2386_v0 }
 0x182   : > { %2073 = vpow2.f32 %v729_v1  ;;  %v719_v3 = vmul.f32 1.442695, %v697_v2  ;;  %v2391_v6 = vpop.eup %2071 }
 0x184   : > { %2075 = vpow2.f32 %v719_v3 }
 0x185   : > { %v684_v4 = vpop.xlane.xlu2 %683 }
 0x186   : > { %v703_v5 = vsub.f32 %v2337_v25, %v684_v4 }
 0x188   : > { %v2393_v7 = vpop.eup %2073  ;;  %v731_v8 = vmul.f32 1.442695, %v703_v5 }
 0x189   : > { %761 = vadd.xlane.f32.xlu0 %v2393_v7  ;;  %749 = vadd.xlane.f32.xlu2 %v2391_v6 }
 0x18a   : > { %2077 = vpow2.f32 %v731_v8  ;;  %v2401_v15 = vpop.eup %2075 }
 0x18d   : > { %v674_v11 = vpop.xlane.xlu2 %673  ;;  %v686_v12 = vpop.xlane.xlu0 %685 }
 0x18e   : > { %v698_v13 = vsub.f32 %v2342_v26, %v674_v11  ;;  %v704_v14 = vsub.f32 %v2346_v28, %v686_v12 }
 0x190   : > { %v2403_v16 = vpop.eup %2077  ;;  %v721_v17 = vmul.f32 1.442695, %v698_v13  ;;  %v733_v18 = vmul.f32 1.442695, %v704_v14 }
 0x191   : > { %763 = vadd.xlane.f32.xlu0 %v2403_v16  ;;  %751 = vadd.xlane.f32.xlu2 %v2401_v15 }
 0x192   : > { %2079 = vpow2.f32 %v721_v17 }
 0x193   : > { %2081 = vpow2.f32 %v733_v18 }
 0x195   : > { %v688_v20 = vpop.xlane.xlu2 %687 }
 0x196   : > { %v705_v21 = vsub.f32 %v2352_v30, %v688_v20  ;;  %v1906_v30 = vld [vmem:[%s2273_s10 + $0x220] sm:$0xff] }
 0x197   : > { %865 = vmatpush.bf16.msra.mxu1 %v1906_v30  ;;  %1997 = vmatpush.bf16.msra.mxu3 %v1906_v30 }
 0x198   : > { %v2409_v22 = vpop.eup %2079  ;;  %v735_v23 = vmul.f32 1.442695, %v705_v21 }
 0x199   : > { %v2411_v24 = vpop.eup %2081  ;;  %753 = vadd.xlane.f32.xlu0 %v2409_v22 }
 0x19a   : > { %2083 = vpow2.f32 %v735_v23  ;;  %765 = vadd.xlane.f32.xlu1 %v2411_v24 }
 0x19b   : > { %866 = vmatpush.bf16.msra.mxu1 %v1905_v32  ;;  %1998 = vmatpush.bf16.msra.mxu3 %v1905_v32 }
 0x19d   : > { %v678_v25 = vpop.xlane.xlu2 %677 }
 0x19e   : > { %v700_v26 = vsub.f32 %v2357_v31, %v678_v25  ;;  %v1903_v31 = vld [vmem:[%s2273_s10 + $0x208] sm:$0xff] }
 0x19f   : > { %867 = vmatpush.bf16.msra.mxu1 %v1904_v33  ;;  %1999 = vmatpush.bf16.msra.mxu3 %v1904_v33 }
 0x1a0   : > { %v2416_v27 = vpop.eup %2083  ;;  %v725_v28 = vmul.f32 1.442695, %v700_v26 }
 0x1a2   : > { %2085 = vpow2.f32 %v725_v28  ;;  %767 = vadd.xlane.f32.xlu1 %v2416_v27 }
 0x1a3   : > { %868 = vmatpush.bf16.msra.mxu1 %v1903_v31  ;;  %2000 = vmatpush.bf16.msra.mxu3 %v1903_v31 }
 0x1a7   : > { %869 = vmatpush.bf16.msra.mxu1 %v1902_v34  ;;  %2001 = vmatpush.bf16.msra.mxu3 %v1902_v34 }
 0x1a8   : > { %v2419_v29 = vpop.eup %2085 }
 0x1aa   : > { %757 = vadd.xlane.f32.xlu1 %v2419_v29 }
 0x1ce   : > { %v740_v35 = vpop.xlane.xlu0 %739 }
 0x1cf   : > { %2087 = vrcp.f32 %v740_v35 }
 0x1d5   : > { %v2088_v36 = vpop.eup %2087 }
 0x1d6   : > { %v690_v39 = vpop.xlane.xlu0 %689  ;;  %v742_v40 = vpop.xlane.xlu1 %741  ;;  %v787_v41 = vmul.f32 %v2088_v36, %v2360_v37 }
 0x1d7   : > { %v706_v43 = vsub.f32 %v2367_v44, %v690_v39  ;;  %2089 = vrcp.f32 %v742_v40 }
 0x1d8   : > { %v804_v45 = vadd.f32 %v803_v38, %v787_v41 }
 0x1d9   : > { %v737_v46 = vmul.f32 1.442695, %v706_v43 }
 0x1da   : > { %805 = vst [vmem:[#allocation3] sm:$0x1] %v804_v45 }
 0x1db   : > { %2091 = vpow2.f32 %v737_v46 }
 0x1dd   : > { %v2090_v48 = vpop.eup %2089 }
 0x1de   : > { %v676_v50 = vpop.xlane.xlu1 %675  ;;  %v788_v51 = vmul.f32 %v2090_v48, %v2363_v42  ;;  %v744_v57 = vpop.xlane.xlu0 %743 }
 0x1df   : > { %v699_v53 = vsub.f32 %v2375_v49, %v676_v50 }
 0x1e0   : > { %v806_v54 = vpack.c.bf16 %v788_v51, %v787_v41 }
 0x1e1   : > { %v2431_v55 = vpop.eup %2091  ;;  %v723_v56 = vmul.f32 1.442695, %v699_v53 }
 0x1e2   : > { %769 = vadd.xlane.f32.xlu2 %v2431_v55  ;;  %870 = vmatmul.bf16.vlgmr.msra.gmra.mxu1 %v806_v54 }
 0x1e3   : > { %2093 = vpow2.f32 %v723_v56 }
 0x1e4   : > { %2095 = vrcp.f32 %v744_v57 }
 0x1e6   : > { %v746_v37 = vpop.xlane.xlu1 %745 }
 0x1e7   : > { %2097 = vrcp.f32 %v746_v37 }
 0x1e9   : > { %v2434_v44 = vpop.eup %2093 }
 0x1ea   : > { %755 = vadd.xlane.f32.xlu0 %v2434_v44  ;;  %v2096_v58 = vpop.eup %2095 }
 0x1eb   : > { %v789_v49 = vmul.f32 %v2096_v58, %v2371_v47 }
 0x1ed   : > { %v2098_v42 = vpop.eup %2097 }
 0x1ee   : > { %v790_v60 = vmul.f32 %v2098_v42, %v2379_v52  ;;  %v748_v63 = vpop.xlane.xlu1 %747 }
 0x1f0   : > { %v807_v61 = vpack.c.bf16 %v790_v60, %v789_v49 }
 0x1f2   : > { %875 = vmatmul.bf16.gmra.mxu1 %v807_v61 }
 0x1f4   : > { %v760_v62 = vpop.xlane.xlu2 %759 }
 0x1f5   : > { %2099 = vrcp.f32 %v760_v62 }
 0x1f6   : > { %2101 = vrcp.f32 %v748_v63 }
 0x1fb   : > { %v2100_v3 = vpop.eup %2099 }
 0x1fc   : > { %v762_v1 = vpop.xlane.xlu0 %761  ;;  %v750_v2 = vpop.xlane.xlu2 %749  ;;  %v797_v10 = vmul.f32 %v2100_v3, %v2386_v0 }
 0x1fd   : > { %2103 = vrcp.f32 %v762_v1  ;;  %v2102_v4 = vpop.eup %2101 }
 0x1fe   : > { %2105 = vrcp.f32 %v750_v2  ;;  %v791_v52 = vmul.f32 %v2102_v4, %v2382_v59 }
 0x203   : > { %v2104_v5 = vpop.eup %2103 }
 0x204   : > { %v2106_v8 = vpop.eup %2105  ;;  %v764_v9 = vpop.xlane.xlu0 %763  ;;  %v798_v47 = vmul.f32 %v2104_v5, %v2393_v7 }
 0x205   : > { %v792_v11 = vmul.f32 %v2106_v8, %v2391_v6  ;;  %v752_v14 = vpop.xlane.xlu2 %751 }
 0x206   : > { %v811_v12 = vpack.c.bf16 %v798_v47, %v797_v10  ;;  %2107 = vrcp.f32 %v752_v14 }
 0x207   : > { %v808_v13 = vpack.c.bf16 %v792_v11, %v791_v52  ;;  %2109 = vrcp.f32 %v764_v9 }
 0x208   : > { %895 = vmatmul.bf16.vlgmr.msra.gmra.mxu3 %v811_v12 }
 0x209   : > { %880 = vmatmul.bf16.gmra.mxu1 %v808_v13 }
 0x20c   : > { %v754_v17 = vpop.xlane.xlu0 %753  ;;  %v2108_v19 = vpop.eup %2107 }
 0x20d   : > { %2111 = vrcp.f32 %v754_v17  ;;  %v766_v18 = vpop.xlane.xlu1 %765  ;;  %v2110_v20 = vpop.eup %2109  ;;  %v793_v7 = vmul.f32 %v2108_v19, %v2401_v15 }
 0x20e   : > { %2113 = vrcp.f32 %v766_v18  ;;  %v799_v6 = vmul.f32 %v2110_v20, %v2403_v16 }
 0x213   : > { %v2112_v0 = vpop.eup %2111 }
 0x214   : > { %v2114_v21 = vpop.eup %2113  ;;  %v794_v59 = vmul.f32 %v2112_v0, %v2409_v22 }
 0x215   : > { %v800_v23 = vmul.f32 %v2114_v21, %v2411_v24  ;;  %v768_v28 = vpop.xlane.xlu1 %767 }
 0x216   : > { %v809_v25 = vpack.c.bf16 %v794_v59, %v793_v7  ;;  %2115 = vrcp.f32 %v768_v28 }
 0x217   : > { %v812_v26 = vpack.c.bf16 %v800_v23, %v799_v6 }
 0x219   : > { %885 = vmatmul.bf16.gmra.mxu1 %v809_v25  ;;  %900 = vmatmul.bf16.gmra.mxu3 %v812_v26 }
 0x21c   : > { %v2116_v33 = vpop.eup %2115 }
 0x21d   : > { %v758_v32 = vpop.xlane.xlu1 %757  ;;  %v801_v22 = vmul.f32 %v2116_v33, %v2416_v27 }
 0x255   : > { %v770_v30 = vpop.xlane.xlu2 %769 }
 0x256   : > { %2117 = vrcp.f32 %v770_v30 }
 0x257   : > { %2119 = vrcp.f32 %v758_v32 }
 0x25c   : > { %v2118_v31 = vpop.eup %2117 }
 0x25d   : > { %v756_v15 = vpop.xlane.xlu0 %755  ;;  %v802_v16 = vmul.f32 %v2118_v31, %v2431_v55  ;;  %v2120_v36 = vpop.eup %2119 }
 0x25e   : > { %2121 = vrcp.f32 %v756_v15  ;;  %v796_v39 = vmul.f32 %v2120_v36, %v2419_v29 }
 0x25f   : > { %v871_v24 = vpop.f32.mrf.mxu1  ;;  %v813_v34 = vpack.c.bf16 %v802_v16, %v801_v22 }
 0x260   : > { %v911_v35 = vpack.c.bf16 %v871_v24, %v871_v24 }
 0x261   : > { %905 = vmatmul.bf16.gmra.mxu3 %v813_v34 }
 0x262   : > { %931 = vst.msk [vmem:[%s2450_s30] sm:$0xf] %vm930_vm2, %v911_v35 }
 0x264   : > { %v2122_v38 = vpop.eup %2121 }
 0x265   : > { %v795_v27 = vmul.f32 %v2122_v38, %v2434_v44 }
 0x267   : > { %v873_v40 = vpop.f32.mrf.mxu1  ;;  %v810_v41 = vpack.c.bf16 %v796_v39, %v795_v27 }
 0x268   : > { %v912_v43 = vpack.c.bf16 %v873_v40, %v873_v40 }
 0x269   : > { %890 = vmatmul.bf16.gmra.mxu1 %v810_v41 }
 0x26a   : > { %932 = vst.msk [vmem:[%s2450_s30 + $0x4] sm:$0xf] %vm930_vm2, %v912_v43 }
 0x26f   : > { %v876_v45 = vpop.f32.mrf.mxu1 }
 0x270   : > { %v913_v46 = vpack.c.bf16 %v876_v45, %v876_v45 }
 0x272   : > { %933 = vst.msk [vmem:[%s2450_s30 + $0x8] sm:$0xf] %vm930_vm2, %v913_v46 }
 0x277   : > { %v878_v48 = vpop.f32.mrf.mxu1 }
 0x278   : > { %v914_v50 = vpack.c.bf16 %v878_v48, %v878_v48 }
 0x27a   : > { %934 = vst.msk [vmem:[%s2450_s30 + $0xc] sm:$0xf] %vm930_vm2, %v914_v50 }
 0x286   : > { %v881_v51 = vpop.f32.mrf.mxu1 }
 0x287   : > { %v915_v29 = vpack.c.bf16 %v881_v51, %v881_v51 }
 0x289   : > { %935 = vst.msk [vmem:[%s2450_s30 + $0x10] sm:$0xf] %vm930_vm2, %v915_v29 }
 0x28b   : > { %v896_v53 = vpop.f32.mrf.mxu3 }
 0x28c   : > { %v921_v54 = vpack.c.bf16 %v896_v53, %v896_v53 }
 0x28e   : > { %941 = vst.msk [vmem:[%s2450_s30 + $0x28] sm:$0xf] %vm930_vm2, %v921_v54  ;;  %v883_v55 = vpop.f32.mrf.mxu1 }
 0x28f   : > { %v916_v56 = vpack.c.bf16 %v883_v55, %v883_v55 }
 0x291   : > { %936 = vst.msk [vmem:[%s2450_s30 + $0x14] sm:$0xf] %vm930_vm2, %v916_v56 }
 0x293   : > { %v898_v57 = vpop.f32.mrf.mxu3 }
 0x294   : > { %v922_v37 = vpack.c.bf16 %v898_v57, %v898_v57 }
 0x296   : > { %942 = vst.msk [vmem:[%s2450_s30 + $0x2c] sm:$0xf] %vm930_vm2, %v922_v37  ;;  %v886_v44 = vpop.f32.mrf.mxu1 }
 0x297   : > { %v917_v58 = vpack.c.bf16 %v886_v44, %v886_v44 }
 0x299   : > { %937 = vst.msk [vmem:[%s2450_s30 + $0x18] sm:$0xf] %vm930_vm2, %v917_v58 }
 0x29c   : > { %v901_v42 = vpop.f32.mrf.mxu3 }
 0x29d   : > { %v923_v49 = vpack.c.bf16 %v901_v42, %v901_v42 }
 0x29e   : > { %v888_v60 = vpop.f32.mrf.mxu1 }
 0x29f   : > { %943 = vst.msk [vmem:[%s2450_s30 + $0x30] sm:$0xf] %vm930_vm2, %v923_v49  ;;  %v918_v61 = vpack.c.bf16 %v888_v60, %v888_v60 }
 0x2a1   : > { %938 = vst.msk [vmem:[%s2450_s30 + $0x1c] sm:$0xf] %vm930_vm2, %v918_v61 }
 0x2a4   : > { %v903_v62 = vpop.f32.mrf.mxu3 }
 0x2a5   : > { %v924_v63 = vpack.c.bf16 %v903_v62, %v903_v62 }
 0x2a7   : > { %944 = vst.msk [vmem:[%s2450_s30 + $0x34] sm:$0xf] %vm930_vm2, %v924_v63 }
 0x2e4   : > { %v906_v1 = vpop.f32.mrf.mxu3 }
 0x2e5   : > { %v925_v2 = vpack.c.bf16 %v906_v1, %v906_v1 }
 0x2e6   : > { %v891_v3 = vpop.f32.mrf.mxu1 }
 0x2e7   : > { %945 = vst.msk [vmem:[%s2450_s30 + $0x38] sm:$0xf] %vm930_vm2, %v925_v2  ;;  %v919_v4 = vpack.c.bf16 %v891_v3, %v891_v3 }
 0x2e9   : > { %939 = vst.msk [vmem:[%s2450_s30 + $0x20] sm:$0xf] %vm930_vm2, %v919_v4 }
 0x2ec   : > { %v908_v5 = vpop.f32.mrf.mxu3 }
 0x2ed   : > { %v926_v8 = vpack.c.bf16 %v908_v5, %v908_v5  ;;  %950 = sbr.rel (%p1737_p8) target bundleno = 1074 (0x432), region = 52 }
 0x2ee   : > { %v893_v9 = vpop.f32.mrf.mxu1 }
 0x2ef   : > { %946 = vst.msk [vmem:[%s2450_s30 + $0x3c] sm:$0xf] %vm930_vm2, %v926_v8  ;;  %v920_v10 = vpack.c.bf16 %v893_v9, %v893_v9 }
 0x2f1   : > { %940 = vst.msk [vmem:[%s2450_s30 + $0x24] sm:$0xf] %vm930_vm2, %v920_v10 }
 0x2f2   : > { %v1946_v7 = vld [vmem:[%s2648_s4 + $0x18] sm:$0xff]  ;;  %v1945_v23 = vld [vmem:[%s2648_s4 + $0x10] sm:$0xff]  ;;  %v1944_v26 = vld [vmem:[%s2648_s4 + $0x8] sm:$0xff]  ;;  %vm1250_vm3 = vcmask 261120   ;;  %vm1267_vm4 = vcmask 392192   ;;  %vm1316_vm5 = vcmask 523264  }
 0x2f3   : > { %2003 = vmatpush.bf16.msra.mxu2 %v1946_v7  ;;  %2004 = vmatpush.bf16.msra.mxu3 %v1946_v7  ;;  %v1943_v34 = vld [vmem:[%s2648_s4] sm:$0xff] }
 0x2f4   : > { %1337 = vmatpush.bf16.msra.mxu0 %v1946_v7  ;;  %2002 = vmatpush.bf16.msra.mxu1 %v1946_v7 }
 0x2f7   : > { %2006 = vmatpush.bf16.msra.mxu2 %v1945_v23  ;;  %2007 = vmatpush.bf16.msra.mxu3 %v1945_v23 }
 0x2f8   : > { %v1931_v47 = vld [vmem:[#allocation2 + $0xa0] sm:$0xff]  ;;  %v1933_v12 = vld [vmem:[#allocation2 + $0xb0] sm:$0xff]  ;;  %v1926_v59 = vld [vmem:[#allocation2 + $0x78] sm:$0xff]  ;;  %1338 = vmatpush.bf16.msra.mxu0 %v1945_v23  ;;  %2005 = vmatpush.bf16.msra.mxu1 %v1945_v23 }
 0x2f9   : > { %v1923_v52 = vld [vmem:[#allocation2 + $0x60] sm:$0xff]  ;;  %1162 = vrot.lane.b32.xlu1 %v1931_v47, %s2165_s15  ;;  %v1925_v13 = vld [vmem:[#allocation2 + $0x70] sm:$0xff]  ;;  %v1924_v6 = vld [vmem:[#allocation2 + $0x68] sm:$0xff] }
 0x2fa   : > { %1106 = vrot.lane.b32.xlu0 %v1923_v52, %s2166_s16  ;;  %v1939_v11 = vld [vmem:[#allocation2 + $0xe0] sm:$0xff]  ;;  %v1941_v14 = vld [vmem:[#allocation2 + $0xf0] sm:$0xff]  ;;  %v1932_v25 = vld [vmem:[#allocation2 + $0xa8] sm:$0xff] }
 0x2fb   : > { %1218 = vrot.lane.b32.xlu2 %v1939_v11, %s2167_s17  ;;  %v1921_v17 = vld [vmem:[#allocation2 + $0x50] sm:$0xff]  ;;  %v1919_v18 = vld [vmem:[#allocation2 + $0x40] sm:$0xff]  ;;  %v1940_v28 = vld [vmem:[#allocation2 + $0xe8] sm:$0xff]  ;;  %2009 = vmatpush.bf16.msra.mxu2 %v1944_v26 }
 0x2fc   : > { %v1927_v19 = vld [vmem:[#allocation2 + $0x80] sm:$0xff]  ;;  %v1929_v0 = vld [vmem:[#allocation2 + $0x90] sm:$0xff]  ;;  %v1934_v30 = vld [vmem:[#allocation2 + $0xb8] sm:$0xff]  ;;  %2010 = vmatpush.bf16.msra.mxu3 %v1944_v26  ;;  %1339 = vmatpush.bf16.msra.mxu0 %v1944_v26 }
 0x2fd   : > { %v1935_v20 = vld [vmem:[#allocation2 + $0xc0] sm:$0xff]  ;;  %v1937_v21 = vld [vmem:[#allocation2 + $0xd0] sm:$0xff]  ;;  %v1942_v32 = vld [vmem:[#allocation2 + $0xf8] sm:$0xff]  ;;  %2008 = vmatpush.bf16.msra.mxu1 %v1944_v26 }
 0x2fe   : > { %v1922_v33 = vld [vmem:[#allocation2 + $0x58] sm:$0xff]  ;;  %v1920_v31 = vld [vmem:[#allocation2 + $0x48] sm:$0xff]  ;;  %v1915_v38 = vld [vmem:[#allocation2 + $0x20] sm:$0xff] }
 0x2ff   : > { %v1928_v15 = vld [vmem:[#allocation2 + $0x88] sm:$0xff]  ;;  %v1930_v16 = vld [vmem:[#allocation2 + $0x98] sm:$0xff]  ;;  %2012 = vmatpush.bf16.msra.mxu2 %v1943_v34  ;;  %v1917_v45 = vld [vmem:[#allocation2 + $0x30] sm:$0xff] }
 0x300   : > { %v1936_v22 = vld [vmem:[#allocation2 + $0xc8] sm:$0xff]  ;;  %v1938_v24 = vld [vmem:[#allocation2 + $0xd8] sm:$0xff]  ;;  %2013 = vmatpush.bf16.msra.mxu3 %v1943_v34  ;;  %1340 = vmatpush.bf16.msra.mxu0 %v1943_v34  ;;  %v1911_v57 = vld [vmem:[#allocation2] sm:$0xff] }
 0x301   : > { %1166 = vrot.lane.b32.xlu1 %v1933_v12, %s2165_s15  ;;  %2011 = vmatpush.bf16.msra.mxu1 %v1943_v34  ;;  %v1913_v37 = vld [vmem:[#allocation2 + $0x10] sm:$0xff]  ;;  %v1916_v4 = vld [vmem:[#allocation2 + $0x28] sm:$0xff]  ;;  %v1918_v8 = vld [vmem:[#allocation2 + $0x38] sm:$0xff] }
 0x302   : > { %1110 = vrot.lane.b32.xlu0 %v1925_v13, %s2166_s16 }
 0x303   : > { %1222 = vrot.lane.b32.xlu2 %v1941_v14, %s2167_s17 }
 0x309   : > { %1102 = vrot.lane.b32.xlu1 %v1921_v17, %s2166_s16 }
 0x30a   : > { %1098 = vrot.lane.b32.xlu0 %v1919_v18, %s2166_s16 }
 0x30b   : > { %1154 = vrot.lane.b32.xlu2 %v1927_v19, %s2165_s15 }
 0x311   : > { %1210 = vrot.lane.b32.xlu1 %v1935_v20, %s2167_s17  ;;  %v1912_v20 = vld [vmem:[#allocation2 + $0x8] sm:$0xff] }
 0x312   : > { %1158 = vrot.lane.b32.xlu0 %v1929_v0, %s2165_s15  ;;  %v1914_v0 = vld [vmem:[#allocation2 + $0x18] sm:$0xff] }
 0x313   : > { %1214 = vrot.lane.b32.xlu2 %v1937_v21, %s2167_s17 }
 0x319   : > { %1112 = vrot.lane.b32.xlu1 %v1926_v59, %s2166_s16 }
 0x31a   : > { %1108 = vrot.lane.b32.xlu0 %v1924_v6, %s2166_s16 }
 0x31b   : > { %1164 = vrot.lane.b32.xlu2 %v1932_v25, %s2165_s15 }
 0x321   : > { %1220 = vrot.lane.b32.xlu1 %v1940_v28, %s2167_s17 }
 0x322   : > { %1168 = vrot.lane.b32.xlu0 %v1934_v30, %s2165_s15 }
 0x323   : > { %1224 = vrot.lane.b32.xlu2 %v1942_v32, %s2167_s17  ;;  %v1390_v32 = vld [vmem:[%s2249_s14 + $0x40] sm:$0xff] }
 0x329   : > { %1104 = vrot.lane.b32.xlu1 %v1922_v33, %s2166_s16  ;;  %v2559_v33 = vld [vmem:[%s2649_s5] ss:$0 sm:$0xff] }
 0x32a   : > { %1100 = vrot.lane.b32.xlu0 %v1920_v31, %s2166_s16 }
 0x32b   : > { %1156 = vrot.lane.b32.xlu2 %v1928_v15, %s2165_s15 }
 0x331   : > { %1212 = vrot.lane.b32.xlu1 %v1936_v22, %s2167_s17 }
 0x332   : > { %1160 = vrot.lane.b32.xlu0 %v1930_v16, %s2165_s15  ;;  %v1391_v16 = vld [vmem:[%s2249_s14 + $0x48] sm:$0xff] }
 0x333   : > { %1216 = vrot.lane.b32.xlu2 %v1938_v24, %s2167_s17  ;;  %v1394_v24 = vld [vmem:[%s2249_s14 + $0x60] sm:$0xff] }
 0x355   : > { %v1219_v35 = vpop.permute.xlu2 %1218 }
 0x35d   : > { %v1223_v36 = vpop.permute.xlu2 %1222 }
 0x365   : > { %v1155_v46 = vpop.permute.xlu2 %1154 }
 0x36b   : > { %v1163_v27 = vpop.permute.xlu1 %1162 }
 0x36c   : > { %v1107_v39 = vpop.permute.xlu0 %1106 }
 0x36d   : > { %v1240_v40 = vsel %vm542_vm0, %v1915_v38, %v1107_v39  ;;  %v1215_v54 = vpop.permute.xlu2 %1214 }
 0x36e   : > { %v1260_v41 = vsel %vm1250_vm3, %v1240_v40, %v1163_v27  ;;  %v1382_v40 = vld [vmem:[%s2249_s14] sm:$0xff] }
 0x36f   : > { %v1277_v43 = vsel %vm1267_vm4, %v1260_v41, %v1219_v35  ;;  %v1395_v41 = vld [vmem:[%s2249_s14 + $0x68] sm:$0xff] }
 0x370   : > { %1886 = vmatmul.msk.bf16.vlgmr.msra.gmra.mxu2 %vm1316_vm5, %v1277_v43  ;;  %v1386_v43 = vld [vmem:[%s2249_s14 + $0x20] sm:$0xff] }
 0x373   : > { %v1167_v48 = vpop.permute.xlu1 %1166 }
 0x374   : > { %v1111_v50 = vpop.permute.xlu0 %1110 }
 0x375   : > { %v1246_v51 = vsel %vm542_vm0, %v1917_v45, %v1111_v50  ;;  %v1165_v63 = vpop.permute.xlu2 %1164 }
 0x376   : > { %v1264_v29 = vsel %vm1250_vm3, %v1246_v51, %v1167_v48 }
 0x377   : > { %v1281_v53 = vsel %vm1267_vm4, %v1264_v29, %v1223_v36 }
 0x378   : > { %1888 = vmatmul.msk.bf16.vlgmr.msra.gmra.mxu3 %vm1316_vm5, %v1281_v53 }
 0x37b   : > { %v1103_v55 = vpop.permute.xlu1 %1102 }
 0x37c   : > { %v1099_v56 = vpop.permute.xlu0 %1098  ;;  %v1234_v58 = vsel %vm542_vm0, %v1913_v37, %v1103_v55 }
 0x37d   : > { %v1228_v44 = vsel %vm542_vm0, %v1911_v57, %v1099_v56  ;;  %v1225_v5 = vpop.permute.xlu2 %1224  ;;  %v1383_v56 = vld [vmem:[%s2249_s14 + $0x8] sm:$0xff] }
 0x37e   : > { %v1252_v42 = vsel %vm1250_vm3, %v1228_v44, %v1155_v46  ;;  %v1387_v57 = vld [vmem:[%s2249_s14 + $0x28] sm:$0xff] }
 0x383   : > { %v1211_v49 = vpop.permute.xlu1 %1210 }
 0x384   : > { %v1159_v60 = vpop.permute.xlu0 %1158  ;;  %v1269_v62 = vsel %vm1267_vm4, %v1252_v42, %v1211_v49 }
 0x385   : > { %v1256_v61 = vsel %vm1250_vm3, %v1234_v58, %v1159_v60  ;;  %1882 = vmatmul.msk.bf16.vlgmr.msra.gmra.mxu0 %vm1316_vm5, %v1269_v62  ;;  %v1157_v17 = vpop.permute.xlu2 %1156 }
 0x386   : > { %v1273_v1 = vsel %vm1267_vm4, %v1256_v61, %v1215_v54  ;;  %v1450_v61 = vld [vmem:[#allocation3] sm:$0x1] }
 0x387   : > { %1884 = vmatmul.msk.bf16.vlgmr.msra.gmra.mxu1 %vm1316_vm5, %v1273_v1  ;;  %v1451_v62 = vmul.f32 0.25, %v1450_v61  ;;  %v1396_v1 = vld [vmem:[%s2249_s14 + $0x70] sm:$0xff] }
 0x389   : > { %1452 = vst [vmem:[%s407_s22] sm:$0x1] %v1451_v62 }
 0x38b   : > { %v1113_v2 = vpop.permute.xlu1 %1112 }
 0x38c   : > { %v1109_v3 = vpop.permute.xlu0 %1108  ;;  %v1249_v10 = vsel %vm542_vm0, %v1918_v8, %v1113_v2 }
 0x38d   : > { %v1243_v9 = vsel %vm542_vm0, %v1916_v4, %v1109_v3  ;;  %v1217_v7 = vpop.permute.xlu2 %1216 }
 0x38e   : > { %v1262_v47 = vsel %vm1250_vm3, %v1243_v9, %v1165_v63  ;;  %v1392_v63 = vld [vmem:[%s2249_s14 + $0x50] sm:$0xff] }
 0x393   : > { %v1221_v52 = vpop.permute.xlu1 %1220 }
 0x394   : > { %v1169_v11 = vpop.permute.xlu0 %1168  ;;  %v1279_v13 = vsel %vm1267_vm4, %v1262_v47, %v1221_v52  ;;  %v1397_v47 = vld [vmem:[%s2249_s14 + $0x78] sm:$0xff] }
 0x395   : > { %v1266_v12 = vsel %vm1250_vm3, %v1249_v10, %v1169_v11  ;;  %1887 = vmatmul.msk.bf16.gmra.mxu2 %vm1316_vm5, %v1279_v13  ;;  %v1393_v10 = vld [vmem:[%s2249_s14 + $0x58] sm:$0xff]  ;;  %v1384_v11 = vld [vmem:[%s2249_s14 + $0x10] sm:$0xff] }
 0x396   : > { %v1283_v14 = vsel %vm1267_vm4, %v1266_v12, %v1225_v5 }
 0x397   : > { %1889 = vmatmul.msk.bf16.gmra.mxu3 %vm1316_vm5, %v1283_v14  ;;  %v1388_v14 = vld [vmem:[%s2249_s14 + $0x30] sm:$0xff] }
 0x39b   : > { %v1105_v18 = vpop.permute.xlu1 %1104 }
 0x39c   : > { %v1101_v19 = vpop.permute.xlu0 %1100  ;;  %v1237_v59 = vsel %vm542_vm0, %v1914_v0, %v1105_v18 }
 0x39d   : > { %v1231_v21 = vsel %vm542_vm0, %v1912_v20, %v1101_v19 }
 0x39e   : > { %v1254_v6 = vsel %vm1250_vm3, %v1231_v21, %v1157_v17 }
 0x3a3   : > { %v1213_v23 = vpop.permute.xlu1 %1212 }
 0x3a4   : > { %v1161_v25 = vpop.permute.xlu0 %1160  ;;  %v1271_v28 = vsel %vm1267_vm4, %v1254_v6, %v1213_v23  ;;  %v1385_v23 = vld [vmem:[%s2249_s14 + $0x18] sm:$0xff] }
 0x3a5   : > { %v1258_v26 = vsel %vm1250_vm3, %v1237_v59, %v1161_v25  ;;  %1883 = vmatmul.msk.bf16.gmra.mxu0 %vm1316_vm5, %v1271_v28  ;;  %v1389_v25 = vld [vmem:[%s2249_s14 + $0x38] sm:$0xff] }
 0x3a6   : > { %v1275_v30 = vsel %vm1267_vm4, %v1258_v26, %v1217_v7 }
 0x3a7   : > { %1885 = vmatmul.msk.bf16.gmra.mxu1 %vm1316_vm5, %v1275_v30 }
 0x3f3   : > { %v1362_v31 = vpop.f32.mrf.mxu2 }
 0x3f4   : > { %v1406_v15 = vadd.f32 %v1390_v32, %v1362_v31 }
 0x3f6   : > { %v1426_v22 = vadd.f32 %v2559_v33, %v1406_v15 }
 0x3f8   : > { %1442 = vst.msk [vmem:[%s2254_s18 + $0x40] sm:$0xff] %vm1316_vm5, %v1426_v22 }
 0x3fb   : > { %v1364_v34 = vpop.f32.mrf.mxu2  ;;  %v1372_v35 = vpop.f32.mrf.mxu3 }
 0x3fc   : > { %v1407_v36 = vadd.f32 %v1391_v16, %v1364_v34  ;;  %v1410_v38 = vadd.f32 %v1394_v24, %v1372_v35 }
 0x3fe   : > { %v1427_v27 = vadd.f32 %v2559_v33, %v1407_v36  ;;  %v1430_v39 = vadd.f32 %v2559_v33, %v1410_v38 }
 0x400   : > { %1443 = vst.msk [vmem:[%s2254_s18 + $0x48] sm:$0xff] %vm1316_vm5, %v1427_v27 }
 0x401   : > { %1446 = vst.msk [vmem:[%s2254_s18 + $0x60] sm:$0xff] %vm1316_vm5, %v1430_v39 }
 0x402   : > { %v1342_v45 = vpop.f32.mrf.mxu0 }
 0x403   : > { %v1374_v46 = vpop.f32.mrf.mxu3  ;;  %v1398_v48 = vadd.f32 %v1382_v40, %v1342_v45 }
 0x404   : > { %v1411_v50 = vadd.f32 %v1395_v41, %v1374_v46  ;;  %v1352_v51 = vpop.f32.mrf.mxu1 }
 0x405   : > { %v1402_v29 = vadd.f32 %v1386_v43, %v1352_v51  ;;  %v1418_v53 = vadd.f32 %v2559_v33, %v1398_v48 }
 0x406   : > { %v1431_v54 = vadd.f32 %v2559_v33, %v1411_v50 }
 0x407   : > { %v1422_v55 = vadd.f32 %v2559_v33, %v1402_v29  ;;  %1434 = vst.msk [vmem:[%s2254_s18] sm:$0xff] %vm1316_vm5, %v1418_v53 }
 0x408   : > { %1447 = vst.msk [vmem:[%s2254_s18 + $0x68] sm:$0xff] %vm1316_vm5, %v1431_v54 }
 0x409   : > { %1438 = vst.msk [vmem:[%s2254_s18 + $0x20] sm:$0xff] %vm1316_vm5, %v1422_v55 }
 0x40a   : > { %v1344_v37 = vpop.f32.mrf.mxu0 }
 0x40b   : > { %v1399_v44 = vadd.f32 %v1383_v56, %v1344_v37 }
 0x40c   : > { %v1354_v58 = vpop.f32.mrf.mxu1 }
 0x40d   : > { %v1403_v42 = vadd.f32 %v1387_v57, %v1354_v58  ;;  %v1419_v49 = vadd.f32 %v2559_v33, %v1399_v44 }
 0x40f   : > { %v1423_v60 = vadd.f32 %v2559_v33, %v1403_v42  ;;  %1435 = vst.msk [vmem:[%s2254_s18 + $0x8] sm:$0xff] %vm1316_vm5, %v1419_v49 }
 0x411   : > { %1439 = vst.msk [vmem:[%s2254_s18 + $0x28] sm:$0xff] %vm1316_vm5, %v1423_v60 }
 0x418   : > { %v1367_v2 = vpop.f32.mrf.mxu2 }
 0x419   : > { %v1408_v3 = vadd.f32 %v1392_v63, %v1367_v2 }
 0x41a   : > { %v1377_v4 = vpop.f32.mrf.mxu3 }
 0x41b   : > { %v1412_v5 = vadd.f32 %v1396_v1, %v1377_v4  ;;  %v1428_v8 = vadd.f32 %v2559_v33, %v1408_v3 }
 0x41d   : > { %v1432_v9 = vadd.f32 %v2559_v33, %v1412_v5  ;;  %1444 = vst.msk [vmem:[%s2254_s18 + $0x50] sm:$0xff] %vm1316_vm5, %v1428_v8 }
 0x41f   : > { %1448 = vst.msk [vmem:[%s2254_s18 + $0x70] sm:$0xff] %vm1316_vm5, %v1432_v9 }
 0x420   : > { %v1369_v52 = vpop.f32.mrf.mxu2 }
 0x421   : > { %v1409_v12 = vadd.f32 %v1393_v10, %v1369_v52 }
 0x422   : > { %v1379_v13 = vpop.f32.mrf.mxu3  ;;  %v1347_v18 = vpop.f32.mrf.mxu0 }
 0x423   : > { %v1413_v17 = vadd.f32 %v1397_v47, %v1379_v13  ;;  %v1429_v19 = vadd.f32 %v2559_v33, %v1409_v12  ;;  %v1400_v20 = vadd.f32 %v1384_v11, %v1347_v18 }
 0x424   : > { %v1357_v0 = vpop.f32.mrf.mxu1 }
 0x425   : > { %v1433_v21 = vadd.f32 %v2559_v33, %v1413_v17  ;;  %v1404_v7 = vadd.f32 %v1388_v14, %v1357_v0  ;;  %1445 = vst.msk [vmem:[%s2254_s18 + $0x58] sm:$0xff] %vm1316_vm5, %v1429_v19  ;;  %v1420_v59 = vadd.f32 %v2559_v33, %v1400_v20 }
 0x427   : > { %1449 = vst.msk [vmem:[%s2254_s18 + $0x78] sm:$0xff] %vm1316_vm5, %v1433_v21  ;;  %v1424_v6 = vadd.f32 %v2559_v33, %v1404_v7 }
 0x428   : > { %1436 = vst.msk [vmem:[%s2254_s18 + $0x10] sm:$0xff] %vm1316_vm5, %v1420_v59 }
 0x429   : > { %1440 = vst.msk [vmem:[%s2254_s18 + $0x30] sm:$0xff] %vm1316_vm5, %v1424_v6 }
 0x42a   : > { %v1349_v26 = vpop.f32.mrf.mxu0 }
 0x42b   : > { %v1401_v28 = vadd.f32 %v1385_v23, %v1349_v26 }
 0x42c   : > { %v1359_v30 = vpop.f32.mrf.mxu1 }
 0x42d   : > { %v1405_v32 = vadd.f32 %v1389_v25, %v1359_v30  ;;  %v1421_v31 = vadd.f32 %v2559_v33, %v1401_v28 }
 0x42f   : > { %v1425_v15 = vadd.f32 %v2559_v33, %v1405_v32  ;;  %1437 = vst.msk [vmem:[%s2254_s18 + $0x18] sm:$0xff] %vm1316_vm5, %v1421_v31 }
 0x431   : > { %1441 = vst.msk [vmem:[%s2254_s18 + $0x38] sm:$0xff] %vm1316_vm5, %v1425_v15 }
 0x432 PF: > { %s18_s28 = sadd.s32 1, %s2162_s28   ;;  %s2654_s14 = sld [smem:[#allocation4_spill]] }
 0x433   : > { %p15_p9 = scmp.ge.s32.totalorder %s18_s28, 10   ;;  %s2655_s22 = sld [smem:[#allocation5_spill]] }
 0x434   : > { %s2656_s24 = smov %s2154_s26  ;;  %s2657_s25 = smov %s2158_s27 }
 0x435   :  { %17 = sbr.rel (!%p15_p9) target bundleno = 3 (0x3), region = 107 }
 0x438   : > { %s2658_s26 = smov %s2654_s14 }
 0x439   : > { %s2659_s27 = smov %s2655_s22 }

// kernel: transformer_drop_forward.11
= control target key start
LH: loop header
LB: loop body
LE: loop exit
PB: predicated region body
PF: predicated region fallthrough
CT: control target
= control target key end

     0   :  { %vm31_vm0 = vcmask 523264   ;;  %vm33_vm1 = vcmask 521216   ;;  %v627_v4 = vmov 64.0   ;;  %vm102_vm7 = vcmask 519168   ;;  %s848_s0 = inlined_call_operand.vmem [shape: f32[14,64], index: 0, kind: input, shape index: {}]   ;;  %s849_s1 = inlined_call_operand.vmem [shape: f32[1,64], index: 1, kind: input, shape index: {}]   ;;  %s850_s2 = inlined_call_operand.vmem [shape: f32[1,64], index: 2, kind: input, shape index: {}]   ;;  %s851_s3 = inlined_call_operand.vmem [shape: bf16[64,256], index: 3, kind: input, shape index: {}]   ;;  %s852_s5 = inlined_call_operand.vmem [shape: bf16[256,64], index: 5, kind: input, shape index: {}]   ;;  %s853_s4 = inlined_call_operand.vmem [shape: f32[1,256], index: 4, kind: input, shape index: {}]   ;;  %s854_s6 = inlined_call_operand.vmem [shape: f32[1,64], index: 6, kind: input, shape index: {}]   ;;  %s855_s7 = inlined_call_operand.vmem [shape: f32[14,64], index: 7, kind: output, shape index: {}]  }
   0x1   :  { %v672_v0 = vld [vmem:[%s848_s0] sm:$0xff]  ;;  %v36_v2 = vld [vmem:[%s848_s0 + $0x8] sm:$0x3f]  ;;  %605 = vrcp.f32 %v627_v4  ;;  %v499_v21 = vld [vmem:[%s851_s3 + $0x30] sm:$0xf]  ;;  %vm104_vm10 = vcmask 518144  }
   0x2   :  { %v37_v1 = vsel %vm31_vm0, %v672_v0, 0.0  ;;  %v40_v3 = vsel %vm33_vm1, %v36_v2, 0.0  ;;  %v583_v22 = vld [vmem:[%s851_s3 + $0x34] sm:$0xf0]  ;;  %v582_v25 = vld [vmem:[%s851_s3 + $0x34] sm:$0xf] }
   0x3   :  { %38 = vadd.xlane.f32.xlu0 %v37_v1  ;;  %v500_v24 = vor.u32 %v583_v22, %v499_v21  ;;  %v501_v26 = vld [vmem:[%s851_s3 + $0x38] sm:$0xf0]  ;;  %v491_v30 = vld [vmem:[%s851_s3 + $0x20] sm:$0xf]  ;;  %v581_v31 = vld [vmem:[%s851_s3 + $0x24] sm:$0xf0] }
   0x4   :  { %v504_v28 = vor.u32 %v582_v25, %v501_v26  ;;  %v492_v32 = vor.u32 %v581_v31, %v491_v30  ;;  %v580_v33 = vld [vmem:[%s851_s3 + $0x24] sm:$0xf]  ;;  %v493_v34 = vld [vmem:[%s851_s3 + $0x28] sm:$0xf0]  ;;  %v483_v36 = vld [vmem:[%s851_s3 + $0x10] sm:$0xf] }
   0x5   :  { %175 = vmatpush.bf16.msra.mxu0 %v500_v24  ;;  %v496_v35 = vor.u32 %v580_v33, %v493_v34  ;;  %v579_v37 = vld [vmem:[%s851_s3 + $0x14] sm:$0xf0]  ;;  %v578_v38 = vld [vmem:[%s851_s3 + $0x14] sm:$0xf]  ;;  %v485_v41 = vld [vmem:[%s851_s3 + $0x18] sm:$0xf0] }
   0x6   :  { %189 = vmatpush.bf16.msra.mxu1 %v504_v28  ;;  %v484_v40 = vor.u32 %v579_v37, %v483_v36  ;;  %v475_v42 = vld [vmem:[%s851_s3] sm:$0xf]  ;;  %v577_v43 = vld [vmem:[%s851_s3 + $0x4] sm:$0xf0]  ;;  %v488_v45 = vor.u32 %v578_v38, %v485_v41  ;;  %v576_v46 = vld [vmem:[%s851_s3 + $0x4] sm:$0xf] }
   0x7   :  { %v606_v5 = vpop.eup %605  ;;  %v477_v47 = vld [vmem:[%s851_s3 + $0x8] sm:$0xf0]  ;;  %v476_v48 = vor.u32 %v577_v43, %v475_v42  ;;  %v602_v59 = vld [vmem:[%s849_s1] ss:$0 sm:$0xff]  ;;  %v587_v28 = vld [vmem:[%s852_s5 + $0x18] sm:$0xff] }
   0x8   :  { %v44_v6 = vmul.f32 64.0, %v606_v5  ;;  %vm48_vm2 = vweird.f32 %v606_v5  ;;  %v480_v51 = vor.u32 %v576_v46, %v477_v47  ;;  %v603_v62 = vld [vmem:[%s850_s2] ss:$0 sm:$0xff]  ;;  %v586_v34 = vld [vmem:[%s852_s5 + $0x10] sm:$0xff]  ;;  %v593_v41 = vld [vmem:[%s852_s5 + $0x48] sm:$0xff] }
   0x9   :  { %176 = vmatpush.bf16.msra.mxu0 %v492_v32  ;;  %v116_v21 = vld [vmem:[%s853_s4] sm:$0x3] }
   0xa   :  { %v45_v7 = vsub.f32 1.0, %v44_v6  ;;  %190 = vmatpush.bf16.msra.mxu1 %v496_v35  ;;  %v588_v22 = vld [vmem:[%s852_s5 + $0x20] sm:$0xff]  ;;  %v118_v24 = vperm.slane %v116_v21, 0  ;;  %v119_v25 = vperm.slane %v116_v21, 1  ;;  %v594_v35 = vld [vmem:[%s852_s5 + $0x50] sm:$0xff] }
   0xb   :  { %41 = vadd.xlane.f32.xlu0 %v40_v3  ;;  %v584_v46 = vld [vmem:[%s852_s5] sm:$0xff] }
   0xc   :  { %v46_v8 = vmul.f32 %v606_v5, %v45_v7  ;;  %v592_v47 = vld [vmem:[%s852_s5 + $0x40] sm:$0xff] }
   0xd   :  { %177 = vmatpush.bf16.msra.mxu0 %v484_v40  ;;  %v585_v40 = vld [vmem:[%s852_s5 + $0x8] sm:$0xff] }
   0xe   :  { %v47_v9 = vadd.f32 %v606_v5, %v46_v8  ;;  %191 = vmatpush.bf16.msra.mxu1 %v488_v45 }
  0x10   :  { %v49_v10 = vsel %vm48_vm2, %v606_v5, %v47_v9 }
  0x11   :  { %178 = vmatpush.bf16.msra.mxu0 %v476_v48 }
  0x12   :  { %192 = vmatpush.bf16.msra.mxu1 %v480_v51 }
  0x76   :  { %v39_v11 = vpop.xlane.xlu0 %38 }
  0x77   :  { %v50_v12 = vmul.f32 %v49_v10, %v39_v11 }
  0x79   :  { %v681_v13 = vsub.f32 %v672_v0, %v50_v12 }
  0x7b   :  { %v54_v14 = vmul.f32 %v681_v13, %v681_v13 }
  0x7d   :  { %v56_v15 = vsel %vm31_vm0, %v54_v14, 0.0 }
  0x7e   :  { %57 = vadd.xlane.f32.xlu1 %v56_v15  ;;  %v42_v16 = vpop.xlane.xlu0 %41  ;;  %v591_v15 = vld [vmem:[%s852_s5 + $0x38] sm:$0xff] }
  0x7f   :  { %v51_v17 = vmul.f32 %v49_v10, %v42_v16  ;;  %v599_v16 = vld [vmem:[%s852_s5 + $0x78] sm:$0xff]  ;;  %415 = vmatpush.bf16.msra.mxu2 %v591_v15 }
  0x80   :  { %429 = vmatpush.bf16.msra.mxu3 %v599_v16 }
  0x81   :  { %v686_v18 = vsub.f32 %v36_v2, %v51_v17  ;;  %v590_v17 = vld [vmem:[%s852_s5 + $0x30] sm:$0xff] }
  0x83   :  { %v55_v19 = vmul.f32 %v686_v18, %v686_v18  ;;  %416 = vmatpush.bf16.msra.mxu2 %v590_v17 }
  0x85   :  { %v59_v20 = vsel %vm33_vm1, %v55_v19, 0.0  ;;  %v589_v19 = vld [vmem:[%s852_s5 + $0x28] sm:$0xff] }
  0x86   :  { %60 = vadd.xlane.f32.xlu1 %v59_v20  ;;  %v597_v20 = vld [vmem:[%s852_s5 + $0x68] sm:$0xff] }
  0x87   :  { %417 = vmatpush.bf16.msra.mxu2 %v589_v19 }
  0x8b   :  { %418 = vmatpush.bf16.msra.mxu2 %v588_v22 }
  0x8f   :  { %419 = vmatpush.bf16.msra.mxu2 %v587_v28 }
  0x93   :  { %420 = vmatpush.bf16.msra.mxu2 %v586_v34 }
  0x97   :  { %421 = vmatpush.bf16.msra.mxu2 %v585_v40 }
  0x9b   :  { %422 = vmatpush.bf16.msra.mxu2 %v584_v46 }
  0xf1   :  { %v58_v23 = vpop.xlane.xlu1 %57 }
  0xf2   :  { %v62_v27 = vmul.f32 %v58_v23, %v49_v10  ;;  %v596_v23 = vld [vmem:[%s852_s5 + $0x60] sm:$0xff] }
  0xf4   :  { %v64_v29 = vadd.f32 1e-05, %v62_v27 }
  0xf6   :  { %607 = vrsqrt.f32 %v64_v29  ;;  %vm72_vm4 = vweird.f32 %v64_v29 }
  0xf9   :  { %v61_v39 = vpop.xlane.xlu1 %60 }
  0xfa   :  { %v63_v44 = vmul.f32 %v61_v39, %v49_v10 }
  0xfc   :  { %v608_v49 = vpop.eup %607  ;;  %v65_v50 = vadd.f32 1e-05, %v63_v44 }
  0xfd   :  { %v67_v52 = vmul.f32 %v608_v49, %v64_v29  ;;  %vm73_vm3 = vweird.f32 %v608_v49  ;;  %v595_v29 = vld [vmem:[%s852_s5 + $0x58] sm:$0xff] }
  0xfe   :  { %609 = vrsqrt.f32 %v65_v50  ;;  %vm74_vm5 = vmor %vm72_vm4, %vm73_vm3  ;;  %vm82_vm8 = vweird.f32 %v65_v50 }
  0xff   :  { %v68_v53 = vmul.f32 %v608_v49, %v67_v52 }
 0x101   :  { %v69_v54 = vmul.f32 0.5, %v68_v53 }
 0x103   :  { %v70_v55 = vsub.f32 1.5, %v69_v54 }
 0x104   :  { %v610_v56 = vpop.eup %609 }
 0x105   :  { %v71_v57 = vmul.f32 %v608_v49, %v70_v55  ;;  %v77_v58 = vmul.f32 %v610_v56, %v65_v50  ;;  %vm83_vm6 = vweird.f32 %v610_v56 }
 0x106   :  { %vm84_vm9 = vmor %vm82_vm8, %vm83_vm6 }
 0x107   :  { %v75_v60 = vsel %vm74_vm5, %v608_v49, %v71_v57  ;;  %v78_v61 = vmul.f32 %v610_v56, %v77_v58 }
 0x108   :  { %v86_v63 = vmul.f32 %v75_v60, %v681_v13 }
 0x109   :  { %v79_v1 = vmul.f32 0.5, %v78_v61 }
 0x10a   :  { %v92_v2 = vmul.f32 %v602_v59, %v86_v63 }
 0x10b   :  { %v80_v3 = vsub.f32 1.5, %v79_v1 }
 0x10c   :  { %v98_v4 = vadd.f32 %v603_v62, %v92_v2 }
 0x10d   :  { %v81_v5 = vmul.f32 %v610_v56, %v80_v3 }
 0x10e   :  { %v100_v6 = vpack.c.bf16 %v98_v4, %v98_v4 }
 0x10f   :  { %v85_v7 = vsel %vm84_vm9, %v610_v56, %v81_v5 }
 0x110   :  { %103 = vst.msk [vmem:[#allocation3] sm:$0xf] %vm102_vm7, %v100_v6  ;;  %v87_v8 = vmul.f32 %v85_v7, %v686_v18  ;;  %v598_v18 = vld [vmem:[%s852_s5 + $0x70] sm:$0xff] }
 0x111   :  { %430 = vmatpush.bf16.msra.mxu3 %v598_v18 }
 0x112   :  { %v93_v9 = vmul.f32 %v602_v59, %v87_v8 }
 0x114   :  { %v99_v10 = vadd.f32 %v603_v62, %v93_v9 }
 0x115   :  { %431 = vmatpush.bf16.msra.mxu3 %v597_v20 }
 0x116   :  { %v101_v11 = vpack.c.bf16 %v99_v10, %v99_v10 }
 0x117   :  { %v471_v12 = vld [vmem:[#allocation3] sm:$0xf] }
 0x118   :  { %105 = vst.msk [vmem:[#allocation3 + $0x4] sm:$0x7] %vm104_vm10, %v101_v11 }
 0x119   :  { %432 = vmatpush.bf16.msra.mxu3 %v596_v23 }
 0x11d   :  { %433 = vmatpush.bf16.msra.mxu3 %v595_v29 }
 0x11f   :  { %v575_v13 = vld [vmem:[#allocation3] sm:$0x70] }
 0x120   :  { %v472_v14 = vor.u32 %v575_v13, %v471_v12 }
 0x121   :  { %434 = vmatpush.bf16.msra.mxu3 %v594_v35 }
 0x122   :  { %505 = vmatmul.msk.bf16.vlgmr.msra.gmra.mxu0 %vm31_vm0, %v472_v14  ;;  %506 = vmatmul.msk.bf16.vlgmr.msra.gmra.mxu1 %vm31_vm0, %v472_v14 }
 0x125   :  { %435 = vmatpush.bf16.msra.mxu3 %v593_v41 }
 0x129   :  { %436 = vmatpush.bf16.msra.mxu3 %v592_v47  ;;  %v628_v47 = vmov 0.0  }
 0x12a   :  { %32 = vst.msk [vmem:[#allocation2] sm:$0xff] %vm31_vm0, %v628_v47 }
 0x12b   :  { %34 = vst.msk [vmem:[#allocation2 + $0x8] sm:$0x3f] %vm33_vm1, %v628_v47 }
 0x19f   :  { %v180_v26 = vpop.f32.mrf.mxu0  ;;  %v194_v27 = vpop.f32.mrf.mxu1 }
 0x1a0   :  { %v782_v30 = vadd.f32 %v180_v26, %v118_v24  ;;  %v784_v31 = vadd.f32 %v194_v27, %v119_v25 }
 0x1a2   :  { %v507_v32 = vmul.f32 -1.702, %v782_v30  ;;  %v508_v33 = vmul.f32 -1.702, %v784_v31 }
 0x1a4   :  { %v207_v36 = vmul.f32 1.442695, %v507_v32  ;;  %v209_v37 = vmul.f32 1.442695, %v508_v33 }
 0x1a6   :  { %611 = vpow2.f32 %v207_v36 }
 0x1a7   :  { %613 = vpow2.f32 %v209_v37  ;;  %v182_v38 = vpop.f32.mrf.mxu0  ;;  %v196_v39 = vpop.f32.mrf.mxu1 }
 0x1a8   :  { %v800_v42 = vadd.f32 %v182_v38, %v118_v24  ;;  %v802_v43 = vadd.f32 %v196_v39, %v119_v25 }
 0x1aa   :  { %v509_v44 = vmul.f32 -1.702, %v800_v42  ;;  %v510_v45 = vmul.f32 -1.702, %v802_v43 }
 0x1ac   :  { %v612_v48 = vpop.eup %611  ;;  %v211_v49 = vmul.f32 1.442695, %v509_v44  ;;  %v213_v52 = vmul.f32 1.442695, %v510_v45 }
 0x1ad   :  { %v614_v50 = vpop.eup %613  ;;  %v215_v51 = vadd.f32 1.0, %v612_v48 }
 0x1ae   :  { %v216_v53 = vadd.f32 1.0, %v614_v50  ;;  %615 = vpow2.f32 %v211_v49 }
 0x1af   :  { %617 = vrcp.f32 %v215_v51  ;;  %vm224_vm12 = vweird.f32 %v215_v51  ;;  %v228_v6 = vand.u32 2147483647, %v215_v51  ;;  %v230_v7 = vand.u32 2147483648, %v215_v51 }
 0x1b0   :  { %619 = vrcp.f32 %v216_v53  ;;  %vm239_vm13 = vweird.f32 %v216_v53  ;;  %v243_v9 = vand.u32 2147483647, %v216_v53  ;;  %v245_v14 = vand.u32 2147483648, %v216_v53 }
 0x1b1   :  { %621 = vpow2.f32 %v213_v52  ;;  %vm229_vm3 = vcmp.eq.f32.partialorder %v228_v6, 8.507059e+37  ;;  %v231_v19 = vor.u32 1.1754944e-38, %v230_v7  ;;  %v284_v52 = vld [vmem:[#allocation2 + $0x8] sm:$0x3f] }
 0x1b2   :  { %v246_v29 = vor.u32 1.1754944e-38, %v245_v14  ;;  %vm244_vm9 = vcmp.eq.f32.partialorder %v243_v9, 8.507059e+37 }
 0x1b4   :  { %v616_v54 = vpop.eup %615 }
 0x1b5   :  { %v618_v55 = vpop.eup %617  ;;  %v217_v56 = vadd.f32 1.0, %v616_v54 }
 0x1b6   :  { %v620_v57 = vpop.eup %619  ;;  %v220_v58 = vmul.f32 %v618_v55, %v215_v51  ;;  %vm225_vm11 = vweird.f32 %v618_v55 }
 0x1b7   :  { %v622_v59 = vpop.eup %621  ;;  %v235_v60 = vmul.f32 %v620_v57, %v216_v53  ;;  %623 = vrcp.f32 %v217_v56  ;;  %v260_v11 = vand.u32 2147483648, %v217_v56  ;;  %vm812_vm14 = vmor %vm224_vm12, %vm225_vm11  ;;  %vm240_vm15 = vweird.f32 %v620_v57 }
 0x1b8   :  { %v221_v61 = vsub.f32 1.0, %v220_v58  ;;  %v218_v62 = vadd.f32 1.0, %v622_v59  ;;  %v258_v18 = vand.u32 2147483647, %v217_v56  ;;  %vm254_vm4 = vweird.f32 %v217_v56  ;;  %vm819_vm5 = vmor %vm239_vm13, %vm240_vm15  ;;  %v452_v58 = vld [vmem:[%s848_s0 + $0x8] sm:$0x3f] }
 0x1b9   :  { %v236_v63 = vsub.f32 1.0, %v235_v60  ;;  %v261_v23 = vor.u32 1.1754944e-38, %v260_v11 }
 0x1ba   :  { %v222_v1 = vmul.f32 %v618_v55, %v221_v61  ;;  %625 = vrcp.f32 %v218_v62  ;;  %v273_v24 = vand.u32 2147483647, %v218_v62  ;;  %v275_v25 = vand.u32 2147483648, %v218_v62 }
 0x1bb   :  { %v237_v3 = vmul.f32 %v620_v57, %v236_v63  ;;  %vm259_vm8 = vcmp.eq.f32.partialorder %v258_v18, 8.507059e+37  ;;  %vm269_vm10 = vweird.f32 %v218_v62 }
 0x1bc   :  { %v223_v4 = vadd.f32 %v618_v55, %v222_v1  ;;  %v276_v38 = vor.u32 1.1754944e-38, %v275_v25  ;;  %vm274_vm12 = vcmp.eq.f32.partialorder %v273_v24, 8.507059e+37 }
 0x1bd   :  { %v624_v2 = vpop.eup %623  ;;  %v238_v13 = vadd.f32 %v620_v57, %v237_v3 }
 0x1be   :  { %v250_v5 = vmul.f32 %v624_v2, %v217_v56  ;;  %v227_v16 = vsel %vm812_vm14, %v618_v55, %v223_v4  ;;  %vm255_vm2 = vweird.f32 %v624_v2 }
 0x1bf   :  { %v232_v26 = vsel %vm229_vm3, %v231_v19, %v227_v16  ;;  %v242_v27 = vsel %vm819_vm5, %v620_v57, %v238_v13  ;;  %vm256_vm6 = vmor %vm254_vm4, %vm255_vm2 }
 0x1c0   :  { %v626_v8 = vpop.eup %625  ;;  %v251_v10 = vsub.f32 1.0, %v250_v5  ;;  %v279_v35 = vmul.f32 %v232_v26, %v782_v30  ;;  %v247_v36 = vsel %vm244_vm9, %v246_v29, %v242_v27 }
 0x1c1   :  { %v265_v15 = vmul.f32 %v626_v8, %v218_v62  ;;  %vm270_vm7 = vweird.f32 %v626_v8  ;;  %v280_v44 = vmul.f32 %v247_v36, %v784_v31 }
 0x1c2   :  { %v252_v17 = vmul.f32 %v624_v2, %v251_v10  ;;  %vm271_vm11 = vmor %vm269_vm10, %vm270_vm7 }
 0x1c3   :  { %v266_v20 = vsub.f32 1.0, %v265_v15 }
 0x1c4   :  { %v253_v22 = vadd.f32 %v624_v2, %v252_v17 }
 0x1c5   :  { %v267_v28 = vmul.f32 %v626_v8, %v266_v20 }
 0x1c6   :  { %v257_v32 = vsel %vm256_vm6, %v624_v2, %v253_v22 }
 0x1c7   :  { %v262_v33 = vsel %vm259_vm8, %v261_v23, %v257_v32  ;;  %v268_v34 = vadd.f32 %v626_v8, %v267_v28 }
 0x1c8   :  { %v281_v37 = vmul.f32 %v262_v33, %v800_v42  ;;  %v283_v42 = vld [vmem:[#allocation2] sm:$0xff] }
 0x1c9   :  { %v272_v39 = vsel %vm271_vm11, %v626_v8, %v268_v34 }
 0x1ca   :  { %v277_v40 = vsel %vm274_vm12, %v276_v38, %v272_v39  ;;  %v285_v41 = vpack.c.bf16 %v281_v37, %v279_v35 }
 0x1cb   :  { %v282_v45 = vmul.f32 %v277_v40, %v802_v43  ;;  %v604_v43 = vld [vmem:[%s854_s6] ss:$0 sm:$0xff] }
 0x1cc   :  { %423 = vmatmul.bf16.vlgmr.msra.gmra.mxu2 %v285_v41 }
 0x1cd   :  { %v286_v46 = vpack.c.bf16 %v282_v45, %v280_v44 }
 0x1cf   :  { %437 = vmatmul.bf16.vlgmr.msra.gmra.mxu3 %v286_v46 }
 0x24f   :  { %v424_v30 = vpop.f32.mrf.mxu2 }
 0x252   :  { %v438_v48 = vpop.f32.mrf.mxu3 }
 0x253   :  { %v439_v49 = vadd.f32 %v438_v48, %v424_v30 }
 0x255   :  { %v443_v50 = vadd.f32 %v439_v49, %v283_v42 }
 0x257   :  { %445 = vst.msk [vmem:[#allocation2] sm:$0xff] %vm31_vm0, %v443_v50  ;;  %v426_v51 = vpop.f32.mrf.mxu2 }
 0x25a   :  { %v440_v31 = vpop.f32.mrf.mxu3 }
 0x25b   :  { %v441_v53 = vadd.f32 %v440_v31, %v426_v51 }
 0x25d   :  { %v444_v54 = vadd.f32 %v441_v53, %v284_v52 }
 0x25e   :  { %v453_v55 = vld [vmem:[#allocation2] sm:$0xff] }
 0x25f   :  { %v455_v56 = vadd.f32 %v453_v55, %v672_v0  ;;  %447 = vst.msk [vmem:[#allocation2 + $0x8] sm:$0x3f] %vm33_vm1, %v444_v54 }
 0x261   :  { %v461_v57 = vadd.f32 %v604_v43, %v455_v56 }
 0x263   :  { %463 = vst.msk [vmem:[%s855_s7] sm:$0xff] %vm31_vm0, %v461_v57 }
 0x266   :  { %v454_v59 = vld [vmem:[#allocation2 + $0x8] sm:$0x3f] }
 0x267   :  { %v456_v60 = vadd.f32 %v454_v59, %v452_v58 }
 0x269   :  { %v462_v61 = vadd.f32 %v604_v43, %v456_v60 }
 0x26b   :  { %464 = vst.msk [vmem:[%s855_s7 + $0x8] sm:$0x3f] %vm33_vm1, %v462_v61 }

</bundles_post_ra>
